<compile_context>
chip_gen: v7x
topology: tpu7x:2x2x1
jax: 0.10.0
libtpu: 0.0.40
codegen_flags: <defaults>
</compile_context>

<pallas_src>
import functools
import math

import jax
import jax.numpy as jnp
from jax.experimental import pallas as pl
from jax.experimental.pallas import tpu as pltpu


# ---------------------------------------------------------------------------
# Kernel 1: slate-wise multi-head self attention, fused with out_proj+out_layer
# ---------------------------------------------------------------------------
def _slate_attention_kernel(items_ref,   # [NT, K, E]  item embeddings
                            user_ref,    # [NT, E]     user embedding per slate
                            mask_ref,    # [NT, K]     1.0 = real item
                            w_item_ref,  # [3D, E]     in_proj_weight[:, :E]
                            w_user_ref,  # [3D, E]     in_proj_weight[:, E:]
                            b_qkv_ref,   # [1, 3D]     in_proj_bias
                            g_ref,       # [1, D]      fused w_out_att @ W_o
                            out_ref,     # [NT, K]     att . w_out[:2E] (no const)
                            *, nheads):
    items = items_ref[...].astype(jnp.float32)
    user = user_ref[...].astype(jnp.float32)
    valid = mask_ref[...] > 0.5                                 # [NT, K] bool

    NT, K, E = items.shape
    D = 2 * E
    Dh = D // nheads
    scale = 1.0 / math.sqrt(Dh)
    neg = jnp.float32(-1e30)

    # QKV projection with the item/user weight split: no [item|user] concat,
    # two MXU-friendly GEMMs for the whole tile.
    qkv = (jnp.einsum('nke,de->nkd', items, w_item_ref[...],
                      preferred_element_type=jnp.float32)
           + jnp.einsum('ne,de->nd', user, w_user_ref[...],
                        preferred_element_type=jnp.float32)[:, None, :]
           + b_qkv_ref[...][:, None, :])                        # [NT, K, 3D]
    q = qkv[..., :D]
    k = qkv[..., D:2 * D]
    v = qkv[..., 2 * D:]
    bias = b_qkv_ref[...]                                       # [1, 3D]
    g = g_ref[...]                                              # [1, D]

    out = jnp.zeros((NT, K), jnp.float32)
    # Static head loop (nheads is tiny, no per-head concat): each head's context
    # is contracted directly with its slice of the fused output vector g.
    for h in range(nheads):
        sl = slice(h * Dh, (h + 1) * Dh)
        qh, kh, vh = q[..., sl], k[..., sl], v[..., sl]
        # Zero "artificial item" key/value are just the in_proj bias slices.
        k0 = bias[:, D + h * Dh:D + (h + 1) * Dh]               # [1, Dh]
        v0 = bias[:, 2 * D + h * Dh:2 * D + (h + 1) * Dh]       # [1, Dh]
        gh = g[:, sl]                                           # [1, Dh]

        sc = jnp.einsum('nqd,nkd->nqk', qh, kh,
                        preferred_element_type=jnp.float32) * scale
        sc = jnp.where(valid[:, None, :], sc, neg)              # key_padding_mask
        sc0 = jnp.sum(qh * k0[:, None, :], axis=-1) * scale     # vs zero item

        m = jnp.maximum(jnp.max(sc, axis=-1), sc0)              # [NT, K]
        p = jnp.exp(sc - m[..., None])
        p0 = jnp.exp(sc0 - m)
        denom = jnp.sum(p, axis=-1) + p0

        vg = jnp.sum(vh * gh[:, None, :], axis=-1)              # [NT, K]
        v0g = jnp.sum(v0 * gh, axis=-1, keepdims=True)          # [1, 1]
        num = jnp.sum(p * vg[:, None, :], axis=-1) + p0 * v0g
        out = out + num * pl.reciprocal(denom, approx=True)

    out_ref[...] = out


# ---------------------------------------------------------------------------
# Kernel 2: session-wise GRU over the flattened S*K item sequence, fused with
#           the GRU half of out_layer and the attention partial sums.
# ---------------------------------------------------------------------------
def _gru_kernel(x_ref,      # [TT, BT, E]  item embeddings for this time chunk
                att_ref,    # [TT, BT]     attention contribution (+const)
                w_ih_ref,   # [3E, E]      GRU weight_ih
                w_hh_ref,   # [3E, E]      GRU weight_hh
                b_ih_ref,   # [1, 3E]
                b_hh_ref,   # [1, 3E]
                w_g_ref,    # [1, E]       out_layer weight on GRU features
                out_ref,    # [TT, BT]     final predictions for this chunk
                h_ref,      # VMEM [BT, E] hidden, carried across time chunks
                gi_ref,     # VMEM [TT, BT, 3E]
                hs_ref):    # VMEM [TT, BT, E]
    @pl.when(pl.program_id(1) == 0)
    def _():
        h_ref[...] = jnp.zeros_like(h_ref)      # nn.GRU default h0 = 0

    x = x_ref[...].astype(jnp.float32)          # [TT, BT, E]
    TT, BT, E = x.shape

    # Input-side GEMM for the WHOLE chunk, hoisted out of the recurrence.
    gi_ref[...] = (jnp.einsum('tbe,oe->tbo', x, w_ih_ref[...],
                              preferred_element_type=jnp.float32)
                   + b_ih_ref[...][None])       # [TT, BT, 3E]

    w_hh = w_hh_ref[...]
    b_hh = b_hh_ref[...]

    def step(t, h):
        gi = gi_ref[t]                                          # [BT, 3E]
        gh = jnp.einsum('be,oe->bo', h, w_hh,
                        preferred_element_type=jnp.float32) + b_hh
        r = jax.nn.sigmoid(gi[:, :E] + gh[:, :E])
        z = jax.nn.sigmoid(gi[:, E:2 * E] + gh[:, E:2 * E])
        n = jnp.tanh(gi[:, 2 * E:] + r * gh[:, 2 * E:])
        h_new = (1.0 - z) * n + z * h
        hs_ref[t] = h_new
        return h_new

    h_ref[...] = jax.lax.fori_loop(0, TT, step, h_ref[...],
                                   unroll=True if TT <= 32 else 8)

    # Single store for the whole chunk instead of TT tiny per-step stores.
    out_ref[...] = att_ref[...] + jnp.sum(hs_ref[...] * w_g_ref[...][None],
                                          axis=-1)


# ---------------------------------------------------------------------------
# Wrapper
# ---------------------------------------------------------------------------
def dummy_transformer_gru_forward(item_embs, user_embs, slates_mask, params,
                                  nheads=2):
    """Pallas implementation of DummyTransformerGRU.forward (post-embedding)."""
    B, S, K, E = item_embs.shape
    D = 2 * E
    T = S * K
    N = B * S
    f32 = jnp.float32

    w_qkv = params['w_qkv'].astype(f32)          # [3D, D]  MHA in_proj_weight
    b_qkv = params['b_qkv'].astype(f32)          # [3D]
    w_o = params['w_o'].astype(f32)              # [D, D]   MHA out_proj.weight
    b_o = params['b_o'].astype(f32)              # [D]
    w_ih = params['w_ih'].astype(f32)            # [3E, E]  GRU weight_ih_l0
    w_hh = params['w_hh'].astype(f32)            # [3E, E]  GRU weight_hh_l0
    b_ih = params['b_ih'].astype(f32)            # [3E]
    b_hh = params['b_hh'].astype(f32)            # [3E]
    w_out = params['w_out'].astype(f32)          # [1, 3E]  out_layer weight
    b_out = params['b_out'].astype(f32)          # [1]

    # --- constant folding done once, at trace time -------------------------
    w_out_att = w_out[0, :D]                     # out_layer weight on att feats
    w_out_gru = w_out[0, D:]                     # out_layer weight on gru feats
    g = w_out_att @ w_o                          # att.w_a == ctx.(w_a @ W_o)
    c = jnp.dot(b_o, w_out_att) + b_out[0]       # scalar constant (incl. b_out)
    w_item = w_qkv[:, :E]                        # item half of in_proj columns
    w_user = w_qkv[:, E:]                        # user half of in_proj columns

    # ---------------- attention pass: fully parallel over B*S slates -------
    items_flat = item_embs.reshape(N, K, E).astype(f32)
    user_flat = user_embs.reshape(N, E).astype(f32)
    mask_flat = slates_mask.reshape(N, K).astype(f32)

    NT = N
    for cand in (128, 64, 32, 16, 8):            # multiple of 8 (sublane rule)
        if N % cand == 0:
            NT = cand
            break

    const2 = lambda n: (0, 0)
    att_flat = pl.pallas_call(
        functools.partial(_slate_attention_kernel, nheads=nheads),
        out_shape=jax.ShapeDtypeStruct((N, K), f32),
        grid_spec=pltpu.PrefetchScalarGridSpec(
            num_scalar_prefetch=0,
            grid=(N // NT,),
            in_specs=[
                pl.BlockSpec((NT, K, E), lambda n: (n, 0, 0)),
                pl.BlockSpec((NT, E), lambda n: (n, 0)),
                pl.BlockSpec((NT, K), lambda n: (n, 0)),
                pl.BlockSpec((3 * D, E), const2),
                pl.BlockSpec((3 * D, E), const2),
                pl.BlockSpec((1, 3 * D), const2),
                pl.BlockSpec((1, D), const2),
            ],
            out_specs=pl.BlockSpec((NT, K), lambda n: (n, 0)),
        ),
        compiler_params=pltpu.CompilerParams(
            dimension_semantics=("parallel",),
            vmem_limit_bytes=32 * 1024 * 1024),
    )(items_flat, user_flat, mask_flat, w_item, w_user,
      b_qkv[None, :], g[None, :])

    # Fold the fused scalar constant here instead of shipping a (1,1) block.
    att_tb = (att_flat.reshape(B, T) + c).T                     # [T, B]

    # ---------------- GRU pass: sequential over T = S*K, parallel over B ---
    x_tbe = jnp.transpose(item_embs.reshape(B, T, E).astype(f32), (1, 0, 2))

    # Chunk of time steps per grid iteration (amortizes per-step overhead);
    # small chunk at toy sizes so the cross-chunk hidden carry is exercised.
    TT = 128 if T % 128 == 0 else (16 if T % 16 == 0 else T)
    BT = B if B <= 8 else 8
    assert B % BT == 0

    const2g = lambda b, t: (0, 0)
    out_tb = pl.pallas_call(
        _gru_kernel,
        out_shape=jax.ShapeDtypeStruct((T, B), f32),
        grid_spec=pltpu.PrefetchScalarGridSpec(
            num_scalar_prefetch=0,
            grid=(B // BT, T // TT),
            in_specs=[
                pl.BlockSpec((TT, BT, E), lambda b, t: (t, b, 0)),
                pl.BlockSpec((TT, BT), lambda b, t: (t, b)),
                pl.BlockSpec((3 * E, E), const2g),
                pl.BlockSpec((3 * E, E), const2g),
                pl.BlockSpec((1, 3 * E), const2g),
                pl.BlockSpec((1, 3 * E), const2g),
                pl.BlockSpec((1, E), const2g),
            ],
            out_specs=pl.BlockSpec((TT, BT), lambda b, t: (t, b)),
            scratch_shapes=[
                pltpu.VMEM((BT, E), f32),
                pltpu.VMEM((TT, BT, 3 * E), f32),
                pltpu.VMEM((TT, BT, E), f32),
            ],
        ),
        compiler_params=pltpu.CompilerParams(
            dimension_semantics=("parallel", "arbitrary"),
            vmem_limit_bytes=32 * 1024 * 1024),
    )(x_tbe, att_tb, w_ih, w_hh, b_ih[None, :], b_hh[None, :],
      w_out_gru[None, :])

    return out_tb.T.reshape(B, S, K)


# ---------------------------------------------------------------------------
# Pure-JAX reference mirroring the PyTorch module
# ---------------------------------------------------------------------------
def reference_forward(item_embs, user_embs, slates_mask, params, nheads=2):
    B, S, K, E = item_embs.shape
    D = 2 * E
    Dh = D // nheads
    w_qkv, b_qkv = params['w_qkv'], params['b_qkv']
    w_o, b_o = params['w_o'], params['b_o']
    w_ih, w_hh = params['w_ih'], params['w_hh']
    b_ih, b_hh = params['b_ih'], params['b_hh']
    w_out, b_out = params['w_out'], params['b_out']

    # slate-wise attention (nn.MultiheadAttention, batch_first=True)
    feats = jnp.concatenate(
        [item_embs,
         jnp.broadcast_to(user_embs[:, :, None, :], item_embs.shape)], axis=-1)
    feats = feats.reshape(B * S, K, D)
    keep = slates_mask.reshape(B * S, K)
    feats = jnp.concatenate([jnp.zeros((B * S, 1, D)), feats], axis=1)
    keep = jnp.concatenate([jnp.ones((B * S, 1), bool), keep], axis=1)
    q = feats @ w_qkv[:D].T + b_qkv[:D]
    k = feats @ w_qkv[D:2 * D].T + b_qkv[D:2 * D]
    v = feats @ w_qkv[2 * D:].T + b_qkv[2 * D:]
    heads = []
    for hd in range(nheads):
        sl = slice(hd * Dh, (hd + 1) * Dh)
        sc = jnp.einsum('nqd,nkd->nqk', q[..., sl], k[..., sl]) / (Dh ** 0.5)
        sc = jnp.where(keep[:, None, :], sc, -1e30)
        p = jax.nn.softmax(sc, axis=-1)
        heads.append(jnp.einsum('nqk,nkd->nqd', p, v[..., sl]))
    att = jnp.concatenate(heads, axis=-1) @ w_o.T + b_o
    att = att[:, 1:, :].reshape(B, S, K, D)

    # session-wise GRU over item_embs.flatten(1, 2), h0 = 0
    x = item_embs.reshape(B, S * K, E)
    h = jnp.zeros((B, E))
    hs = []
    for t in range(S * K):
        gi = x[:, t] @ w_ih.T + b_ih
        gh = h @ w_hh.T + b_hh
        r = jax.nn.sigmoid(gi[:, :E] + gh[:, :E])
        z = jax.nn.sigmoid(gi[:, E:2 * E] + gh[:, E:2 * E])
        n = jnp.tanh(gi[:, 2 * E:] + r * gh[:, 2 * E:])
        h = (1.0 - z) * n + z * h
        hs.append(h)
    gru = jnp.stack(hs, axis=1).reshape(B, S, K, E)

    feats_out = jnp.concatenate([att, gru], axis=-1)            # [B, S, K, 3E]
    return jnp.einsum('bske,e->bsk', feats_out, w_out[0]) + b_out[0]


def init_params(key, E, output_dim=1):
    D = 2 * E
    ks = jax.random.split(key, 10)
    u = lambda k, shp, sc: jax.random.uniform(k, shp, jnp.float32, -sc, sc)
    s_d, s_e = 1.0 / (D ** 0.5), 1.0 / (E ** 0.5)
    return {
        'w_qkv': u(ks[0], (3 * D, D), s_d),           # MHA in_proj_weight
        'b_qkv': u(ks[1], (3 * D,), s_d),             # MHA in_proj_bias
        'w_o':   u(ks[2], (D, D), s_d),               # MHA out_proj.weight
        'b_o':   u(ks[3], (D,), s_d),                 # MHA out_proj.bias
        'w_ih':  u(ks[4], (3 * E, E), s_e),           # GRU weight_ih_l0
        'w_hh':  u(ks[5], (3 * E, E), s_e),           # GRU weight_hh_l0
        'b_ih':  u(ks[6], (3 * E,), s_e),             # GRU bias_ih_l0
        'b_hh':  u(ks[7], (3 * E,), s_e),             # GRU bias_hh_l0
        'w_out': u(ks[8], (output_dim, 3 * E), s_e),  # out_layer weight
        'b_out': u(ks[9], (output_dim,), s_e),        # out_layer bias
    }


if __name__ == "__main__":
    B, S, K, E, H = 2, 4, 8, 16, 2   # batch, session_len, slate_size, emb, heads

    key = jax.random.PRNGKey(0)
    k1, k2, k3, k4 = jax.random.split(key, 4)
    item_embs = jax.random.normal(k1, (B, S, K, E), jnp.float32)
    user_embs = jax.random.normal(k2, (B, S, E), jnp.float32)
    slates_mask = jax.random.uniform(k3, (B, S, K)) > 0.3   # True = real item
    params = init_params(k4, E)

    forward = jax.jit(functools.partial(dummy_transformer_gru_forward, nheads=H))
    out = forward(item_embs, user_embs, slates_mask, params)
    out = jax.block_until_ready(out)

    ref = reference_forward(item_embs, user_embs, slates_mask, params, nheads=H)
    assert out.shape == (B, S, K), out.shape
    max_err = float(jnp.max(jnp.abs(out - ref)))
    assert jnp.allclose(out, ref, atol=2e-3, rtol=2e-3), max_err

    print("KERNEL_OK")
</pallas_src>

<mosaic_0001>
module attributes {stable_mosaic.version = 11 : i64} {
  func.func @_slate_attention_kernel(%arg0: i32, %arg1: memref<8x8x16xf32, #tpu.memory_space<vmem>>, %arg2: memref<8x16xf32, #tpu.memory_space<vmem>>, %arg3: memref<8x8xf32, #tpu.memory_space<vmem>>, %arg4: memref<96x16xf32, #tpu.memory_space<vmem>>, %arg5: memref<96x16xf32, #tpu.memory_space<vmem>>, %arg6: memref<1x96xf32, #tpu.memory_space<vmem>>, %arg7: memref<1x32xf32, #tpu.memory_space<vmem>>, %arg8: memref<8x8xf32, #tpu.memory_space<vmem>>) attributes {dimension_semantics = [#tpu.dimension_semantics<parallel>], iteration_bounds = array<i64: 1>, scalar_prefetch = 0 : i64, scratch_operands = 0 : i64, tpu.core_type = #tpu.core_type<tc>, window_params = [{transform_indices = @transform_0, window_bounds = array<i64: 8, 8, 16>}, {transform_indices = @transform_1, window_bounds = array<i64: 8, 16>}, {transform_indices = @transform_2, window_bounds = array<i64: 8, 8>}, {pipeline_mode = #tpu.pipeline_mode<synchronous>, transform_indices = @transform_3, window_bounds = array<i64: 96, 16>}, {pipeline_mode = #tpu.pipeline_mode<synchronous>, transform_indices = @transform_4, window_bounds = array<i64: 96, 16>}, {pipeline_mode = #tpu.pipeline_mode<synchronous>, transform_indices = @transform_5, window_bounds = array<i64: 1, 96>}, {pipeline_mode = #tpu.pipeline_mode<synchronous>, transform_indices = @transform_6, window_bounds = array<i64: 1, 32>}, {transform_indices = @transform_7, window_bounds = array<i64: 8, 8>}]} {
    %c0 = arith.constant 0 : index
    %c0_0 = arith.constant 0 : index
    %c0_1 = arith.constant 0 : index
    %0 = vector.load %arg1[%c0, %c0_0, %c0_1] : memref<8x8x16xf32, #tpu.memory_space<vmem>>, vector<8x8x16xf32>
    %c0_2 = arith.constant 0 : index
    %c0_3 = arith.constant 0 : index
    %1 = vector.load %arg2[%c0_2, %c0_3] : memref<8x16xf32, #tpu.memory_space<vmem>>, vector<8x16xf32>
    %c0_4 = arith.constant 0 : index
    %c0_5 = arith.constant 0 : index
    %2 = vector.load %arg3[%c0_4, %c0_5] : memref<8x8xf32, #tpu.memory_space<vmem>>, vector<8x8xf32>
    %cst = arith.constant 5.000000e-01 : f32
    %3 = vector.broadcast %cst : f32 to vector<8x8xf32>
    %4 = arith.cmpf ogt, %2, %3 : vector<8x8xf32>
    %c0_6 = arith.constant 0 : index
    %c0_7 = arith.constant 0 : index
    %5 = vector.load %arg4[%c0_6, %c0_7] : memref<96x16xf32, #tpu.memory_space<vmem>>, vector<96x16xf32>
    "tpu.trace_start"() <{level = 10 : i32, message = "nke,de->nkd"}> : () -> ()
    %cst_8 = arith.constant dense<0.000000e+00> : vector<8x8x96xf32>
    %6 = tpu.matmul %0, %5, %cst_8 {dimension_numbers = #tpu.dot_dimension_numbers<[2], [1], [0, 1], [0], [0, 0, 0, 1, 1, 0], [], []>} : vector<8x8x16xf32>, vector<96x16xf32>, vector<8x8x96xf32> -> vector<8x8x96xf32>
    "tpu.trace_stop"() : () -> ()
    %c0_9 = arith.constant 0 : index
    %c0_10 = arith.constant 0 : index
    %7 = vector.load %arg5[%c0_9, %c0_10] : memref<96x16xf32, #tpu.memory_space<vmem>>, vector<96x16xf32>
    "tpu.trace_start"() <{level = 10 : i32, message = "ne,de->nd"}> : () -> ()
    %cst_11 = arith.constant dense<0.000000e+00> : vector<8x96xf32>
    %8 = tpu.matmul %1, %7, %cst_11 {dimension_numbers = #tpu.dot_dimension_numbers<[1], [1], [0], [0], [0, 0, 1, 0], [], []>} : vector<8x16xf32>, vector<96x16xf32>, vector<8x96xf32> -> vector<8x96xf32>
    "tpu.trace_stop"() : () -> ()
    %9 = vector.shape_cast %8 : vector<8x96xf32> to vector<8x1x96xf32>
    %10 = vector.broadcast %9 : vector<8x1x96xf32> to vector<8x8x96xf32>
    %11 = arith.addf %6, %10 : vector<8x8x96xf32>
    %c0_12 = arith.constant 0 : index
    %c0_13 = arith.constant 0 : index
    %12 = vector.load %arg6[%c0_12, %c0_13] : memref<1x96xf32, #tpu.memory_space<vmem>>, vector<1x96xf32>
    %13 = vector.shape_cast %12 : vector<1x96xf32> to vector<1x1x96xf32>
    %14 = vector.broadcast %13 : vector<1x1x96xf32> to vector<8x8x96xf32>
    %15 = arith.addf %11, %14 : vector<8x8x96xf32>
    %16 = vector.extract_strided_slice %15 {offsets = [0, 0, 0], sizes = [8, 8, 32], strides = [1, 1, 1]} : vector<8x8x96xf32> to vector<8x8x32xf32>
    %17 = vector.extract_strided_slice %15 {offsets = [0, 0, 32], sizes = [8, 8, 32], strides = [1, 1, 1]} : vector<8x8x96xf32> to vector<8x8x32xf32>
    %18 = vector.extract_strided_slice %15 {offsets = [0, 0, 64], sizes = [8, 8, 32], strides = [1, 1, 1]} : vector<8x8x96xf32> to vector<8x8x32xf32>
    %c0_14 = arith.constant 0 : index
    %c0_15 = arith.constant 0 : index
    %19 = vector.load %arg6[%c0_14, %c0_15] : memref<1x96xf32, #tpu.memory_space<vmem>>, vector<1x96xf32>
    %c0_16 = arith.constant 0 : index
    %c0_17 = arith.constant 0 : index
    %20 = vector.load %arg7[%c0_16, %c0_17] : memref<1x32xf32, #tpu.memory_space<vmem>>, vector<1x32xf32>
    %cst_18 = arith.constant 0.000000e+00 : f32
    %21 = vector.broadcast %cst_18 : f32 to vector<8x8xf32>
    %22 = vector.extract_strided_slice %16 {offsets = [0, 0, 0], sizes = [8, 8, 16], strides = [1, 1, 1]} : vector<8x8x32xf32> to vector<8x8x16xf32>
    %23 = vector.extract_strided_slice %17 {offsets = [0, 0, 0], sizes = [8, 8, 16], strides = [1, 1, 1]} : vector<8x8x32xf32> to vector<8x8x16xf32>
    %24 = vector.extract_strided_slice %18 {offsets = [0, 0, 0], sizes = [8, 8, 16], strides = [1, 1, 1]} : vector<8x8x32xf32> to vector<8x8x16xf32>
    %25 = vector.extract_strided_slice %19 {offsets = [0, 32], sizes = [1, 16], strides = [1, 1]} : vector<1x96xf32> to vector<1x16xf32>
    %26 = vector.extract_strided_slice %19 {offsets = [0, 64], sizes = [1, 16], strides = [1, 1]} : vector<1x96xf32> to vector<1x16xf32>
    %27 = vector.extract_strided_slice %20 {offsets = [0, 0], sizes = [1, 16], strides = [1, 1]} : vector<1x32xf32> to vector<1x16xf32>
    "tpu.trace_start"() <{level = 10 : i32, message = "nqd,nkd->nqk"}> : () -> ()
    %cst_19 = arith.constant dense<0.000000e+00> : vector<8x8x8xf32>
    %28 = tpu.matmul %22, %23, %cst_19 {dimension_numbers = #tpu.dot_dimension_numbers<[2], [2], [1], [1], [0, 0, 0, 1, 1, 1], [0], [0]>} : vector<8x8x16xf32>, vector<8x8x16xf32>, vector<8x8x8xf32> -> vector<8x8x8xf32>
    "tpu.trace_stop"() : () -> ()
    %cst_20 = arith.constant 2.500000e-01 : f32
    %29 = vector.broadcast %cst_20 : f32 to vector<8x8x8xf32>
    %30 = arith.mulf %28, %29 : vector<8x8x8xf32>
    %31 = vector.shape_cast %4 : vector<8x8xi1> to vector<8x1x8xi1>
    %cst_21 = arith.constant -1.000000e+30 : f32
    %32 = vector.shape_cast %31 : vector<8x1x8xi1> to vector<8x1x8xi1>
    %33 = vector.broadcast %32 : vector<8x1x8xi1> to vector<8x8x8xi1>
    %34 = vector.broadcast %cst_21 : f32 to vector<8x8x8xf32>
    %35 = arith.select %33, %30, %34 : vector<8x8x8xi1>, vector<8x8x8xf32>
    %36 = vector.shape_cast %25 : vector<1x16xf32> to vector<1x1x16xf32>
    %37 = vector.broadcast %36 : vector<1x1x16xf32> to vector<8x8x16xf32>
    %38 = arith.mulf %22, %37 : vector<8x8x16xf32>
    %cst_22 = arith.constant dense<0.000000e+00> : vector<8x8xf32>
    %39 = vector.multi_reduction <add>, %38, %cst_22 [2] : vector<8x8x16xf32> to vector<8x8xf32>
    %cst_23 = arith.constant 2.500000e-01 : f32
    %40 = vector.broadcast %cst_23 : f32 to vector<8x8xf32>
    %41 = arith.mulf %39, %40 : vector<8x8xf32>
    %cst_24 = arith.constant dense<0xFF800000> : vector<8x8xf32>
    %42 = vector.multi_reduction <maximumf>, %35, %cst_24 [2] : vector<8x8x8xf32> to vector<8x8xf32>
    %43 = arith.maximumf %42, %41 : vector<8x8xf32>
    %44 = vector.shape_cast %43 : vector<8x8xf32> to vector<8x8x1xf32>
    %45 = vector.broadcast %44 : vector<8x8x1xf32> to vector<8x8x8xf32>
    %46 = arith.subf %35, %45 : vector<8x8x8xf32>
    %47 = math.exp %46 : vector<8x8x8xf32>
    %48 = arith.subf %41, %43 : vector<8x8xf32>
    %49 = math.exp %48 : vector<8x8xf32>
    %cst_25 = arith.constant dense<0.000000e+00> : vector<8x8xf32>
    %50 = vector.multi_reduction <add>, %47, %cst_25 [2] : vector<8x8x8xf32> to vector<8x8xf32>
    %51 = arith.addf %50, %49 : vector<8x8xf32>
    %52 = vector.shape_cast %27 : vector<1x16xf32> to vector<1x1x16xf32>
    %53 = vector.broadcast %52 : vector<1x1x16xf32> to vector<8x8x16xf32>
    %54 = arith.mulf %24, %53 : vector<8x8x16xf32>
    %cst_26 = arith.constant dense<0.000000e+00> : vector<8x8xf32>
    %55 = vector.multi_reduction <add>, %54, %cst_26 [2] : vector<8x8x16xf32> to vector<8x8xf32>
    %56 = arith.mulf %26, %27 : vector<1x16xf32>
    %cst_27 = arith.constant dense<0.000000e+00> : vector<1xf32>
    %57 = vector.multi_reduction <add>, %56, %cst_27 [1] : vector<1x16xf32> to vector<1xf32>
    %58 = vector.shape_cast %57 : vector<1xf32> to vector<1x1xf32>
    %59 = vector.shape_cast %55 : vector<8x8xf32> to vector<8x1x8xf32>
    %60 = vector.broadcast %59 : vector<8x1x8xf32> to vector<8x8x8xf32>
    %61 = arith.mulf %47, %60 : vector<8x8x8xf32>
    %cst_28 = arith.constant dense<0.000000e+00> : vector<8x8xf32>
    %62 = vector.multi_reduction <add>, %61, %cst_28 [2] : vector<8x8x8xf32> to vector<8x8xf32>
    %63 = vector.broadcast %58 : vector<1x1xf32> to vector<8x8xf32>
    %64 = arith.mulf %49, %63 : vector<8x8xf32>
    %65 = arith.addf %62, %64 : vector<8x8xf32>
    %66 = tpu.reciprocal %51 {approx = true} : vector<8x8xf32> -> vector<8x8xf32>
    %67 = arith.mulf %65, %66 : vector<8x8xf32>
    %68 = arith.addf %21, %67 : vector<8x8xf32>
    %69 = vector.extract_strided_slice %16 {offsets = [0, 0, 16], sizes = [8, 8, 16], strides = [1, 1, 1]} : vector<8x8x32xf32> to vector<8x8x16xf32>
    %70 = vector.extract_strided_slice %17 {offsets = [0, 0, 16], sizes = [8, 8, 16], strides = [1, 1, 1]} : vector<8x8x32xf32> to vector<8x8x16xf32>
    %71 = vector.extract_strided_slice %18 {offsets = [0, 0, 16], sizes = [8, 8, 16], strides = [1, 1, 1]} : vector<8x8x32xf32> to vector<8x8x16xf32>
    %72 = vector.extract_strided_slice %19 {offsets = [0, 48], sizes = [1, 16], strides = [1, 1]} : vector<1x96xf32> to vector<1x16xf32>
    %73 = vector.extract_strided_slice %19 {offsets = [0, 80], sizes = [1, 16], strides = [1, 1]} : vector<1x96xf32> to vector<1x16xf32>
    %74 = vector.extract_strided_slice %20 {offsets = [0, 16], sizes = [1, 16], strides = [1, 1]} : vector<1x32xf32> to vector<1x16xf32>
    "tpu.trace_start"() <{level = 10 : i32, message = "nqd,nkd->nqk"}> : () -> ()
    %cst_29 = arith.constant dense<0.000000e+00> : vector<8x8x8xf32>
    %75 = tpu.matmul %69, %70, %cst_29 {dimension_numbers = #tpu.dot_dimension_numbers<[2], [2], [1], [1], [0, 0, 0, 1, 1, 1], [0], [0]>} : vector<8x8x16xf32>, vector<8x8x16xf32>, vector<8x8x8xf32> -> vector<8x8x8xf32>
    "tpu.trace_stop"() : () -> ()
    %cst_30 = arith.constant 2.500000e-01 : f32
    %76 = vector.broadcast %cst_30 : f32 to vector<8x8x8xf32>
    %77 = arith.mulf %75, %76 : vector<8x8x8xf32>
    %78 = vector.shape_cast %4 : vector<8x8xi1> to vector<8x1x8xi1>
    %cst_31 = arith.constant -1.000000e+30 : f32
    %79 = vector.shape_cast %78 : vector<8x1x8xi1> to vector<8x1x8xi1>
    %80 = vector.broadcast %79 : vector<8x1x8xi1> to vector<8x8x8xi1>
    %81 = vector.broadcast %cst_31 : f32 to vector<8x8x8xf32>
    %82 = arith.select %80, %77, %81 : vector<8x8x8xi1>, vector<8x8x8xf32>
    %83 = vector.shape_cast %72 : vector<1x16xf32> to vector<1x1x16xf32>
    %84 = vector.broadcast %83 : vector<1x1x16xf32> to vector<8x8x16xf32>
    %85 = arith.mulf %69, %84 : vector<8x8x16xf32>
    %cst_32 = arith.constant dense<0.000000e+00> : vector<8x8xf32>
    %86 = vector.multi_reduction <add>, %85, %cst_32 [2] : vector<8x8x16xf32> to vector<8x8xf32>
    %cst_33 = arith.constant 2.500000e-01 : f32
    %87 = vector.broadcast %cst_33 : f32 to vector<8x8xf32>
    %88 = arith.mulf %86, %87 : vector<8x8xf32>
    %cst_34 = arith.constant dense<0xFF800000> : vector<8x8xf32>
    %89 = vector.multi_reduction <maximumf>, %82, %cst_34 [2] : vector<8x8x8xf32> to vector<8x8xf32>
    %90 = arith.maximumf %89, %88 : vector<8x8xf32>
    %91 = vector.shape_cast %90 : vector<8x8xf32> to vector<8x8x1xf32>
    %92 = vector.broadcast %91 : vector<8x8x1xf32> to vector<8x8x8xf32>
    %93 = arith.subf %82, %92 : vector<8x8x8xf32>
    %94 = math.exp %93 : vector<8x8x8xf32>
    %95 = arith.subf %88, %90 : vector<8x8xf32>
    %96 = math.exp %95 : vector<8x8xf32>
    %cst_35 = arith.constant dense<0.000000e+00> : vector<8x8xf32>
    %97 = vector.multi_reduction <add>, %94, %cst_35 [2] : vector<8x8x8xf32> to vector<8x8xf32>
    %98 = arith.addf %97, %96 : vector<8x8xf32>
    %99 = vector.shape_cast %74 : vector<1x16xf32> to vector<1x1x16xf32>
    %100 = vector.broadcast %99 : vector<1x1x16xf32> to vector<8x8x16xf32>
    %101 = arith.mulf %71, %100 : vector<8x8x16xf32>
    %cst_36 = arith.constant dense<0.000000e+00> : vector<8x8xf32>
    %102 = vector.multi_reduction <add>, %101, %cst_36 [2] : vector<8x8x16xf32> to vector<8x8xf32>
    %103 = arith.mulf %73, %74 : vector<1x16xf32>
    %cst_37 = arith.constant dense<0.000000e+00> : vector<1xf32>
    %104 = vector.multi_reduction <add>, %103, %cst_37 [1] : vector<1x16xf32> to vector<1xf32>
    %105 = vector.shape_cast %104 : vector<1xf32> to vector<1x1xf32>
    %106 = vector.shape_cast %102 : vector<8x8xf32> to vector<8x1x8xf32>
    %107 = vector.broadcast %106 : vector<8x1x8xf32> to vector<8x8x8xf32>
    %108 = arith.mulf %94, %107 : vector<8x8x8xf32>
    %cst_38 = arith.constant dense<0.000000e+00> : vector<8x8xf32>
    %109 = vector.multi_reduction <add>, %108, %cst_38 [2] : vector<8x8x8xf32> to vector<8x8xf32>
    %110 = vector.broadcast %105 : vector<1x1xf32> to vector<8x8xf32>
    %111 = arith.mulf %96, %110 : vector<8x8xf32>
    %112 = arith.addf %109, %111 : vector<8x8xf32>
    %113 = tpu.reciprocal %98 {approx = true} : vector<8x8xf32> -> vector<8x8xf32>
    %114 = arith.mulf %112, %113 : vector<8x8xf32>
    %115 = arith.addf %68, %114 : vector<8x8xf32>
    %c0_39 = arith.constant 0 : index
    %c0_40 = arith.constant 0 : index
    %116 = vector.load %arg8[%c0_39, %c0_40] : memref<8x8xf32, #tpu.memory_space<vmem>>, vector<8x8xf32>
    tpu.vector_store %arg8[%c0_39, %c0_40], %115 {strides = array<i32>} : memref<8x8xf32, #tpu.memory_space<vmem>>, vector<8x8xf32>,
    return
  }
  func.func @transform_0(%arg0: i32) -> (i32, i32, i32) {
    %c0_i32 = arith.constant 0 : i32
    %c0_i32_0 = arith.constant 0 : i32
    %c0_i32_1 = arith.constant 0 : i32
    return %arg0, %c0_i32, %c0_i32_0 : i32, i32, i32
  }
  func.func @transform_1(%arg0: i32) -> (i32, i32) {
    %c0_i32 = arith.constant 0 : i32
    %c0_i32_0 = arith.constant 0 : i32
    return %arg0, %c0_i32 : i32, i32
  }
  func.func @transform_2(%arg0: i32) -> (i32, i32) {
    %c0_i32 = arith.constant 0 : i32
    %c0_i32_0 = arith.constant 0 : i32
    return %arg0, %c0_i32 : i32, i32
  }
  func.func @transform_3(%arg0: i32) -> (i32, i32) {
    %c0_i32 = arith.constant 0 : i32
    %c0_i32_0 = arith.constant 0 : i32
    %c0_i32_1 = arith.constant 0 : i32
    return %c0_i32, %c0_i32_0 : i32, i32
  }
  func.func @transform_4(%arg0: i32) -> (i32, i32) {
    %c0_i32 = arith.constant 0 : i32
    %c0_i32_0 = arith.constant 0 : i32
    %c0_i32_1 = arith.constant 0 : i32
    return %c0_i32, %c0_i32_0 : i32, i32
  }
  func.func @transform_5(%arg0: i32) -> (i32, i32) {
    %c0_i32 = arith.constant 0 : i32
    %c0_i32_0 = arith.constant 0 : i32
    %c0_i32_1 = arith.constant 0 : i32
    return %c0_i32, %c0_i32_0 : i32, i32
  }
  func.func @transform_6(%arg0: i32) -> (i32, i32) {
    %c0_i32 = arith.constant 0 : i32
    %c0_i32_0 = arith.constant 0 : i32
    %c0_i32_1 = arith.constant 0 : i32
    return %c0_i32, %c0_i32_0 : i32, i32
  }
  func.func @transform_7(%arg0: i32) -> (i32, i32) {
    %c0_i32 = arith.constant 0 : i32
    %c0_i32_0 = arith.constant 0 : i32
    return %arg0, %c0_i32 : i32, i32
  }
}

module attributes {stable_mosaic.version = 11 : i64} {
  func.func @_gru_kernel(%arg0: i32, %arg1: i32, %arg2: memref<16x2x16xf32, #tpu.memory_space<vmem>>, %arg3: memref<16x2xf32, #tpu.memory_space<vmem>>, %arg4: memref<48x16xf32, #tpu.memory_space<vmem>>, %arg5: memref<48x16xf32, #tpu.memory_space<vmem>>, %arg6: memref<1x48xf32, #tpu.memory_space<vmem>>, %arg7: memref<1x48xf32, #tpu.memory_space<vmem>>, %arg8: memref<1x16xf32, #tpu.memory_space<vmem>>, %arg9: memref<16x2xf32, #tpu.memory_space<vmem>>, %arg10: memref<2x16xf32, #tpu.memory_space<vmem>>, %arg11: memref<16x2x48xf32, #tpu.memory_space<vmem>>, %arg12: memref<16x2x16xf32, #tpu.memory_space<vmem>>) attributes {dimension_semantics = [#tpu.dimension_semantics<parallel>, #tpu.dimension_semantics<arbitrary>], iteration_bounds = array<i64: 1, 2>, scalar_prefetch = 0 : i64, scratch_operands = 3 : i64, tpu.core_type = #tpu.core_type<tc>, window_params = [{transform_indices = @transform_0, window_bounds = array<i64: 16, 2, 16>}, {transform_indices = @transform_1, window_bounds = array<i64: 16, 2>}, {pipeline_mode = #tpu.pipeline_mode<synchronous>, transform_indices = @transform_2, window_bounds = array<i64: 48, 16>}, {pipeline_mode = #tpu.pipeline_mode<synchronous>, transform_indices = @transform_3, window_bounds = array<i64: 48, 16>}, {pipeline_mode = #tpu.pipeline_mode<synchronous>, transform_indices = @transform_4, window_bounds = array<i64: 1, 48>}, {pipeline_mode = #tpu.pipeline_mode<synchronous>, transform_indices = @transform_5, window_bounds = array<i64: 1, 48>}, {pipeline_mode = #tpu.pipeline_mode<synchronous>, transform_indices = @transform_6, window_bounds = array<i64: 1, 16>}, {transform_indices = @transform_7, window_bounds = array<i64: 16, 2>}]} {
    %c0_i32 = arith.constant 0 : i32
    %0 = arith.cmpi eq, %arg1, %c0_i32 : i32
    %1 = arith.extui %0 : i1 to i32
    %c0_i32_0 = arith.constant 0 : i32
    %2 = arith.cmpi ne, %1, %c0_i32_0 : i32
    scf.if %2 {
      %cst_157 = arith.constant 0.000000e+00 : f32
      %600 = vector.broadcast %cst_157 : f32 to vector<2x16xf32>
      %c0_158 = arith.constant 0 : index
      %c0_159 = arith.constant 0 : index
      %601 = vector.load %arg10[%c0_158, %c0_159] : memref<2x16xf32, #tpu.memory_space<vmem>>, vector<2x16xf32>
      tpu.vector_store %arg10[%c0_158, %c0_159], %600 {strides = array<i32>} : memref<2x16xf32, #tpu.memory_space<vmem>>, vector<2x16xf32>,
    } else {
    }
    %c0 = arith.constant 0 : index
    %c0_1 = arith.constant 0 : index
    %c0_2 = arith.constant 0 : index
    %3 = vector.load %arg2[%c0, %c0_1, %c0_2] : memref<16x2x16xf32, #tpu.memory_space<vmem>>, vector<16x2x16xf32>
    %c0_3 = arith.constant 0 : index
    %c0_4 = arith.constant 0 : index
    %4 = vector.load %arg4[%c0_3, %c0_4] : memref<48x16xf32, #tpu.memory_space<vmem>>, vector<48x16xf32>
    "tpu.trace_start"() <{level = 10 : i32, message = "tbe,oe->tbo"}> : () -> ()
    %cst = arith.constant dense<0.000000e+00> : vector<16x2x48xf32>
    %5 = tpu.matmul %3, %4, %cst {dimension_numbers = #tpu.dot_dimension_numbers<[2], [1], [0, 1], [0], [0, 0, 0, 1, 1, 0], [], []>} : vector<16x2x16xf32>, vector<48x16xf32>, vector<16x2x48xf32> -> vector<16x2x48xf32>
    "tpu.trace_stop"() : () -> ()
    %c0_5 = arith.constant 0 : index
    %c0_6 = arith.constant 0 : index
    %6 = vector.load %arg6[%c0_5, %c0_6] : memref<1x48xf32, #tpu.memory_space<vmem>>, vector<1x48xf32>
    %7 = vector.shape_cast %6 : vector<1x48xf32> to vector<1x1x48xf32>
    %8 = vector.broadcast %7 : vector<1x1x48xf32> to vector<16x2x48xf32>
    %9 = arith.addf %5, %8 : vector<16x2x48xf32>
    %c0_7 = arith.constant 0 : index
    %c0_8 = arith.constant 0 : index
    %c0_9 = arith.constant 0 : index
    %10 = vector.load %arg11[%c0_7, %c0_8, %c0_9] : memref<16x2x48xf32, #tpu.memory_space<vmem>>, vector<16x2x48xf32>
    tpu.vector_store %arg11[%c0_7, %c0_8, %c0_9], %9 {strides = array<i32>} : memref<16x2x48xf32, #tpu.memory_space<vmem>>, vector<16x2x48xf32>,
    %c0_10 = arith.constant 0 : index
    %c0_11 = arith.constant 0 : index
    %11 = vector.load %arg5[%c0_10, %c0_11] : memref<48x16xf32, #tpu.memory_space<vmem>>, vector<48x16xf32>
    %c0_12 = arith.constant 0 : index
    %c0_13 = arith.constant 0 : index
    %12 = vector.load %arg7[%c0_12, %c0_13] : memref<1x48xf32, #tpu.memory_space<vmem>>, vector<1x48xf32>
    %c0_14 = arith.constant 0 : index
    %c0_15 = arith.constant 0 : index
    %13 = vector.load %arg10[%c0_14, %c0_15] : memref<2x16xf32, #tpu.memory_space<vmem>>, vector<2x16xf32>
    %c0_i32_16 = arith.constant 0 : i32
    %14 = arith.index_cast %c0_i32_16 : i32 to index
    %c0_17 = arith.constant 0 : index
    %c0_18 = arith.constant 0 : index
    %15 = vector.load %arg11[%14, %c0_17, %c0_18] : memref<16x2x48xf32, #tpu.memory_space<vmem>>, vector<1x2x48xf32>
    %16 = vector.shape_cast %15 : vector<1x2x48xf32> to vector<2x48xf32>
    "tpu.trace_start"() <{level = 10 : i32, message = "be,oe->bo"}> : () -> ()
    %cst_19 = arith.constant dense<0.000000e+00> : vector<2x48xf32>
    %17 = tpu.matmul %13, %11, %cst_19 {dimension_numbers = #tpu.dot_dimension_numbers<[1], [1], [0], [0], [0, 0, 1, 0], [], []>} : vector<2x16xf32>, vector<48x16xf32>, vector<2x48xf32> -> vector<2x48xf32>
    "tpu.trace_stop"() : () -> ()
    %18 = vector.broadcast %12 : vector<1x48xf32> to vector<2x48xf32>
    %19 = arith.addf %17, %18 : vector<2x48xf32>
    %20 = vector.extract_strided_slice %16 {offsets = [0, 0], sizes = [2, 16], strides = [1, 1]} : vector<2x48xf32> to vector<2x16xf32>
    %21 = vector.extract_strided_slice %19 {offsets = [0, 0], sizes = [2, 16], strides = [1, 1]} : vector<2x48xf32> to vector<2x16xf32>
    %22 = arith.addf %20, %21 : vector<2x16xf32>
    %23 = arith.negf %22 : vector<2x16xf32>
    %24 = math.exp %23 : vector<2x16xf32>
    %cst_20 = arith.constant 1.000000e+00 : f32
    %25 = vector.broadcast %cst_20 : f32 to vector<2x16xf32>
    %26 = arith.addf %25, %24 : vector<2x16xf32>
    %27 = arith.divf %25, %26 : vector<2x16xf32>
    %28 = vector.extract_strided_slice %16 {offsets = [0, 16], sizes = [2, 16], strides = [1, 1]} : vector<2x48xf32> to vector<2x16xf32>
    %29 = vector.extract_strided_slice %19 {offsets = [0, 16], sizes = [2, 16], strides = [1, 1]} : vector<2x48xf32> to vector<2x16xf32>
    %30 = arith.addf %28, %29 : vector<2x16xf32>
    %31 = arith.negf %30 : vector<2x16xf32>
    %32 = math.exp %31 : vector<2x16xf32>
    %cst_21 = arith.constant 1.000000e+00 : f32
    %33 = vector.broadcast %cst_21 : f32 to vector<2x16xf32>
    %34 = arith.addf %33, %32 : vector<2x16xf32>
    %35 = arith.divf %33, %34 : vector<2x16xf32>
    %36 = vector.extract_strided_slice %16 {offsets = [0, 32], sizes = [2, 16], strides = [1, 1]} : vector<2x48xf32> to vector<2x16xf32>
    %37 = vector.extract_strided_slice %19 {offsets = [0, 32], sizes = [2, 16], strides = [1, 1]} : vector<2x48xf32> to vector<2x16xf32>
    %38 = arith.mulf %27, %37 : vector<2x16xf32>
    %39 = arith.addf %36, %38 : vector<2x16xf32>
    %40 = math.tanh %39 : vector<2x16xf32>
    %cst_22 = arith.constant 1.000000e+00 : f32
    %41 = vector.broadcast %cst_22 : f32 to vector<2x16xf32>
    %42 = arith.subf %41, %35 : vector<2x16xf32>
    %43 = arith.mulf %42, %40 : vector<2x16xf32>
    %44 = arith.mulf %35, %13 : vector<2x16xf32>
    %45 = arith.addf %43, %44 : vector<2x16xf32>
    %46 = arith.index_cast %c0_i32_16 : i32 to index
    %c0_23 = arith.constant 0 : index
    %c0_24 = arith.constant 0 : index
    %47 = vector.load %arg12[%46, %c0_23, %c0_24] : memref<16x2x16xf32, #tpu.memory_space<vmem>>, vector<1x2x16xf32>
    %48 = vector.shape_cast %47 : vector<1x2x16xf32> to vector<2x16xf32>
    %49 = vector.shape_cast %45 : vector<2x16xf32> to vector<1x2x16xf32>
    tpu.vector_store %arg12[%46, %c0_23, %c0_24], %49 {strides = array<i32>} : memref<16x2x16xf32, #tpu.memory_space<vmem>>, vector<1x2x16xf32>,
    %c1_i32 = arith.constant 1 : i32
    %50 = arith.index_cast %c1_i32 : i32 to index
    %c0_25 = arith.constant 0 : index
    %c0_26 = arith.constant 0 : index
    %51 = vector.load %arg11[%50, %c0_25, %c0_26] : memref<16x2x48xf32, #tpu.memory_space<vmem>>, vector<1x2x48xf32>
    %52 = vector.shape_cast %51 : vector<1x2x48xf32> to vector<2x48xf32>
    "tpu.trace_start"() <{level = 10 : i32, message = "be,oe->bo"}> : () -> ()
    %cst_27 = arith.constant dense<0.000000e+00> : vector<2x48xf32>
    %53 = tpu.matmul %45, %11, %cst_27 {dimension_numbers = #tpu.dot_dimension_numbers<[1], [1], [0], [0], [0, 0, 1, 0], [], []>} : vector<2x16xf32>, vector<48x16xf32>, vector<2x48xf32> -> vector<2x48xf32>
    "tpu.trace_stop"() : () -> ()
    %54 = vector.broadcast %12 : vector<1x48xf32> to vector<2x48xf32>
    %55 = arith.addf %53, %54 : vector<2x48xf32>
    %56 = vector.extract_strided_slice %52 {offsets = [0, 0], sizes = [2, 16], strides = [1, 1]} : vector<2x48xf32> to vector<2x16xf32>
    %57 = vector.extract_strided_slice %55 {offsets = [0, 0], sizes = [2, 16], strides = [1, 1]} : vector<2x48xf32> to vector<2x16xf32>
    %58 = arith.addf %56, %57 : vector<2x16xf32>
    %59 = arith.negf %58 : vector<2x16xf32>
    %60 = math.exp %59 : vector<2x16xf32>
    %cst_28 = arith.constant 1.000000e+00 : f32
    %61 = vector.broadcast %cst_28 : f32 to vector<2x16xf32>
    %62 = arith.addf %61, %60 : vector<2x16xf32>
    %63 = arith.divf %61, %62 : vector<2x16xf32>
    %64 = vector.extract_strided_slice %52 {offsets = [0, 16], sizes = [2, 16], strides = [1, 1]} : vector<2x48xf32> to vector<2x16xf32>
    %65 = vector.extract_strided_slice %55 {offsets = [0, 16], sizes = [2, 16], strides = [1, 1]} : vector<2x48xf32> to vector<2x16xf32>
    %66 = arith.addf %64, %65 : vector<2x16xf32>
    %67 = arith.negf %66 : vector<2x16xf32>
    %68 = math.exp %67 : vector<2x16xf32>
    %cst_29 = arith.constant 1.000000e+00 : f32
    %69 = vector.broadcast %cst_29 : f32 to vector<2x16xf32>
    %70 = arith.addf %69, %68 : vector<2x16xf32>
    %71 = arith.divf %69, %70 : vector<2x16xf32>
    %72 = vector.extract_strided_slice %52 {offsets = [0, 32], sizes = [2, 16], strides = [1, 1]} : vector<2x48xf32> to vector<2x16xf32>
    %73 = vector.extract_strided_slice %55 {offsets = [0, 32], sizes = [2, 16], strides = [1, 1]} : vector<2x48xf32> to vector<2x16xf32>
    %74 = arith.mulf %63, %73 : vector<2x16xf32>
    %75 = arith.addf %72, %74 : vector<2x16xf32>
    %76 = math.tanh %75 : vector<2x16xf32>
    %cst_30 = arith.constant 1.000000e+00 : f32
    %77 = vector.broadcast %cst_30 : f32 to vector<2x16xf32>
    %78 = arith.subf %77, %71 : vector<2x16xf32>
    %79 = arith.mulf %78, %76 : vector<2x16xf32>
    %80 = arith.mulf %71, %45 : vector<2x16xf32>
    %81 = arith.addf %79, %80 : vector<2x16xf32>
    %82 = arith.index_cast %c1_i32 : i32 to index
    %c0_31 = arith.constant 0 : index
    %c0_32 = arith.constant 0 : index
    %83 = vector.load %arg12[%82, %c0_31, %c0_32] : memref<16x2x16xf32, #tpu.memory_space<vmem>>, vector<1x2x16xf32>
    %84 = vector.shape_cast %83 : vector<1x2x16xf32> to vector<2x16xf32>
    %85 = vector.shape_cast %81 : vector<2x16xf32> to vector<1x2x16xf32>
    tpu.vector_store %arg12[%82, %c0_31, %c0_32], %85 {strides = array<i32>} : memref<16x2x16xf32, #tpu.memory_space<vmem>>, vector<1x2x16xf32>,
    %c2_i32 = arith.constant 2 : i32
    %86 = arith.index_cast %c2_i32 : i32 to index
    %c0_33 = arith.constant 0 : index
    %c0_34 = arith.constant 0 : index
    %87 = vector.load %arg11[%86, %c0_33, %c0_34] : memref<16x2x48xf32, #tpu.memory_space<vmem>>, vector<1x2x48xf32>
    %88 = vector.shape_cast %87 : vector<1x2x48xf32> to vector<2x48xf32>
    "tpu.trace_start"() <{level = 10 : i32, message = "be,oe->bo"}> : () -> ()
    %cst_35 = arith.constant dense<0.000000e+00> : vector<2x48xf32>
    %89 = tpu.matmul %81, %11, %cst_35 {dimension_numbers = #tpu.dot_dimension_numbers<[1], [1], [0], [0], [0, 0, 1, 0], [], []>} : vector<2x16xf32>, vector<48x16xf32>, vector<2x48xf32> -> vector<2x48xf32>
    "tpu.trace_stop"() : () -> ()
    %90 = vector.broadcast %12 : vector<1x48xf32> to vector<2x48xf32>
    %91 = arith.addf %89, %90 : vector<2x48xf32>
    %92 = vector.extract_strided_slice %88 {offsets = [0, 0], sizes = [2, 16], strides = [1, 1]} : vector<2x48xf32> to vector<2x16xf32>
    %93 = vector.extract_strided_slice %91 {offsets = [0, 0], sizes = [2, 16], strides = [1, 1]} : vector<2x48xf32> to vector<2x16xf32>
    %94 = arith.addf %92, %93 : vector<2x16xf32>
    %95 = arith.negf %94 : vector<2x16xf32>
    %96 = math.exp %95 : vector<2x16xf32>
    %cst_36 = arith.constant 1.000000e+00 : f32
    %97 = vector.broadcast %cst_36 : f32 to vector<2x16xf32>
    %98 = arith.addf %97, %96 : vector<2x16xf32>
    %99 = arith.divf %97, %98 : vector<2x16xf32>
    %100 = vector.extract_strided_slice %88 {offsets = [0, 16], sizes = [2, 16], strides = [1, 1]} : vector<2x48xf32> to vector<2x16xf32>
    %101 = vector.extract_strided_slice %91 {offsets = [0, 16], sizes = [2, 16], strides = [1, 1]} : vector<2x48xf32> to vector<2x16xf32>
    %102 = arith.addf %100, %101 : vector<2x16xf32>
    %103 = arith.negf %102 : vector<2x16xf32>
    %104 = math.exp %103 : vector<2x16xf32>
    %cst_37 = arith.constant 1.000000e+00 : f32
    %105 = vector.broadcast %cst_37 : f32 to vector<2x16xf32>
    %106 = arith.addf %105, %104 : vector<2x16xf32>
    %107 = arith.divf %105, %106 : vector<2x16xf32>
    %108 = vector.extract_strided_slice %88 {offsets = [0, 32], sizes = [2, 16], strides = [1, 1]} : vector<2x48xf32> to vector<2x16xf32>
    %109 = vector.extract_strided_slice %91 {offsets = [0, 32], sizes = [2, 16], strides = [1, 1]} : vector<2x48xf32> to vector<2x16xf32>
    %110 = arith.mulf %99, %109 : vector<2x16xf32>
    %111 = arith.addf %108, %110 : vector<2x16xf32>
    %112 = math.tanh %111 : vector<2x16xf32>
    %cst_38 = arith.constant 1.000000e+00 : f32
    %113 = vector.broadcast %cst_38 : f32 to vector<2x16xf32>
    %114 = arith.subf %113, %107 : vector<2x16xf32>
    %115 = arith.mulf %114, %112 : vector<2x16xf32>
    %116 = arith.mulf %107, %81 : vector<2x16xf32>
    %117 = arith.addf %115, %116 : vector<2x16xf32>
    %118 = arith.index_cast %c2_i32 : i32 to index
    %c0_39 = arith.constant 0 : index
    %c0_40 = arith.constant 0 : index
    %119 = vector.load %arg12[%118, %c0_39, %c0_40] : memref<16x2x16xf32, #tpu.memory_space<vmem>>, vector<1x2x16xf32>
    %120 = vector.shape_cast %119 : vector<1x2x16xf32> to vector<2x16xf32>
    %121 = vector.shape_cast %117 : vector<2x16xf32> to vector<1x2x16xf32>
    tpu.vector_store %arg12[%118, %c0_39, %c0_40], %121 {strides = array<i32>} : memref<16x2x16xf32, #tpu.memory_space<vmem>>, vector<1x2x16xf32>,
    %c3_i32 = arith.constant 3 : i32
    %122 = arith.index_cast %c3_i32 : i32 to index
    %c0_41 = arith.constant 0 : index
    %c0_42 = arith.constant 0 : index
    %123 = vector.load %arg11[%122, %c0_41, %c0_42] : memref<16x2x48xf32, #tpu.memory_space<vmem>>, vector<1x2x48xf32>
    %124 = vector.shape_cast %123 : vector<1x2x48xf32> to vector<2x48xf32>
    "tpu.trace_start"() <{level = 10 : i32, message = "be,oe->bo"}> : () -> ()
    %cst_43 = arith.constant dense<0.000000e+00> : vector<2x48xf32>
    %125 = tpu.matmul %117, %11, %cst_43 {dimension_numbers = #tpu.dot_dimension_numbers<[1], [1], [0], [0], [0, 0, 1, 0], [], []>} : vector<2x16xf32>, vector<48x16xf32>, vector<2x48xf32> -> vector<2x48xf32>
    "tpu.trace_stop"() : () -> ()
    %126 = vector.broadcast %12 : vector<1x48xf32> to vector<2x48xf32>
    %127 = arith.addf %125, %126 : vector<2x48xf32>
    %128 = vector.extract_strided_slice %124 {offsets = [0, 0], sizes = [2, 16], strides = [1, 1]} : vector<2x48xf32> to vector<2x16xf32>
    %129 = vector.extract_strided_slice %127 {offsets = [0, 0], sizes = [2, 16], strides = [1, 1]} : vector<2x48xf32> to vector<2x16xf32>
    %130 = arith.addf %128, %129 : vector<2x16xf32>
    %131 = arith.negf %130 : vector<2x16xf32>
    %132 = math.exp %131 : vector<2x16xf32>
    %cst_44 = arith.constant 1.000000e+00 : f32
    %133 = vector.broadcast %cst_44 : f32 to vector<2x16xf32>
    %134 = arith.addf %133, %132 : vector<2x16xf32>
    %135 = arith.divf %133, %134 : vector<2x16xf32>
    %136 = vector.extract_strided_slice %124 {offsets = [0, 16], sizes = [2, 16], strides = [1, 1]} : vector<2x48xf32> to vector<2x16xf32>
    %137 = vector.extract_strided_slice %127 {offsets = [0, 16], sizes = [2, 16], strides = [1, 1]} : vector<2x48xf32> to vector<2x16xf32>
    %138 = arith.addf %136, %137 : vector<2x16xf32>
    %139 = arith.negf %138 : vector<2x16xf32>
    %140 = math.exp %139 : vector<2x16xf32>
    %cst_45 = arith.constant 1.000000e+00 : f32
    %141 = vector.broadcast %cst_45 : f32 to vector<2x16xf32>
    %142 = arith.addf %141, %140 : vector<2x16xf32>
    %143 = arith.divf %141, %142 : vector<2x16xf32>
    %144 = vector.extract_strided_slice %124 {offsets = [0, 32], sizes = [2, 16], strides = [1, 1]} : vector<2x48xf32> to vector<2x16xf32>
    %145 = vector.extract_strided_slice %127 {offsets = [0, 32], sizes = [2, 16], strides = [1, 1]} : vector<2x48xf32> to vector<2x16xf32>
    %146 = arith.mulf %135, %145 : vector<2x16xf32>
    %147 = arith.addf %144, %146 : vector<2x16xf32>
    %148 = math.tanh %147 : vector<2x16xf32>
    %cst_46 = arith.constant 1.000000e+00 : f32
    %149 = vector.broadcast %cst_46 : f32 to vector<2x16xf32>
    %150 = arith.subf %149, %143 : vector<2x16xf32>
    %151 = arith.mulf %150, %148 : vector<2x16xf32>
    %152 = arith.mulf %143, %117 : vector<2x16xf32>
    %153 = arith.addf %151, %152 : vector<2x16xf32>
    %154 = arith.index_cast %c3_i32 : i32 to index
    %c0_47 = arith.constant 0 : index
    %c0_48 = arith.constant 0 : index
    %155 = vector.load %arg12[%154, %c0_47, %c0_48] : memref<16x2x16xf32, #tpu.memory_space<vmem>>, vector<1x2x16xf32>
    %156 = vector.shape_cast %155 : vector<1x2x16xf32> to vector<2x16xf32>
    %157 = vector.shape_cast %153 : vector<2x16xf32> to vector<1x2x16xf32>
    tpu.vector_store %arg12[%154, %c0_47, %c0_48], %157 {strides = array<i32>} : memref<16x2x16xf32, #tpu.memory_space<vmem>>, vector<1x2x16xf32>,
    %c4_i32 = arith.constant 4 : i32
    %158 = arith.index_cast %c4_i32 : i32 to index
    %c0_49 = arith.constant 0 : index
    %c0_50 = arith.constant 0 : index
    %159 = vector.load %arg11[%158, %c0_49, %c0_50] : memref<16x2x48xf32, #tpu.memory_space<vmem>>, vector<1x2x48xf32>
    %160 = vector.shape_cast %159 : vector<1x2x48xf32> to vector<2x48xf32>
    "tpu.trace_start"() <{level = 10 : i32, message = "be,oe->bo"}> : () -> ()
    %cst_51 = arith.constant dense<0.000000e+00> : vector<2x48xf32>
    %161 = tpu.matmul %153, %11, %cst_51 {dimension_numbers = #tpu.dot_dimension_numbers<[1], [1], [0], [0], [0, 0, 1, 0], [], []>} : vector<2x16xf32>, vector<48x16xf32>, vector<2x48xf32> -> vector<2x48xf32>
    "tpu.trace_stop"() : () -> ()
    %162 = vector.broadcast %12 : vector<1x48xf32> to vector<2x48xf32>
    %163 = arith.addf %161, %162 : vector<2x48xf32>
    %164 = vector.extract_strided_slice %160 {offsets = [0, 0], sizes = [2, 16], strides = [1, 1]} : vector<2x48xf32> to vector<2x16xf32>
    %165 = vector.extract_strided_slice %163 {offsets = [0, 0], sizes = [2, 16], strides = [1, 1]} : vector<2x48xf32> to vector<2x16xf32>
    %166 = arith.addf %164, %165 : vector<2x16xf32>
    %167 = arith.negf %166 : vector<2x16xf32>
    %168 = math.exp %167 : vector<2x16xf32>
    %cst_52 = arith.constant 1.000000e+00 : f32
    %169 = vector.broadcast %cst_52 : f32 to vector<2x16xf32>
    %170 = arith.addf %169, %168 : vector<2x16xf32>
    %171 = arith.divf %169, %170 : vector<2x16xf32>
    %172 = vector.extract_strided_slice %160 {offsets = [0, 16], sizes = [2, 16], strides = [1, 1]} : vector<2x48xf32> to vector<2x16xf32>
    %173 = vector.extract_strided_slice %163 {offsets = [0, 16], sizes = [2, 16], strides = [1, 1]} : vector<2x48xf32> to vector<2x16xf32>
    %174 = arith.addf %172, %173 : vector<2x16xf32>
    %175 = arith.negf %174 : vector<2x16xf32>
    %176 = math.exp %175 : vector<2x16xf32>
    %cst_53 = arith.constant 1.000000e+00 : f32
    %177 = vector.broadcast %cst_53 : f32 to vector<2x16xf32>
    %178 = arith.addf %177, %176 : vector<2x16xf32>
    %179 = arith.divf %177, %178 : vector<2x16xf32>
    %180 = vector.extract_strided_slice %160 {offsets = [0, 32], sizes = [2, 16], strides = [1, 1]} : vector<2x48xf32> to vector<2x16xf32>
    %181 = vector.extract_strided_slice %163 {offsets = [0, 32], sizes = [2, 16], strides = [1, 1]} : vector<2x48xf32> to vector<2x16xf32>
    %182 = arith.mulf %171, %181 : vector<2x16xf32>
    %183 = arith.addf %180, %182 : vector<2x16xf32>
    %184 = math.tanh %183 : vector<2x16xf32>
    %cst_54 = arith.constant 1.000000e+00 : f32
    %185 = vector.broadcast %cst_54 : f32 to vector<2x16xf32>
    %186 = arith.subf %185, %179 : vector<2x16xf32>
    %187 = arith.mulf %186, %184 : vector<2x16xf32>
    %188 = arith.mulf %179, %153 : vector<2x16xf32>
    %189 = arith.addf %187, %188 : vector<2x16xf32>
    %190 = arith.index_cast %c4_i32 : i32 to index
    %c0_55 = arith.constant 0 : index
    %c0_56 = arith.constant 0 : index
    %191 = vector.load %arg12[%190, %c0_55, %c0_56] : memref<16x2x16xf32, #tpu.memory_space<vmem>>, vector<1x2x16xf32>
    %192 = vector.shape_cast %191 : vector<1x2x16xf32> to vector<2x16xf32>
    %193 = vector.shape_cast %189 : vector<2x16xf32> to vector<1x2x16xf32>
    tpu.vector_store %arg12[%190, %c0_55, %c0_56], %193 {strides = array<i32>} : memref<16x2x16xf32, #tpu.memory_space<vmem>>, vector<1x2x16xf32>,
    %c5_i32 = arith.constant 5 : i32
    %194 = arith.index_cast %c5_i32 : i32 to index
    %c0_57 = arith.constant 0 : index
    %c0_58 = arith.constant 0 : index
    %195 = vector.load %arg11[%194, %c0_57, %c0_58] : memref<16x2x48xf32, #tpu.memory_space<vmem>>, vector<1x2x48xf32>
    %196 = vector.shape_cast %195 : vector<1x2x48xf32> to vector<2x48xf32>
    "tpu.trace_start"() <{level = 10 : i32, message = "be,oe->bo"}> : () -> ()
    %cst_59 = arith.constant dense<0.000000e+00> : vector<2x48xf32>
    %197 = tpu.matmul %189, %11, %cst_59 {dimension_numbers = #tpu.dot_dimension_numbers<[1], [1], [0], [0], [0, 0, 1, 0], [], []>} : vector<2x16xf32>, vector<48x16xf32>, vector<2x48xf32> -> vector<2x48xf32>
    "tpu.trace_stop"() : () -> ()
    %198 = vector.broadcast %12 : vector<1x48xf32> to vector<2x48xf32>
    %199 = arith.addf %197, %198 : vector<2x48xf32>
    %200 = vector.extract_strided_slice %196 {offsets = [0, 0], sizes = [2, 16], strides = [1, 1]} : vector<2x48xf32> to vector<2x16xf32>
    %201 = vector.extract_strided_slice %199 {offsets = [0, 0], sizes = [2, 16], strides = [1, 1]} : vector<2x48xf32> to vector<2x16xf32>
    %202 = arith.addf %200, %201 : vector<2x16xf32>
    %203 = arith.negf %202 : vector<2x16xf32>
    %204 = math.exp %203 : vector<2x16xf32>
    %cst_60 = arith.constant 1.000000e+00 : f32
    %205 = vector.broadcast %cst_60 : f32 to vector<2x16xf32>
    %206 = arith.addf %205, %204 : vector<2x16xf32>
    %207 = arith.divf %205, %206 : vector<2x16xf32>
    %208 = vector.extract_strided_slice %196 {offsets = [0, 16], sizes = [2, 16], strides = [1, 1]} : vector<2x48xf32> to vector<2x16xf32>
    %209 = vector.extract_strided_slice %199 {offsets = [0, 16], sizes = [2, 16], strides = [1, 1]} : vector<2x48xf32> to vector<2x16xf32>
    %210 = arith.addf %208, %209 : vector<2x16xf32>
    %211 = arith.negf %210 : vector<2x16xf32>
    %212 = math.exp %211 : vector<2x16xf32>
    %cst_61 = arith.constant 1.000000e+00 : f32
    %213 = vector.broadcast %cst_61 : f32 to vector<2x16xf32>
    %214 = arith.addf %213, %212 : vector<2x16xf32>
    %215 = arith.divf %213, %214 : vector<2x16xf32>
    %216 = vector.extract_strided_slice %196 {offsets = [0, 32], sizes = [2, 16], strides = [1, 1]} : vector<2x48xf32> to vector<2x16xf32>
    %217 = vector.extract_strided_slice %199 {offsets = [0, 32], sizes = [2, 16], strides = [1, 1]} : vector<2x48xf32> to vector<2x16xf32>
    %218 = arith.mulf %207, %217 : vector<2x16xf32>
    %219 = arith.addf %216, %218 : vector<2x16xf32>
    %220 = math.tanh %219 : vector<2x16xf32>
    %cst_62 = arith.constant 1.000000e+00 : f32
    %221 = vector.broadcast %cst_62 : f32 to vector<2x16xf32>
    %222 = arith.subf %221, %215 : vector<2x16xf32>
    %223 = arith.mulf %222, %220 : vector<2x16xf32>
    %224 = arith.mulf %215, %189 : vector<2x16xf32>
    %225 = arith.addf %223, %224 : vector<2x16xf32>
    %226 = arith.index_cast %c5_i32 : i32 to index
    %c0_63 = arith.constant 0 : index
    %c0_64 = arith.constant 0 : index
    %227 = vector.load %arg12[%226, %c0_63, %c0_64] : memref<16x2x16xf32, #tpu.memory_space<vmem>>, vector<1x2x16xf32>
    %228 = vector.shape_cast %227 : vector<1x2x16xf32> to vector<2x16xf32>
    %229 = vector.shape_cast %225 : vector<2x16xf32> to vector<1x2x16xf32>
    tpu.vector_store %arg12[%226, %c0_63, %c0_64], %229 {strides = array<i32>} : memref<16x2x16xf32, #tpu.memory_space<vmem>>, vector<1x2x16xf32>,
    %c6_i32 = arith.constant 6 : i32
    %230 = arith.index_cast %c6_i32 : i32 to index
    %c0_65 = arith.constant 0 : index
    %c0_66 = arith.constant 0 : index
    %231 = vector.load %arg11[%230, %c0_65, %c0_66] : memref<16x2x48xf32, #tpu.memory_space<vmem>>, vector<1x2x48xf32>
    %232 = vector.shape_cast %231 : vector<1x2x48xf32> to vector<2x48xf32>
    "tpu.trace_start"() <{level = 10 : i32, message = "be,oe->bo"}> : () -> ()
    %cst_67 = arith.constant dense<0.000000e+00> : vector<2x48xf32>
    %233 = tpu.matmul %225, %11, %cst_67 {dimension_numbers = #tpu.dot_dimension_numbers<[1], [1], [0], [0], [0, 0, 1, 0], [], []>} : vector<2x16xf32>, vector<48x16xf32>, vector<2x48xf32> -> vector<2x48xf32>
    "tpu.trace_stop"() : () -> ()
    %234 = vector.broadcast %12 : vector<1x48xf32> to vector<2x48xf32>
    %235 = arith.addf %233, %234 : vector<2x48xf32>
    %236 = vector.extract_strided_slice %232 {offsets = [0, 0], sizes = [2, 16], strides = [1, 1]} : vector<2x48xf32> to vector<2x16xf32>
    %237 = vector.extract_strided_slice %235 {offsets = [0, 0], sizes = [2, 16], strides = [1, 1]} : vector<2x48xf32> to vector<2x16xf32>
    %238 = arith.addf %236, %237 : vector<2x16xf32>
    %239 = arith.negf %238 : vector<2x16xf32>
    %240 = math.exp %239 : vector<2x16xf32>
    %cst_68 = arith.constant 1.000000e+00 : f32
    %241 = vector.broadcast %cst_68 : f32 to vector<2x16xf32>
    %242 = arith.addf %241, %240 : vector<2x16xf32>
    %243 = arith.divf %241, %242 : vector<2x16xf32>
    %244 = vector.extract_strided_slice %232 {offsets = [0, 16], sizes = [2, 16], strides = [1, 1]} : vector<2x48xf32> to vector<2x16xf32>
    %245 = vector.extract_strided_slice %235 {offsets = [0, 16], sizes = [2, 16], strides = [1, 1]} : vector<2x48xf32> to vector<2x16xf32>
    %246 = arith.addf %244, %245 : vector<2x16xf32>
    %247 = arith.negf %246 : vector<2x16xf32>
    %248 = math.exp %247 : vector<2x16xf32>
    %cst_69 = arith.constant 1.000000e+00 : f32
    %249 = vector.broadcast %cst_69 : f32 to vector<2x16xf32>
    %250 = arith.addf %249, %248 : vector<2x16xf32>
    %251 = arith.divf %249, %250 : vector<2x16xf32>
    %252 = vector.extract_strided_slice %232 {offsets = [0, 32], sizes = [2, 16], strides = [1, 1]} : vector<2x48xf32> to vector<2x16xf32>
    %253 = vector.extract_strided_slice %235 {offsets = [0, 32], sizes = [2, 16], strides = [1, 1]} : vector<2x48xf32> to vector<2x16xf32>
    %254 = arith.mulf %243, %253 : vector<2x16xf32>
    %255 = arith.addf %252, %254 : vector<2x16xf32>
    %256 = math.tanh %255 : vector<2x16xf32>
    %cst_70 = arith.constant 1.000000e+00 : f32
    %257 = vector.broadcast %cst_70 : f32 to vector<2x16xf32>
    %258 = arith.subf %257, %251 : vector<2x16xf32>
    %259 = arith.mulf %258, %256 : vector<2x16xf32>
    %260 = arith.mulf %251, %225 : vector<2x16xf32>
    %261 = arith.addf %259, %260 : vector<2x16xf32>
    %262 = arith.index_cast %c6_i32 : i32 to index
    %c0_71 = arith.constant 0 : index
    %c0_72 = arith.constant 0 : index
    %263 = vector.load %arg12[%262, %c0_71, %c0_72] : memref<16x2x16xf32, #tpu.memory_space<vmem>>, vector<1x2x16xf32>
    %264 = vector.shape_cast %263 : vector<1x2x16xf32> to vector<2x16xf32>
    %265 = vector.shape_cast %261 : vector<2x16xf32> to vector<1x2x16xf32>
    tpu.vector_store %arg12[%262, %c0_71, %c0_72], %265 {strides = array<i32>} : memref<16x2x16xf32, #tpu.memory_space<vmem>>, vector<1x2x16xf32>,
    %c7_i32 = arith.constant 7 : i32
    %266 = arith.index_cast %c7_i32 : i32 to index
    %c0_73 = arith.constant 0 : index
    %c0_74 = arith.constant 0 : index
    %267 = vector.load %arg11[%266, %c0_73, %c0_74] : memref<16x2x48xf32, #tpu.memory_space<vmem>>, vector<1x2x48xf32>
    %268 = vector.shape_cast %267 : vector<1x2x48xf32> to vector<2x48xf32>
    "tpu.trace_start"() <{level = 10 : i32, message = "be,oe->bo"}> : () -> ()
    %cst_75 = arith.constant dense<0.000000e+00> : vector<2x48xf32>
    %269 = tpu.matmul %261, %11, %cst_75 {dimension_numbers = #tpu.dot_dimension_numbers<[1], [1], [0], [0], [0, 0, 1, 0], [], []>} : vector<2x16xf32>, vector<48x16xf32>, vector<2x48xf32> -> vector<2x48xf32>
    "tpu.trace_stop"() : () -> ()
    %270 = vector.broadcast %12 : vector<1x48xf32> to vector<2x48xf32>
    %271 = arith.addf %269, %270 : vector<2x48xf32>
    %272 = vector.extract_strided_slice %268 {offsets = [0, 0], sizes = [2, 16], strides = [1, 1]} : vector<2x48xf32> to vector<2x16xf32>
    %273 = vector.extract_strided_slice %271 {offsets = [0, 0], sizes = [2, 16], strides = [1, 1]} : vector<2x48xf32> to vector<2x16xf32>
    %274 = arith.addf %272, %273 : vector<2x16xf32>
    %275 = arith.negf %274 : vector<2x16xf32>
    %276 = math.exp %275 : vector<2x16xf32>
    %cst_76 = arith.constant 1.000000e+00 : f32
    %277 = vector.broadcast %cst_76 : f32 to vector<2x16xf32>
    %278 = arith.addf %277, %276 : vector<2x16xf32>
    %279 = arith.divf %277, %278 : vector<2x16xf32>
    %280 = vector.extract_strided_slice %268 {offsets = [0, 16], sizes = [2, 16], strides = [1, 1]} : vector<2x48xf32> to vector<2x16xf32>
    %281 = vector.extract_strided_slice %271 {offsets = [0, 16], sizes = [2, 16], strides = [1, 1]} : vector<2x48xf32> to vector<2x16xf32>
    %282 = arith.addf %280, %281 : vector<2x16xf32>
    %283 = arith.negf %282 : vector<2x16xf32>
    %284 = math.exp %283 : vector<2x16xf32>
    %cst_77 = arith.constant 1.000000e+00 : f32
    %285 = vector.broadcast %cst_77 : f32 to vector<2x16xf32>
    %286 = arith.addf %285, %284 : vector<2x16xf32>
    %287 = arith.divf %285, %286 : vector<2x16xf32>
    %288 = vector.extract_strided_slice %268 {offsets = [0, 32], sizes = [2, 16], strides = [1, 1]} : vector<2x48xf32> to vector<2x16xf32>
    %289 = vector.extract_strided_slice %271 {offsets = [0, 32], sizes = [2, 16], strides = [1, 1]} : vector<2x48xf32> to vector<2x16xf32>
    %290 = arith.mulf %279, %289 : vector<2x16xf32>
    %291 = arith.addf %288, %290 : vector<2x16xf32>
    %292 = math.tanh %291 : vector<2x16xf32>
    %cst_78 = arith.constant 1.000000e+00 : f32
    %293 = vector.broadcast %cst_78 : f32 to vector<2x16xf32>
    %294 = arith.subf %293, %287 : vector<2x16xf32>
    %295 = arith.mulf %294, %292 : vector<2x16xf32>
    %296 = arith.mulf %287, %261 : vector<2x16xf32>
    %297 = arith.addf %295, %296 : vector<2x16xf32>
    %298 = arith.index_cast %c7_i32 : i32 to index
    %c0_79 = arith.constant 0 : index
    %c0_80 = arith.constant 0 : index
    %299 = vector.load %arg12[%298, %c0_79, %c0_80] : memref<16x2x16xf32, #tpu.memory_space<vmem>>, vector<1x2x16xf32>
    %300 = vector.shape_cast %299 : vector<1x2x16xf32> to vector<2x16xf32>
    %301 = vector.shape_cast %297 : vector<2x16xf32> to vector<1x2x16xf32>
    tpu.vector_store %arg12[%298, %c0_79, %c0_80], %301 {strides = array<i32>} : memref<16x2x16xf32, #tpu.memory_space<vmem>>, vector<1x2x16xf32>,
    %c8_i32 = arith.constant 8 : i32
    %302 = arith.index_cast %c8_i32 : i32 to index
    %c0_81 = arith.constant 0 : index
    %c0_82 = arith.constant 0 : index
    %303 = vector.load %arg11[%302, %c0_81, %c0_82] : memref<16x2x48xf32, #tpu.memory_space<vmem>>, vector<1x2x48xf32>
    %304 = vector.shape_cast %303 : vector<1x2x48xf32> to vector<2x48xf32>
    "tpu.trace_start"() <{level = 10 : i32, message = "be,oe->bo"}> : () -> ()
    %cst_83 = arith.constant dense<0.000000e+00> : vector<2x48xf32>
    %305 = tpu.matmul %297, %11, %cst_83 {dimension_numbers = #tpu.dot_dimension_numbers<[1], [1], [0], [0], [0, 0, 1, 0], [], []>} : vector<2x16xf32>, vector<48x16xf32>, vector<2x48xf32> -> vector<2x48xf32>
    "tpu.trace_stop"() : () -> ()
    %306 = vector.broadcast %12 : vector<1x48xf32> to vector<2x48xf32>
    %307 = arith.addf %305, %306 : vector<2x48xf32>
    %308 = vector.extract_strided_slice %304 {offsets = [0, 0], sizes = [2, 16], strides = [1, 1]} : vector<2x48xf32> to vector<2x16xf32>
    %309 = vector.extract_strided_slice %307 {offsets = [0, 0], sizes = [2, 16], strides = [1, 1]} : vector<2x48xf32> to vector<2x16xf32>
    %310 = arith.addf %308, %309 : vector<2x16xf32>
    %311 = arith.negf %310 : vector<2x16xf32>
    %312 = math.exp %311 : vector<2x16xf32>
    %cst_84 = arith.constant 1.000000e+00 : f32
    %313 = vector.broadcast %cst_84 : f32 to vector<2x16xf32>
    %314 = arith.addf %313, %312 : vector<2x16xf32>
    %315 = arith.divf %313, %314 : vector<2x16xf32>
    %316 = vector.extract_strided_slice %304 {offsets = [0, 16], sizes = [2, 16], strides = [1, 1]} : vector<2x48xf32> to vector<2x16xf32>
    %317 = vector.extract_strided_slice %307 {offsets = [0, 16], sizes = [2, 16], strides = [1, 1]} : vector<2x48xf32> to vector<2x16xf32>
    %318 = arith.addf %316, %317 : vector<2x16xf32>
    %319 = arith.negf %318 : vector<2x16xf32>
    %320 = math.exp %319 : vector<2x16xf32>
    %cst_85 = arith.constant 1.000000e+00 : f32
    %321 = vector.broadcast %cst_85 : f32 to vector<2x16xf32>
    %322 = arith.addf %321, %320 : vector<2x16xf32>
    %323 = arith.divf %321, %322 : vector<2x16xf32>
    %324 = vector.extract_strided_slice %304 {offsets = [0, 32], sizes = [2, 16], strides = [1, 1]} : vector<2x48xf32> to vector<2x16xf32>
    %325 = vector.extract_strided_slice %307 {offsets = [0, 32], sizes = [2, 16], strides = [1, 1]} : vector<2x48xf32> to vector<2x16xf32>
    %326 = arith.mulf %315, %325 : vector<2x16xf32>
    %327 = arith.addf %324, %326 : vector<2x16xf32>
    %328 = math.tanh %327 : vector<2x16xf32>
    %cst_86 = arith.constant 1.000000e+00 : f32
    %329 = vector.broadcast %cst_86 : f32 to vector<2x16xf32>
    %330 = arith.subf %329, %323 : vector<2x16xf32>
    %331 = arith.mulf %330, %328 : vector<2x16xf32>
    %332 = arith.mulf %323, %297 : vector<2x16xf32>
    %333 = arith.addf %331, %332 : vector<2x16xf32>
    %334 = arith.index_cast %c8_i32 : i32 to index
    %c0_87 = arith.constant 0 : index
    %c0_88 = arith.constant 0 : index
    %335 = vector.load %arg12[%334, %c0_87, %c0_88] : memref<16x2x16xf32, #tpu.memory_space<vmem>>, vector<1x2x16xf32>
    %336 = vector.shape_cast %335 : vector<1x2x16xf32> to vector<2x16xf32>
    %337 = vector.shape_cast %333 : vector<2x16xf32> to vector<1x2x16xf32>
    tpu.vector_store %arg12[%334, %c0_87, %c0_88], %337 {strides = array<i32>} : memref<16x2x16xf32, #tpu.memory_space<vmem>>, vector<1x2x16xf32>,
    %c9_i32 = arith.constant 9 : i32
    %338 = arith.index_cast %c9_i32 : i32 to index
    %c0_89 = arith.constant 0 : index
    %c0_90 = arith.constant 0 : index
    %339 = vector.load %arg11[%338, %c0_89, %c0_90] : memref<16x2x48xf32, #tpu.memory_space<vmem>>, vector<1x2x48xf32>
    %340 = vector.shape_cast %339 : vector<1x2x48xf32> to vector<2x48xf32>
    "tpu.trace_start"() <{level = 10 : i32, message = "be,oe->bo"}> : () -> ()
    %cst_91 = arith.constant dense<0.000000e+00> : vector<2x48xf32>
    %341 = tpu.matmul %333, %11, %cst_91 {dimension_numbers = #tpu.dot_dimension_numbers<[1], [1], [0], [0], [0, 0, 1, 0], [], []>} : vector<2x16xf32>, vector<48x16xf32>, vector<2x48xf32> -> vector<2x48xf32>
    "tpu.trace_stop"() : () -> ()
    %342 = vector.broadcast %12 : vector<1x48xf32> to vector<2x48xf32>
    %343 = arith.addf %341, %342 : vector<2x48xf32>
    %344 = vector.extract_strided_slice %340 {offsets = [0, 0], sizes = [2, 16], strides = [1, 1]} : vector<2x48xf32> to vector<2x16xf32>
    %345 = vector.extract_strided_slice %343 {offsets = [0, 0], sizes = [2, 16], strides = [1, 1]} : vector<2x48xf32> to vector<2x16xf32>
    %346 = arith.addf %344, %345 : vector<2x16xf32>
    %347 = arith.negf %346 : vector<2x16xf32>
    %348 = math.exp %347 : vector<2x16xf32>
    %cst_92 = arith.constant 1.000000e+00 : f32
    %349 = vector.broadcast %cst_92 : f32 to vector<2x16xf32>
    %350 = arith.addf %349, %348 : vector<2x16xf32>
    %351 = arith.divf %349, %350 : vector<2x16xf32>
    %352 = vector.extract_strided_slice %340 {offsets = [0, 16], sizes = [2, 16], strides = [1, 1]} : vector<2x48xf32> to vector<2x16xf32>
    %353 = vector.extract_strided_slice %343 {offsets = [0, 16], sizes = [2, 16], strides = [1, 1]} : vector<2x48xf32> to vector<2x16xf32>
    %354 = arith.addf %352, %353 : vector<2x16xf32>
    %355 = arith.negf %354 : vector<2x16xf32>
    %356 = math.exp %355 : vector<2x16xf32>
    %cst_93 = arith.constant 1.000000e+00 : f32
    %357 = vector.broadcast %cst_93 : f32 to vector<2x16xf32>
    %358 = arith.addf %357, %356 : vector<2x16xf32>
    %359 = arith.divf %357, %358 : vector<2x16xf32>
    %360 = vector.extract_strided_slice %340 {offsets = [0, 32], sizes = [2, 16], strides = [1, 1]} : vector<2x48xf32> to vector<2x16xf32>
    %361 = vector.extract_strided_slice %343 {offsets = [0, 32], sizes = [2, 16], strides = [1, 1]} : vector<2x48xf32> to vector<2x16xf32>
    %362 = arith.mulf %351, %361 : vector<2x16xf32>
    %363 = arith.addf %360, %362 : vector<2x16xf32>
    %364 = math.tanh %363 : vector<2x16xf32>
    %cst_94 = arith.constant 1.000000e+00 : f32
    %365 = vector.broadcast %cst_94 : f32 to vector<2x16xf32>
    %366 = arith.subf %365, %359 : vector<2x16xf32>
    %367 = arith.mulf %366, %364 : vector<2x16xf32>
    %368 = arith.mulf %359, %333 : vector<2x16xf32>
    %369 = arith.addf %367, %368 : vector<2x16xf32>
    %370 = arith.index_cast %c9_i32 : i32 to index
    %c0_95 = arith.constant 0 : index
    %c0_96 = arith.constant 0 : index
    %371 = vector.load %arg12[%370, %c0_95, %c0_96] : memref<16x2x16xf32, #tpu.memory_space<vmem>>, vector<1x2x16xf32>
    %372 = vector.shape_cast %371 : vector<1x2x16xf32> to vector<2x16xf32>
    %373 = vector.shape_cast %369 : vector<2x16xf32> to vector<1x2x16xf32>
    tpu.vector_store %arg12[%370, %c0_95, %c0_96], %373 {strides = array<i32>} : memref<16x2x16xf32, #tpu.memory_space<vmem>>, vector<1x2x16xf32>,
    %c10_i32 = arith.constant 10 : i32
    %374 = arith.index_cast %c10_i32 : i32 to index
    %c0_97 = arith.constant 0 : index
    %c0_98 = arith.constant 0 : index
    %375 = vector.load %arg11[%374, %c0_97, %c0_98] : memref<16x2x48xf32, #tpu.memory_space<vmem>>, vector<1x2x48xf32>
    %376 = vector.shape_cast %375 : vector<1x2x48xf32> to vector<2x48xf32>
    "tpu.trace_start"() <{level = 10 : i32, message = "be,oe->bo"}> : () -> ()
    %cst_99 = arith.constant dense<0.000000e+00> : vector<2x48xf32>
    %377 = tpu.matmul %369, %11, %cst_99 {dimension_numbers = #tpu.dot_dimension_numbers<[1], [1], [0], [0], [0, 0, 1, 0], [], []>} : vector<2x16xf32>, vector<48x16xf32>, vector<2x48xf32> -> vector<2x48xf32>
    "tpu.trace_stop"() : () -> ()
    %378 = vector.broadcast %12 : vector<1x48xf32> to vector<2x48xf32>
    %379 = arith.addf %377, %378 : vector<2x48xf32>
    %380 = vector.extract_strided_slice %376 {offsets = [0, 0], sizes = [2, 16], strides = [1, 1]} : vector<2x48xf32> to vector<2x16xf32>
    %381 = vector.extract_strided_slice %379 {offsets = [0, 0], sizes = [2, 16], strides = [1, 1]} : vector<2x48xf32> to vector<2x16xf32>
    %382 = arith.addf %380, %381 : vector<2x16xf32>
    %383 = arith.negf %382 : vector<2x16xf32>
    %384 = math.exp %383 : vector<2x16xf32>
    %cst_100 = arith.constant 1.000000e+00 : f32
    %385 = vector.broadcast %cst_100 : f32 to vector<2x16xf32>
    %386 = arith.addf %385, %384 : vector<2x16xf32>
    %387 = arith.divf %385, %386 : vector<2x16xf32>
    %388 = vector.extract_strided_slice %376 {offsets = [0, 16], sizes = [2, 16], strides = [1, 1]} : vector<2x48xf32> to vector<2x16xf32>
    %389 = vector.extract_strided_slice %379 {offsets = [0, 16], sizes = [2, 16], strides = [1, 1]} : vector<2x48xf32> to vector<2x16xf32>
    %390 = arith.addf %388, %389 : vector<2x16xf32>
    %391 = arith.negf %390 : vector<2x16xf32>
    %392 = math.exp %391 : vector<2x16xf32>
    %cst_101 = arith.constant 1.000000e+00 : f32
    %393 = vector.broadcast %cst_101 : f32 to vector<2x16xf32>
    %394 = arith.addf %393, %392 : vector<2x16xf32>
    %395 = arith.divf %393, %394 : vector<2x16xf32>
    %396 = vector.extract_strided_slice %376 {offsets = [0, 32], sizes = [2, 16], strides = [1, 1]} : vector<2x48xf32> to vector<2x16xf32>
    %397 = vector.extract_strided_slice %379 {offsets = [0, 32], sizes = [2, 16], strides = [1, 1]} : vector<2x48xf32> to vector<2x16xf32>
    %398 = arith.mulf %387, %397 : vector<2x16xf32>
    %399 = arith.addf %396, %398 : vector<2x16xf32>
    %400 = math.tanh %399 : vector<2x16xf32>
    %cst_102 = arith.constant 1.000000e+00 : f32
    %401 = vector.broadcast %cst_102 : f32 to vector<2x16xf32>
    %402 = arith.subf %401, %395 : vector<2x16xf32>
    %403 = arith.mulf %402, %400 : vector<2x16xf32>
    %404 = arith.mulf %395, %369 : vector<2x16xf32>
    %405 = arith.addf %403, %404 : vector<2x16xf32>
    %406 = arith.index_cast %c10_i32 : i32 to index
    %c0_103 = arith.constant 0 : index
    %c0_104 = arith.constant 0 : index
    %407 = vector.load %arg12[%406, %c0_103, %c0_104] : memref<16x2x16xf32, #tpu.memory_space<vmem>>, vector<1x2x16xf32>
    %408 = vector.shape_cast %407 : vector<1x2x16xf32> to vector<2x16xf32>
    %409 = vector.shape_cast %405 : vector<2x16xf32> to vector<1x2x16xf32>
    tpu.vector_store %arg12[%406, %c0_103, %c0_104], %409 {strides = array<i32>} : memref<16x2x16xf32, #tpu.memory_space<vmem>>, vector<1x2x16xf32>,
    %c11_i32 = arith.constant 11 : i32
    %410 = arith.index_cast %c11_i32 : i32 to index
    %c0_105 = arith.constant 0 : index
    %c0_106 = arith.constant 0 : index
    %411 = vector.load %arg11[%410, %c0_105, %c0_106] : memref<16x2x48xf32, #tpu.memory_space<vmem>>, vector<1x2x48xf32>
    %412 = vector.shape_cast %411 : vector<1x2x48xf32> to vector<2x48xf32>
    "tpu.trace_start"() <{level = 10 : i32, message = "be,oe->bo"}> : () -> ()
    %cst_107 = arith.constant dense<0.000000e+00> : vector<2x48xf32>
    %413 = tpu.matmul %405, %11, %cst_107 {dimension_numbers = #tpu.dot_dimension_numbers<[1], [1], [0], [0], [0, 0, 1, 0], [], []>} : vector<2x16xf32>, vector<48x16xf32>, vector<2x48xf32> -> vector<2x48xf32>
    "tpu.trace_stop"() : () -> ()
    %414 = vector.broadcast %12 : vector<1x48xf32> to vector<2x48xf32>
    %415 = arith.addf %413, %414 : vector<2x48xf32>
    %416 = vector.extract_strided_slice %412 {offsets = [0, 0], sizes = [2, 16], strides = [1, 1]} : vector<2x48xf32> to vector<2x16xf32>
    %417 = vector.extract_strided_slice %415 {offsets = [0, 0], sizes = [2, 16], strides = [1, 1]} : vector<2x48xf32> to vector<2x16xf32>
    %418 = arith.addf %416, %417 : vector<2x16xf32>
    %419 = arith.negf %418 : vector<2x16xf32>
    %420 = math.exp %419 : vector<2x16xf32>
    %cst_108 = arith.constant 1.000000e+00 : f32
    %421 = vector.broadcast %cst_108 : f32 to vector<2x16xf32>
    %422 = arith.addf %421, %420 : vector<2x16xf32>
    %423 = arith.divf %421, %422 : vector<2x16xf32>
    %424 = vector.extract_strided_slice %412 {offsets = [0, 16], sizes = [2, 16], strides = [1, 1]} : vector<2x48xf32> to vector<2x16xf32>
    %425 = vector.extract_strided_slice %415 {offsets = [0, 16], sizes = [2, 16], strides = [1, 1]} : vector<2x48xf32> to vector<2x16xf32>
    %426 = arith.addf %424, %425 : vector<2x16xf32>
    %427 = arith.negf %426 : vector<2x16xf32>
    %428 = math.exp %427 : vector<2x16xf32>
    %cst_109 = arith.constant 1.000000e+00 : f32
    %429 = vector.broadcast %cst_109 : f32 to vector<2x16xf32>
    %430 = arith.addf %429, %428 : vector<2x16xf32>
    %431 = arith.divf %429, %430 : vector<2x16xf32>
    %432 = vector.extract_strided_slice %412 {offsets = [0, 32], sizes = [2, 16], strides = [1, 1]} : vector<2x48xf32> to vector<2x16xf32>
    %433 = vector.extract_strided_slice %415 {offsets = [0, 32], sizes = [2, 16], strides = [1, 1]} : vector<2x48xf32> to vector<2x16xf32>
    %434 = arith.mulf %423, %433 : vector<2x16xf32>
    %435 = arith.addf %432, %434 : vector<2x16xf32>
    %436 = math.tanh %435 : vector<2x16xf32>
    %cst_110 = arith.constant 1.000000e+00 : f32
    %437 = vector.broadcast %cst_110 : f32 to vector<2x16xf32>
    %438 = arith.subf %437, %431 : vector<2x16xf32>
    %439 = arith.mulf %438, %436 : vector<2x16xf32>
    %440 = arith.mulf %431, %405 : vector<2x16xf32>
    %441 = arith.addf %439, %440 : vector<2x16xf32>
    %442 = arith.index_cast %c11_i32 : i32 to index
    %c0_111 = arith.constant 0 : index
    %c0_112 = arith.constant 0 : index
    %443 = vector.load %arg12[%442, %c0_111, %c0_112] : memref<16x2x16xf32, #tpu.memory_space<vmem>>, vector<1x2x16xf32>
    %444 = vector.shape_cast %443 : vector<1x2x16xf32> to vector<2x16xf32>
    %445 = vector.shape_cast %441 : vector<2x16xf32> to vector<1x2x16xf32>
    tpu.vector_store %arg12[%442, %c0_111, %c0_112], %445 {strides = array<i32>} : memref<16x2x16xf32, #tpu.memory_space<vmem>>, vector<1x2x16xf32>,
    %c12_i32 = arith.constant 12 : i32
    %446 = arith.index_cast %c12_i32 : i32 to index
    %c0_113 = arith.constant 0 : index
    %c0_114 = arith.constant 0 : index
    %447 = vector.load %arg11[%446, %c0_113, %c0_114] : memref<16x2x48xf32, #tpu.memory_space<vmem>>, vector<1x2x48xf32>
    %448 = vector.shape_cast %447 : vector<1x2x48xf32> to vector<2x48xf32>
    "tpu.trace_start"() <{level = 10 : i32, message = "be,oe->bo"}> : () -> ()
    %cst_115 = arith.constant dense<0.000000e+00> : vector<2x48xf32>
    %449 = tpu.matmul %441, %11, %cst_115 {dimension_numbers = #tpu.dot_dimension_numbers<[1], [1], [0], [0], [0, 0, 1, 0], [], []>} : vector<2x16xf32>, vector<48x16xf32>, vector<2x48xf32> -> vector<2x48xf32>
    "tpu.trace_stop"() : () -> ()
    %450 = vector.broadcast %12 : vector<1x48xf32> to vector<2x48xf32>
    %451 = arith.addf %449, %450 : vector<2x48xf32>
    %452 = vector.extract_strided_slice %448 {offsets = [0, 0], sizes = [2, 16], strides = [1, 1]} : vector<2x48xf32> to vector<2x16xf32>
    %453 = vector.extract_strided_slice %451 {offsets = [0, 0], sizes = [2, 16], strides = [1, 1]} : vector<2x48xf32> to vector<2x16xf32>
    %454 = arith.addf %452, %453 : vector<2x16xf32>
    %455 = arith.negf %454 : vector<2x16xf32>
    %456 = math.exp %455 : vector<2x16xf32>
    %cst_116 = arith.constant 1.000000e+00 : f32
    %457 = vector.broadcast %cst_116 : f32 to vector<2x16xf32>
    %458 = arith.addf %457, %456 : vector<2x16xf32>
    %459 = arith.divf %457, %458 : vector<2x16xf32>
    %460 = vector.extract_strided_slice %448 {offsets = [0, 16], sizes = [2, 16], strides = [1, 1]} : vector<2x48xf32> to vector<2x16xf32>
    %461 = vector.extract_strided_slice %451 {offsets = [0, 16], sizes = [2, 16], strides = [1, 1]} : vector<2x48xf32> to vector<2x16xf32>
    %462 = arith.addf %460, %461 : vector<2x16xf32>
    %463 = arith.negf %462 : vector<2x16xf32>
    %464 = math.exp %463 : vector<2x16xf32>
    %cst_117 = arith.constant 1.000000e+00 : f32
    %465 = vector.broadcast %cst_117 : f32 to vector<2x16xf32>
    %466 = arith.addf %465, %464 : vector<2x16xf32>
    %467 = arith.divf %465, %466 : vector<2x16xf32>
    %468 = vector.extract_strided_slice %448 {offsets = [0, 32], sizes = [2, 16], strides = [1, 1]} : vector<2x48xf32> to vector<2x16xf32>
    %469 = vector.extract_strided_slice %451 {offsets = [0, 32], sizes = [2, 16], strides = [1, 1]} : vector<2x48xf32> to vector<2x16xf32>
    %470 = arith.mulf %459, %469 : vector<2x16xf32>
    %471 = arith.addf %468, %470 : vector<2x16xf32>
    %472 = math.tanh %471 : vector<2x16xf32>
    %cst_118 = arith.constant 1.000000e+00 : f32
    %473 = vector.broadcast %cst_118 : f32 to vector<2x16xf32>
    %474 = arith.subf %473, %467 : vector<2x16xf32>
    %475 = arith.mulf %474, %472 : vector<2x16xf32>
    %476 = arith.mulf %467, %441 : vector<2x16xf32>
    %477 = arith.addf %475, %476 : vector<2x16xf32>
    %478 = arith.index_cast %c12_i32 : i32 to index
    %c0_119 = arith.constant 0 : index
    %c0_120 = arith.constant 0 : index
    %479 = vector.load %arg12[%478, %c0_119, %c0_120] : memref<16x2x16xf32, #tpu.memory_space<vmem>>, vector<1x2x16xf32>
    %480 = vector.shape_cast %479 : vector<1x2x16xf32> to vector<2x16xf32>
    %481 = vector.shape_cast %477 : vector<2x16xf32> to vector<1x2x16xf32>
    tpu.vector_store %arg12[%478, %c0_119, %c0_120], %481 {strides = array<i32>} : memref<16x2x16xf32, #tpu.memory_space<vmem>>, vector<1x2x16xf32>,
    %c13_i32 = arith.constant 13 : i32
    %482 = arith.index_cast %c13_i32 : i32 to index
    %c0_121 = arith.constant 0 : index
    %c0_122 = arith.constant 0 : index
    %483 = vector.load %arg11[%482, %c0_121, %c0_122] : memref<16x2x48xf32, #tpu.memory_space<vmem>>, vector<1x2x48xf32>
    %484 = vector.shape_cast %483 : vector<1x2x48xf32> to vector<2x48xf32>
    "tpu.trace_start"() <{level = 10 : i32, message = "be,oe->bo"}> : () -> ()
    %cst_123 = arith.constant dense<0.000000e+00> : vector<2x48xf32>
    %485 = tpu.matmul %477, %11, %cst_123 {dimension_numbers = #tpu.dot_dimension_numbers<[1], [1], [0], [0], [0, 0, 1, 0], [], []>} : vector<2x16xf32>, vector<48x16xf32>, vector<2x48xf32> -> vector<2x48xf32>
    "tpu.trace_stop"() : () -> ()
    %486 = vector.broadcast %12 : vector<1x48xf32> to vector<2x48xf32>
    %487 = arith.addf %485, %486 : vector<2x48xf32>
    %488 = vector.extract_strided_slice %484 {offsets = [0, 0], sizes = [2, 16], strides = [1, 1]} : vector<2x48xf32> to vector<2x16xf32>
    %489 = vector.extract_strided_slice %487 {offsets = [0, 0], sizes = [2, 16], strides = [1, 1]} : vector<2x48xf32> to vector<2x16xf32>
    %490 = arith.addf %488, %489 : vector<2x16xf32>
    %491 = arith.negf %490 : vector<2x16xf32>
    %492 = math.exp %491 : vector<2x16xf32>
    %cst_124 = arith.constant 1.000000e+00 : f32
    %493 = vector.broadcast %cst_124 : f32 to vector<2x16xf32>
    %494 = arith.addf %493, %492 : vector<2x16xf32>
    %495 = arith.divf %493, %494 : vector<2x16xf32>
    %496 = vector.extract_strided_slice %484 {offsets = [0, 16], sizes = [2, 16], strides = [1, 1]} : vector<2x48xf32> to vector<2x16xf32>
    %497 = vector.extract_strided_slice %487 {offsets = [0, 16], sizes = [2, 16], strides = [1, 1]} : vector<2x48xf32> to vector<2x16xf32>
    %498 = arith.addf %496, %497 : vector<2x16xf32>
    %499 = arith.negf %498 : vector<2x16xf32>
    %500 = math.exp %499 : vector<2x16xf32>
    %cst_125 = arith.constant 1.000000e+00 : f32
    %501 = vector.broadcast %cst_125 : f32 to vector<2x16xf32>
    %502 = arith.addf %501, %500 : vector<2x16xf32>
    %503 = arith.divf %501, %502 : vector<2x16xf32>
    %504 = vector.extract_strided_slice %484 {offsets = [0, 32], sizes = [2, 16], strides = [1, 1]} : vector<2x48xf32> to vector<2x16xf32>
    %505 = vector.extract_strided_slice %487 {offsets = [0, 32], sizes = [2, 16], strides = [1, 1]} : vector<2x48xf32> to vector<2x16xf32>
    %506 = arith.mulf %495, %505 : vector<2x16xf32>
    %507 = arith.addf %504, %506 : vector<2x16xf32>
    %508 = math.tanh %507 : vector<2x16xf32>
    %cst_126 = arith.constant 1.000000e+00 : f32
    %509 = vector.broadcast %cst_126 : f32 to vector<2x16xf32>
    %510 = arith.subf %509, %503 : vector<2x16xf32>
    %511 = arith.mulf %510, %508 : vector<2x16xf32>
    %512 = arith.mulf %503, %477 : vector<2x16xf32>
    %513 = arith.addf %511, %512 : vector<2x16xf32>
    %514 = arith.index_cast %c13_i32 : i32 to index
    %c0_127 = arith.constant 0 : index
    %c0_128 = arith.constant 0 : index
    %515 = vector.load %arg12[%514, %c0_127, %c0_128] : memref<16x2x16xf32, #tpu.memory_space<vmem>>, vector<1x2x16xf32>
    %516 = vector.shape_cast %515 : vector<1x2x16xf32> to vector<2x16xf32>
    %517 = vector.shape_cast %513 : vector<2x16xf32> to vector<1x2x16xf32>
    tpu.vector_store %arg12[%514, %c0_127, %c0_128], %517 {strides = array<i32>} : memref<16x2x16xf32, #tpu.memory_space<vmem>>, vector<1x2x16xf32>,
    %c14_i32 = arith.constant 14 : i32
    %518 = arith.index_cast %c14_i32 : i32 to index
    %c0_129 = arith.constant 0 : index
    %c0_130 = arith.constant 0 : index
    %519 = vector.load %arg11[%518, %c0_129, %c0_130] : memref<16x2x48xf32, #tpu.memory_space<vmem>>, vector<1x2x48xf32>
    %520 = vector.shape_cast %519 : vector<1x2x48xf32> to vector<2x48xf32>
    "tpu.trace_start"() <{level = 10 : i32, message = "be,oe->bo"}> : () -> ()
    %cst_131 = arith.constant dense<0.000000e+00> : vector<2x48xf32>
    %521 = tpu.matmul %513, %11, %cst_131 {dimension_numbers = #tpu.dot_dimension_numbers<[1], [1], [0], [0], [0, 0, 1, 0], [], []>} : vector<2x16xf32>, vector<48x16xf32>, vector<2x48xf32> -> vector<2x48xf32>
    "tpu.trace_stop"() : () -> ()
    %522 = vector.broadcast %12 : vector<1x48xf32> to vector<2x48xf32>
    %523 = arith.addf %521, %522 : vector<2x48xf32>
    %524 = vector.extract_strided_slice %520 {offsets = [0, 0], sizes = [2, 16], strides = [1, 1]} : vector<2x48xf32> to vector<2x16xf32>
    %525 = vector.extract_strided_slice %523 {offsets = [0, 0], sizes = [2, 16], strides = [1, 1]} : vector<2x48xf32> to vector<2x16xf32>
    %526 = arith.addf %524, %525 : vector<2x16xf32>
    %527 = arith.negf %526 : vector<2x16xf32>
    %528 = math.exp %527 : vector<2x16xf32>
    %cst_132 = arith.constant 1.000000e+00 : f32
    %529 = vector.broadcast %cst_132 : f32 to vector<2x16xf32>
    %530 = arith.addf %529, %528 : vector<2x16xf32>
    %531 = arith.divf %529, %530 : vector<2x16xf32>
    %532 = vector.extract_strided_slice %520 {offsets = [0, 16], sizes = [2, 16], strides = [1, 1]} : vector<2x48xf32> to vector<2x16xf32>
    %533 = vector.extract_strided_slice %523 {offsets = [0, 16], sizes = [2, 16], strides = [1, 1]} : vector<2x48xf32> to vector<2x16xf32>
    %534 = arith.addf %532, %533 : vector<2x16xf32>
    %535 = arith.negf %534 : vector<2x16xf32>
    %536 = math.exp %535 : vector<2x16xf32>
    %cst_133 = arith.constant 1.000000e+00 : f32
    %537 = vector.broadcast %cst_133 : f32 to vector<2x16xf32>
    %538 = arith.addf %537, %536 : vector<2x16xf32>
    %539 = arith.divf %537, %538 : vector<2x16xf32>
    %540 = vector.extract_strided_slice %520 {offsets = [0, 32], sizes = [2, 16], strides = [1, 1]} : vector<2x48xf32> to vector<2x16xf32>
    %541 = vector.extract_strided_slice %523 {offsets = [0, 32], sizes = [2, 16], strides = [1, 1]} : vector<2x48xf32> to vector<2x16xf32>
    %542 = arith.mulf %531, %541 : vector<2x16xf32>
    %543 = arith.addf %540, %542 : vector<2x16xf32>
    %544 = math.tanh %543 : vector<2x16xf32>
    %cst_134 = arith.constant 1.000000e+00 : f32
    %545 = vector.broadcast %cst_134 : f32 to vector<2x16xf32>
    %546 = arith.subf %545, %539 : vector<2x16xf32>
    %547 = arith.mulf %546, %544 : vector<2x16xf32>
    %548 = arith.mulf %539, %513 : vector<2x16xf32>
    %549 = arith.addf %547, %548 : vector<2x16xf32>
    %550 = arith.index_cast %c14_i32 : i32 to index
    %c0_135 = arith.constant 0 : index
    %c0_136 = arith.constant 0 : index
    %551 = vector.load %arg12[%550, %c0_135, %c0_136] : memref<16x2x16xf32, #tpu.memory_space<vmem>>, vector<1x2x16xf32>
    %552 = vector.shape_cast %551 : vector<1x2x16xf32> to vector<2x16xf32>
    %553 = vector.shape_cast %549 : vector<2x16xf32> to vector<1x2x16xf32>
    tpu.vector_store %arg12[%550, %c0_135, %c0_136], %553 {strides = array<i32>} : memref<16x2x16xf32, #tpu.memory_space<vmem>>, vector<1x2x16xf32>,
    %c15_i32 = arith.constant 15 : i32
    %554 = arith.index_cast %c15_i32 : i32 to index
    %c0_137 = arith.constant 0 : index
    %c0_138 = arith.constant 0 : index
    %555 = vector.load %arg11[%554, %c0_137, %c0_138] : memref<16x2x48xf32, #tpu.memory_space<vmem>>, vector<1x2x48xf32>
    %556 = vector.shape_cast %555 : vector<1x2x48xf32> to vector<2x48xf32>
    "tpu.trace_start"() <{level = 10 : i32, message = "be,oe->bo"}> : () -> ()
    %cst_139 = arith.constant dense<0.000000e+00> : vector<2x48xf32>
    %557 = tpu.matmul %549, %11, %cst_139 {dimension_numbers = #tpu.dot_dimension_numbers<[1], [1], [0], [0], [0, 0, 1, 0], [], []>} : vector<2x16xf32>, vector<48x16xf32>, vector<2x48xf32> -> vector<2x48xf32>
    "tpu.trace_stop"() : () -> ()
    %558 = vector.broadcast %12 : vector<1x48xf32> to vector<2x48xf32>
    %559 = arith.addf %557, %558 : vector<2x48xf32>
    %560 = vector.extract_strided_slice %556 {offsets = [0, 0], sizes = [2, 16], strides = [1, 1]} : vector<2x48xf32> to vector<2x16xf32>
    %561 = vector.extract_strided_slice %559 {offsets = [0, 0], sizes = [2, 16], strides = [1, 1]} : vector<2x48xf32> to vector<2x16xf32>
    %562 = arith.addf %560, %561 : vector<2x16xf32>
    %563 = arith.negf %562 : vector<2x16xf32>
    %564 = math.exp %563 : vector<2x16xf32>
    %cst_140 = arith.constant 1.000000e+00 : f32
    %565 = vector.broadcast %cst_140 : f32 to vector<2x16xf32>
    %566 = arith.addf %565, %564 : vector<2x16xf32>
    %567 = arith.divf %565, %566 : vector<2x16xf32>
    %568 = vector.extract_strided_slice %556 {offsets = [0, 16], sizes = [2, 16], strides = [1, 1]} : vector<2x48xf32> to vector<2x16xf32>
    %569 = vector.extract_strided_slice %559 {offsets = [0, 16], sizes = [2, 16], strides = [1, 1]} : vector<2x48xf32> to vector<2x16xf32>
    %570 = arith.addf %568, %569 : vector<2x16xf32>
    %571 = arith.negf %570 : vector<2x16xf32>
    %572 = math.exp %571 : vector<2x16xf32>
    %cst_141 = arith.constant 1.000000e+00 : f32
    %573 = vector.broadcast %cst_141 : f32 to vector<2x16xf32>
    %574 = arith.addf %573, %572 : vector<2x16xf32>
    %575 = arith.divf %573, %574 : vector<2x16xf32>
    %576 = vector.extract_strided_slice %556 {offsets = [0, 32], sizes = [2, 16], strides = [1, 1]} : vector<2x48xf32> to vector<2x16xf32>
    %577 = vector.extract_strided_slice %559 {offsets = [0, 32], sizes = [2, 16], strides = [1, 1]} : vector<2x48xf32> to vector<2x16xf32>
    %578 = arith.mulf %567, %577 : vector<2x16xf32>
    %579 = arith.addf %576, %578 : vector<2x16xf32>
    %580 = math.tanh %579 : vector<2x16xf32>
    %cst_142 = arith.constant 1.000000e+00 : f32
    %581 = vector.broadcast %cst_142 : f32 to vector<2x16xf32>
    %582 = arith.subf %581, %575 : vector<2x16xf32>
    %583 = arith.mulf %582, %580 : vector<2x16xf32>
    %584 = arith.mulf %575, %549 : vector<2x16xf32>
    %585 = arith.addf %583, %584 : vector<2x16xf32>
    %586 = arith.index_cast %c15_i32 : i32 to index
    %c0_143 = arith.constant 0 : index
    %c0_144 = arith.constant 0 : index
    %587 = vector.load %arg12[%586, %c0_143, %c0_144] : memref<16x2x16xf32, #tpu.memory_space<vmem>>, vector<1x2x16xf32>
    %588 = vector.shape_cast %587 : vector<1x2x16xf32> to vector<2x16xf32>
    %589 = vector.shape_cast %585 : vector<2x16xf32> to vector<1x2x16xf32>
    tpu.vector_store %arg12[%586, %c0_143, %c0_144], %589 {strides = array<i32>} : memref<16x2x16xf32, #tpu.memory_space<vmem>>, vector<1x2x16xf32>,
    %c16_i32 = arith.constant 16 : i32
    %c0_145 = arith.constant 0 : index
    %c0_146 = arith.constant 0 : index
    %590 = vector.load %arg10[%c0_145, %c0_146] : memref<2x16xf32, #tpu.memory_space<vmem>>, vector<2x16xf32>
    tpu.vector_store %arg10[%c0_145, %c0_146], %585 {strides = array<i32>} : memref<2x16xf32, #tpu.memory_space<vmem>>, vector<2x16xf32>,
    %c0_147 = arith.constant 0 : index
    %c0_148 = arith.constant 0 : index
    %591 = vector.load %arg3[%c0_147, %c0_148] : memref<16x2xf32, #tpu.memory_space<vmem>>, vector<16x2xf32>
    %c0_149 = arith.constant 0 : index
    %c0_150 = arith.constant 0 : index
    %c0_151 = arith.constant 0 : index
    %592 = vector.load %arg12[%c0_149, %c0_150, %c0_151] : memref<16x2x16xf32, #tpu.memory_space<vmem>>, vector<16x2x16xf32>
    %c0_152 = arith.constant 0 : index
    %c0_153 = arith.constant 0 : index
    %593 = vector.load %arg8[%c0_152, %c0_153] : memref<1x16xf32, #tpu.memory_space<vmem>>, vector<1x16xf32>
    %594 = vector.shape_cast %593 : vector<1x16xf32> to vector<1x1x16xf32>
    %595 = vector.broadcast %594 : vector<1x1x16xf32> to vector<16x2x16xf32>
    %596 = arith.mulf %592, %595 : vector<16x2x16xf32>
    %cst_154 = arith.constant dense<0.000000e+00> : vector<16x2xf32>
    %597 = vector.multi_reduction <add>, %596, %cst_154 [2] : vector<16x2x16xf32> to vector<16x2xf32>
    %598 = arith.addf %591, %597 : vector<16x2xf32>
    %c0_155 = arith.constant 0 : index
    %c0_156 = arith.constant 0 : index
    %599 = vector.load %arg9[%c0_155, %c0_156] : memref<16x2xf32, #tpu.memory_space<vmem>>, vector<16x2xf32>
    tpu.vector_store %arg9[%c0_155, %c0_156], %598 {strides = array<i32>} : memref<16x2xf32, #tpu.memory_space<vmem>>, vector<16x2xf32>,
    return
  }
  func.func @transform_0(%arg0: i32, %arg1: i32) -> (i32, i32, i32) {
    %c0_i32 = arith.constant 0 : i32
    %c0_i32_0 = arith.constant 0 : i32
    return %arg1, %arg0, %c0_i32 : i32, i32, i32
  }
  func.func @transform_1(%arg0: i32, %arg1: i32) -> (i32, i32) {
    %c0_i32 = arith.constant 0 : i32
    return %arg1, %arg0 : i32, i32
  }
  func.func @transform_2(%arg0: i32, %arg1: i32) -> (i32, i32) {
    %c0_i32 = arith.constant 0 : i32
    %c0_i32_0 = arith.constant 0 : i32
    %c0_i32_1 = arith.constant 0 : i32
    return %c0_i32, %c0_i32_0 : i32, i32
  }
  func.func @transform_3(%arg0: i32, %arg1: i32) -> (i32, i32) {
    %c0_i32 = arith.constant 0 : i32
    %c0_i32_0 = arith.constant 0 : i32
    %c0_i32_1 = arith.constant 0 : i32
    return %c0_i32, %c0_i32_0 : i32, i32
  }
  func.func @transform_4(%arg0: i32, %arg1: i32) -> (i32, i32) {
    %c0_i32 = arith.constant 0 : i32
    %c0_i32_0 = arith.constant 0 : i32
    %c0_i32_1 = arith.constant 0 : i32
    return %c0_i32, %c0_i32_0 : i32, i32
  }
  func.func @transform_5(%arg0: i32, %arg1: i32) -> (i32, i32) {
    %c0_i32 = arith.constant 0 : i32
    %c0_i32_0 = arith.constant 0 : i32
    %c0_i32_1 = arith.constant 0 : i32
    return %c0_i32, %c0_i32_0 : i32, i32
  }
  func.func @transform_6(%arg0: i32, %arg1: i32) -> (i32, i32) {
    %c0_i32 = arith.constant 0 : i32
    %c0_i32_0 = arith.constant 0 : i32
    %c0_i32_1 = arith.constant 0 : i32
    return %c0_i32, %c0_i32_0 : i32, i32
  }
  func.func @transform_7(%arg0: i32, %arg1: i32) -> (i32, i32) {
    %c0_i32 = arith.constant 0 : i32
    return %arg1, %arg0 : i32, i32
  }
}

</mosaic_0001>

<bundles_post_ra>
// kernel: dummy_transformer_gru_forward.2
= control target key start
LH: loop header
LB: loop body
LE: loop exit
PB: predicated region body
PF: predicated region fallthrough
CT: control target
= control target key end

     0   :  { %vm61_vm0 = vcmask 130048   ;;  %v3139_v0 = vmov 0.0|0.0   ;;  %vm3140_vm2 = vmmov 0   ;;  %v3141_v4 = vmov 0.0   ;;  %s3144_s19 = smov 80   ;;  %s3145_s20 = smov 112   ;;  %s4301_s4 = inlined_call_operand.vmem [shape: f32[96,16], index: 4, kind: input, shape index: {}]   ;;  %s4302_s3 = inlined_call_operand.vmem [shape: f32[96,16], index: 3, kind: input, shape index: {}]   ;;  %s4303_s0 = inlined_call_operand.vmem [shape: f32[8,8,16], index: 0, kind: input, shape index: {}]   ;;  %s4304_s1 = inlined_call_operand.vmem [shape: f32[8,16], index: 1, kind: input, shape index: {}]   ;;  %s4305_s5 = inlined_call_operand.vmem [shape: f32[1,96], index: 5, kind: input, shape index: {}]   ;;  %s4306_s6 = inlined_call_operand.vmem [shape: f32[1,32], index: 6, kind: input, shape index: {}]   ;;  %s4307_s2 = inlined_call_operand.vmem [shape: f32[8,8], index: 2, kind: input, shape index: {}]   ;;  %s4308_s7 = inlined_call_operand.vmem [shape: f32[8,8], index: 7, kind: output, shape index: {}]  }
   0x1   :  { %2973 = vmatprep.subr.bf16.mxu0 %v3139_v0  ;;  %v49_v1 = vld [vmem:[%s4301_s4] sm:$0xff]  ;;  %v50_v2 = vld [vmem:[%s4301_s4 + $0x8] sm:$0xff]  ;;  %vm3197_vm1 = vmpackc.low %vm61_vm0, %vm61_vm0  ;;  %2854 = vmatprep.mubr.msk.f32.mxu0 %vm3140_vm2, %v3141_v4  ;;  %v176_v48 = vlaneseq  ;;  %v3142_v52 = vmov 1966171168   ;;  %s3146_s23 = smov 64   ;;  %vm1223_vm12 = vcmask 64512  }
   0x2   :  { %v2974_v5 = vpack.c.bf16 %v50_v2, %v49_v1  ;;  %v37_v6 = vld [vmem:[%s4302_s3] sm:$0xff]  ;;  %v38_v7 = vld [vmem:[%s4302_s3 + $0x8] sm:$0xff]  ;;  %v39_v9 = vld [vmem:[%s4302_s3 + $0x10] sm:$0xff]  ;;  %v174_v53 = vunpack.c.l.s4 %v3142_v52 }
   0x3   :  { %v2997_v8 = vpack.c.bf16 %v38_v7, %v37_v6  ;;  %v40_v10 = vld [vmem:[%s4302_s3 + $0x18] sm:$0xff]  ;;  %v51_v12 = vld [vmem:[%s4301_s4 + $0x10] sm:$0xff]  ;;  %v41_v15 = vld [vmem:[%s4302_s3 + $0x20] sm:$0xff]  ;;  %v177_v49 = vshrl.u32 %v176_v48, 7  ;;  %v1433_v50 = vand.u32 127, %v176_v48 }
   0x4   :  { %2976 = vmatpush3.bf16.xpose.msk.msra.mxu0 %vm3197_vm1, %v2974_v5  ;;  %v3003_v11 = vpack.c.bf16 %v40_v10, %v39_v9  ;;  %v52_v13 = vld [vmem:[%s4301_s4 + $0x18] sm:$0xff]  ;;  %v42_v16 = vld [vmem:[%s4302_s3 + $0x28] sm:$0xff]  ;;  %v26_v17 = vld [vmem:[%s4303_s0] sm:$0xff]  ;;  %v175_v54 = vunpack.c.0.s8 %v174_v53 }
   0x5   :  { %2999 = vmatprep.subr.msk.bf16.mxu1 %vm3197_vm1, %v2997_v8  ;;  %2977 = vmatprep.subr.bf16.mxu0 %v3139_v0  ;;  %v2978_v14 = vpack.c.bf16 %v52_v13, %v51_v12  ;;  %v3009_v18 = vpack.c.bf16 %v42_v16, %v41_v15  ;;  %v53_v19 = vld [vmem:[%s4301_s4 + $0x20] sm:$0xff]  ;;  %v54_v20 = vld [vmem:[%s4301_s4 + $0x28] sm:$0xff]  ;;  %v43_v22 = vld [vmem:[%s4302_s3 + $0x30] sm:$0xff]  ;;  %v3347_v51 = vsub.s32 %v1433_v50, %v177_v49  ;;  %v3352_v59 = vsub.s32 0, %v177_v49 }
   0x6   :  { %3002 = vmatpush3.bf16.xpose.msk.msra.mxu1 %vm3197_vm1, %v2997_v8  ;;  %2881 = vmatprep.mubr.msk.f32.mxu1 %vm61_vm0, %v26_v17  ;;  %v2982_v21 = vpack.c.bf16 %v54_v20, %v53_v19  ;;  %v44_v23 = vld [vmem:[%s4302_s3 + $0x38] sm:$0xff]  ;;  %v55_v25 = vld [vmem:[%s4301_s4 + $0x30] sm:$0xff]  ;;  %v45_v28 = vld [vmem:[%s4302_s3 + $0x40] sm:$0xff]  ;;  %v3349_v55 = vsub.s32 %v175_v54, %v177_v49 }
   0x7   :  { %3005 = vmatprep.subr.msk.bf16.mxu1 %vm3197_vm1, %v3003_v11  ;;  %v3015_v24 = vpack.c.bf16 %v44_v23, %v43_v22  ;;  %v56_v26 = vld [vmem:[%s4301_s4 + $0x38] sm:$0xff]  ;;  %v46_v29 = vld [vmem:[%s4302_s3 + $0x48] sm:$0xff]  ;;  %v57_v31 = vld [vmem:[%s4301_s4 + $0x40] sm:$0xff]  ;;  %4319 = vst [vmem:[#allocation2_spill] sm:$0xff] %v3352_v59 }
   0x8   :  { %v2986_v27 = vpack.c.bf16 %v56_v26, %v55_v25  ;;  %v3021_v30 = vpack.c.bf16 %v46_v29, %v45_v28  ;;  %v58_v32 = vld [vmem:[%s4301_s4 + $0x48] sm:$0xff]  ;;  %v47_v34 = vld [vmem:[%s4302_s3 + $0x50] sm:$0xff]  ;;  %v48_v35 = vld [vmem:[%s4302_s3 + $0x58] sm:$0xff] }
   0x9   :  { %v2990_v33 = vpack.c.bf16 %v58_v32, %v57_v31  ;;  %v3027_v36 = vpack.c.bf16 %v48_v35, %v47_v34  ;;  %v59_v37 = vld [vmem:[%s4301_s4 + $0x50] sm:$0xff]  ;;  %v60_v38 = vld [vmem:[%s4301_s4 + $0x58] sm:$0xff]  ;;  %v34_v40 = vld [vmem:[%s4304_s1] sm:$0xff] }
   0xa   :  { %v2994_v39 = vpack.c.bf16 %v60_v38, %v59_v37  ;;  %v27_v41 = vld [vmem:[%s4303_s0 + $0x8] sm:$0xff]  ;;  %v28_v42 = vld [vmem:[%s4303_s0 + $0x10] sm:$0xff]  ;;  %v29_v43 = vld [vmem:[%s4303_s0 + $0x18] sm:$0xff] }
   0xb   :  { %v30_v44 = vld [vmem:[%s4303_s0 + $0x20] sm:$0xff]  ;;  %v31_v45 = vld [vmem:[%s4303_s0 + $0x28] sm:$0xff]  ;;  %v32_v46 = vld [vmem:[%s4303_s0 + $0x30] sm:$0xff] }
   0xc   :  { %2980 = vmatpush3.bf16.xpose.msk.msra.mxu0 %vm3197_vm1, %v2978_v14  ;;  %v33_v47 = vld [vmem:[%s4303_s0 + $0x38] sm:$0xff]  ;;  %v3357_v61 = vld [vmem:[%s4305_s5] sm:$0x1]  ;;  %s3143_s5 = smov 96  }
   0xd   :  { %2981 = vmatprep.subr.bf16.mxu0 %v3139_v0  ;;  %v3363_v3 = vrot.slane %v3357_v61, %v3352_v59 }
   0xe   :  { %3008 = vmatpush3.bf16.xpose.msk.msra.mxu1 %vm3197_vm1, %v3003_v11 }
   0xf   :  { %3011 = vmatprep.subr.msk.bf16.mxu1 %vm3197_vm1, %v3009_v18 }
  0x14   :  { %2984 = vmatpush3.bf16.xpose.msk.msra.mxu0 %vm3197_vm1, %v2982_v21 }
  0x15   :  { %2985 = vmatprep.subr.bf16.mxu0 %v3139_v0 }
  0x16   :  { %3014 = vmatpush3.bf16.xpose.msk.msra.mxu1 %vm3197_vm1, %v3009_v18 }
  0x17   :  { %3017 = vmatprep.subr.msk.bf16.mxu1 %vm3197_vm1, %v3015_v24 }
  0x1c   :  { %2988 = vmatpush3.bf16.xpose.msk.msra.mxu0 %vm3197_vm1, %v2986_v27 }
  0x1d   :  { %2989 = vmatprep.subr.bf16.mxu0 %v3139_v0 }
  0x1e   :  { %3020 = vmatpush3.bf16.xpose.msk.msra.mxu1 %vm3197_vm1, %v3015_v24 }
  0x1f   :  { %3023 = vmatprep.subr.msk.bf16.mxu1 %vm3197_vm1, %v3021_v30 }
  0x24   :  { %2992 = vmatpush3.bf16.xpose.msk.msra.mxu0 %vm3197_vm1, %v2990_v33 }
  0x25   :  { %2993 = vmatprep.subr.bf16.mxu0 %v3139_v0 }
  0x26   :  { %3026 = vmatpush3.bf16.xpose.msk.msra.mxu1 %vm3197_vm1, %v3021_v30 }
  0x27   :  { %3029 = vmatprep.subr.msk.bf16.mxu1 %vm3197_vm1, %v3027_v36 }
  0x2c   :  { %2996 = vmatpush3.bf16.xpose.msk.msra.mxu0 %vm3197_vm1, %v2994_v39 }
  0x2d   :  { %2893 = vmatprep.subr.mxu0 %v3141_v4 }
  0x2e   :  { %3032 = vmatpush3.bf16.xpose.msk.msra.mxu1 %vm3197_vm1, %v3027_v36 }
  0x2f   :  { %2913 = vmatprep.subr.mxu1 %v3141_v4 }
  0x33   :  { %2855 = vmatmul.mubr.msk.f32.vlgmr.msra.gmra.mrb[0].mxu0 %vm61_vm0, %v34_v40 }
  0x34   :  { %2895 = vmatprep.mubr.msk.f32.mxu0 %vm3140_vm2, %v3141_v4 }
  0x35   :  { %2882 = vmatmul.mubr.msk.f32.vlgmr.msra.gmra.mrb[0].mxu1 %vm61_vm0, %v27_v41 }
  0x36   :  { %2884 = vmatprep.mubr.msk.f32.mxu1 %vm61_vm0, %v28_v42 }
  0x39   :  { %2885 = vmatmul.mubr.msk.f32.gmra.mrb[2].mxu1 %vm61_vm0, %v29_v43 }
  0x3a   :  { %2887 = vmatprep.mubr.msk.f32.mxu1 %vm61_vm0, %v30_v44 }
  0x3d   :  { %2888 = vmatmul.mubr.msk.f32.gmra.mrb[4].mxu1 %vm61_vm0, %v31_v45 }
  0x3e   :  { %2890 = vmatprep.mubr.msk.f32.mxu1 %vm61_vm0, %v32_v46 }
  0x41   :  { %2891 = vmatmul.mubr.msk.f32.gmra.mrb[6].mxu1 %vm61_vm0, %v33_v47 }
  0x42   :  { %2915 = vmatprep.mubr.msk.f32.mxu1 %vm3140_vm2, %v3141_v4 }
 0x106   :  { %v167_v56 = vpop.f32.mrb[0].mxu0 }
 0x107   :  { %v172_v57 = vcombine.high %v167_v56, %v167_v56  ;;  %v179_v58 = vrot.slane %v167_v56, %v3349_v55  ;;  %v2856_v60 = vpop.f32.mrb[1].mxu0 }
 0x108   :  { %v2883_v62 = vpop.f32.mrb[0].mxu1 }
 0x109   :  { %v186_v63 = vrot.slane %v172_v57, %v3349_v55  ;;  %v187_v0 = vcombine.high %v179_v58, %v179_v58  ;;  %v195_v1 = vrot.slane %v179_v58, %v3349_v55  ;;  %v387_v2 = vpop.f32.mrb[1].mxu1 }
 0x10b   :  { %v188_v5 = vcombine.high %v186_v63, %v186_v63  ;;  %v209_v6 = vrot.slane %v187_v0, %v3349_v55  ;;  %v224_v7 = vrot.slane %v195_v1, %v3352_v59  ;;  %v217_v8 = vcombine.high %v195_v1, %v195_v1 }
 0x10c   :  { %v2886_v9 = vpop.f32.mrb[2].mxu1  ;;  %v202_v10 = vrot.slane %v186_v63, %v3349_v55 }
 0x10d   :  { %v228_v11 = vrot.slane %v209_v6, %v3352_v59  ;;  %v388_v12 = vadd.f32 %v387_v2, %v224_v7  ;;  %v219_v13 = vcombine.high %v209_v6, %v209_v6  ;;  %v232_v14 = vrot.slane %v217_v8, %v3352_v59  ;;  %v397_v15 = vpop.f32.mrb[3].mxu1 }
 0x10e   :  { %v216_v16 = vrot.slane %v188_v5, %v3349_v55  ;;  %v240_v23 = vrot.slane %v202_v10, %v3352_v59  ;;  %v218_v25 = vcombine.high %v202_v10, %v202_v10 }
 0x10f   :  { %v393_v17 = vadd.f32 %v2883_v62, %v228_v11  ;;  %v3372_v18 = vadd.f32 %v3363_v3, %v388_v12  ;;  %v236_v19 = vrot.slane %v219_v13, %v3352_v59  ;;  %v398_v20 = vadd.f32 %v397_v15, %v232_v14 }
 0x110   :  { %v244_v21 = vrot.slane %v216_v16, %v3352_v59  ;;  %v2889_v22 = vpop.f32.mrb[4].mxu1  ;;  %v220_v24 = vcombine.high %v216_v16, %v216_v16  ;;  %v248_v33 = vrot.slane %v218_v25, %v3352_v59 }
 0x111   :  { %v403_v26 = vadd.f32 %v2886_v9, %v236_v19  ;;  %v3378_v27 = vadd.f32 %v3363_v3, %v398_v20  ;;  %v407_v28 = vpop.f32.mrb[5].mxu1  ;;  %443 = vrot.lane.b32.xlu0 %v3372_v18, %s3143_s5  ;;  %v3387_v34 = vadd.f32 %v3363_v3, %v393_v17 }
 0x112   :  { %v413_v29 = vadd.f32 %v2889_v22, %v244_v21  ;;  %v408_v30 = vadd.f32 %v407_v28, %v240_v23  ;;  %v252_v31 = vrot.slane %v220_v24, %v3352_v59  ;;  %v3547_v21 = vld [vmem:[%s4306_s6] sm:$0x1]  ;;  %s3147_s6 = smov 48  }
 0x113   :  { %597 = vrot.lane.b32.xlu1 %v3378_v27, %s3143_s5  ;;  %v3396_v38 = vadd.f32 %v3363_v3, %v403_v26  ;;  %v1340_v22 = vrot.slane %v3547_v21, %v3352_v59 }
 0x114   :  { %v2892_v32 = vpop.f32.mrb[6].mxu1  ;;  %v3403_v39 = vadd.f32 %v3363_v3, %v413_v29  ;;  %v3407_v40 = vadd.f32 %v3363_v3, %v408_v30 }
 0x115   :  { %v423_v35 = vadd.f32 %v2892_v32, %v252_v31  ;;  %v417_v36 = vpop.f32.mrb[7].mxu1  ;;  %1607 = vrot.lane.b32.xlu0 %v3372_v18, %s3144_s19 }
 0x116   :  { %v418_v37 = vadd.f32 %v417_v36, %v248_v33 }
 0x117   :  { %1685 = vrot.lane.b32.xlu1 %v3387_v34, %s3144_s19  ;;  %v3418_v42 = vadd.f32 %v3363_v3, %v423_v35 }
 0x118   :  { %v3414_v41 = vadd.f32 %v3363_v3, %v418_v37 }
 0x119   :  { %520 = vrot.lane.b32.xlu0 %v3387_v34, %s3143_s5 }
 0x11b   :  { %1683 = vrot.lane.b32.xlu1 %v3387_v34, %s3145_s20 }
 0x11d   :  { %1605 = vrot.lane.b32.xlu0 %v3372_v18, %s3145_s20 }
 0x11f   :  { %674 = vrot.lane.b32.xlu1 %v3396_v38, %s3143_s5 }
 0x121   :  { %1763 = vrot.lane.b32.xlu0 %v3378_v27, %s3144_s19 }
 0x123   :  { %828 = vrot.lane.b32.xlu1 %v3403_v39, %s3143_s5 }
 0x125   :  { %751 = vrot.lane.b32.xlu0 %v3407_v40, %s3143_s5 }
 0x127   :  { %1841 = vrot.lane.b32.xlu1 %v3396_v38, %s3144_s19 }
 0x129   :  { %905 = vrot.lane.b32.xlu0 %v3414_v41, %s3143_s5 }
 0x12b   :  { %982 = vrot.lane.b32.xlu1 %v3418_v42, %s3143_s5 }
 0x12d   :  { %1761 = vrot.lane.b32.xlu0 %v3378_v27, %s3145_s20 }
 0x12f   :  { %1839 = vrot.lane.b32.xlu1 %v3396_v38, %s3145_s20 }
 0x131   :  { %1919 = vrot.lane.b32.xlu0 %v3407_v40, %s3144_s19 }
 0x133   :  { %1997 = vrot.lane.b32.xlu1 %v3403_v39, %s3144_s19 }
 0x135   :  { %1917 = vrot.lane.b32.xlu0 %v3407_v40, %s3145_s20 }
 0x137   :  { %1995 = vrot.lane.b32.xlu1 %v3403_v39, %s3145_s20 }
 0x139   :  { %2075 = vrot.lane.b32.xlu0 %v3414_v41, %s3144_s19 }
 0x13b   :  { %2153 = vrot.lane.b32.xlu1 %v3418_v42, %s3144_s19 }
 0x13d   :  { %2073 = vrot.lane.b32.xlu0 %v3414_v41, %s3145_s20 }
 0x13f   :  { %2151 = vrot.lane.b32.xlu1 %v3418_v42, %s3145_s20 }
 0x141   :  { %1180 = vrot.lane.b32.xlu0 %v3363_v3, %s3143_s5 }
 0x183   :  { %v444_v43 = vpop.permute.xlu0 %443 }
 0x184   :  { %2894 = vmatpush3.xpose.msk.msra.mxu0 %vm61_vm0, %v444_v43 }
 0x185   :  { %v598_v44 = vpop.permute.xlu1 %597  ;;  %2898 = vmatprep.subr.mxu0 %v3141_v4 }
 0x187   :  { %2896 = vmatmul.mubr.msk.f32.vlgmr.msra.gmra.mrb[2].mxu0 %vm61_vm0, %v3372_v18  ;;  %v1608_v45 = vpop.permute.xlu0 %1607 }
 0x188   :  { %2900 = vmatprep.mubr.msk.f32.mxu0 %vm3140_vm2, %v3141_v4 }
 0x189   :  { %v1686_v46 = vpop.permute.xlu1 %1685 }
 0x18b   :  { %v521_v47 = vpop.permute.xlu0 %520 }
 0x18c   :  { %2899 = vmatpush3.xpose.msk.msra.mxu0 %vm61_vm0, %v521_v47 }
 0x18d   :  { %v1684_v48 = vpop.permute.xlu1 %1683  ;;  %2903 = vmatprep.subr.mxu0 %v3141_v4 }
 0x18f   :  { %2901 = vmatmul.mubr.msk.f32.vlgmr.msra.gmra.mrb[4].mxu0 %vm61_vm0, %v3387_v34  ;;  %v1606_v49 = vpop.permute.xlu0 %1605 }
 0x190   :  { %2904 = vmatpush3.xpose.msk.msra.mxu0 %vm61_vm0, %v598_v44  ;;  %2905 = vmatprep.mubr.msk.f32.mxu0 %vm3140_vm2, %v3141_v4 }
 0x191   :  { %v675_v50 = vpop.permute.xlu1 %674  ;;  %2908 = vmatprep.subr.mxu0 %v3141_v4 }
 0x193   :  { %2906 = vmatmul.mubr.msk.f32.vlgmr.msra.gmra.mrb[6].mxu0 %vm61_vm0, %v3378_v27  ;;  %v1764_v52 = vpop.permute.xlu0 %1763 }
 0x194   :  { %2909 = vmatpush3.xpose.msk.msra.mxu0 %vm61_vm0, %v675_v50  ;;  %2910 = vmatprep.mubr.msk.f32.mxu0 %vm3140_vm2, %v3141_v4 }
 0x195   :  { %v829_v53 = vpop.permute.xlu1 %828  ;;  %2918 = vmatprep.subr.mxu0 %v3141_v4 }
 0x197   :  { %2911 = vmatmul.mubr.msk.f32.vlgmr.msra.gmra.mrb[8].mxu0 %vm61_vm0, %v3396_v38  ;;  %v752_v54 = vpop.permute.xlu0 %751 }
 0x198   :  { %2914 = vmatpush3.xpose.msk.msra.mxu1 %vm61_vm0, %v752_v54  ;;  %2919 = vmatpush3.xpose.msk.msra.mxu0 %vm61_vm0, %v829_v53 }
 0x199   :  { %v1842_v56 = vpop.permute.xlu1 %1841  ;;  %2920 = vmatprep.mubr.msk.f32.mxu0 %vm3140_vm2, %v3141_v4  ;;  %2923 = vmatprep.subr.mxu1 %v3141_v4 }
 0x19a   :  { %2928 = vmatprep.subr.mxu0 %v3141_v4 }
 0x19b   :  { %2916 = vmatmul.mubr.msk.f32.vlgmr.msra.gmra.mrb[8].mxu1 %vm61_vm0, %v3407_v40  ;;  %2921 = vmatmul.mubr.msk.f32.vlgmr.msra.gmra.mrb[10].mxu0 %vm61_vm0, %v3403_v39  ;;  %v906_v57 = vpop.permute.xlu0 %905 }
 0x19c   :  { %2924 = vmatpush3.xpose.msk.msra.mxu1 %vm61_vm0, %v906_v57  ;;  %2925 = vmatprep.mubr.msk.f32.mxu1 %vm3140_vm2, %v3141_v4 }
 0x19d   :  { %v983_v58 = vpop.permute.xlu1 %982  ;;  %2933 = vmatprep.subr.mxu1 %v3141_v4  ;;  %2930 = vmatprep.mubr.msk.f32.mxu0 %vm3140_vm2, %v3141_v4 }
 0x19e   :  { %2929 = vmatpush3.xpose.msk.msra.mxu0 %vm61_vm0, %v983_v58 }
 0x19f   :  { %2926 = vmatmul.mubr.msk.f32.vlgmr.msra.gmra.mrb[10].mxu1 %vm61_vm0, %v3414_v41  ;;  %v1762_v60 = vpop.permute.xlu0 %1761  ;;  %2938 = vmatprep.subr.mxu0 %v3141_v4 }
 0x1a0   :  { %2934 = vmatpush3.xpose.msk.msra.mxu1 %vm61_vm0, %v1608_v45  ;;  %2935 = vmatprep.mubr.msk.f32.mxu1 %vm3140_vm2, %v3141_v4 }
 0x1a1   :  { %v1840_v62 = vpop.permute.xlu1 %1839  ;;  %2931 = vmatmul.mubr.msk.f32.vlgmr.msra.gmra.mrb[12].mxu0 %vm61_vm0, %v3418_v42  ;;  %2943 = vmatprep.subr.mxu1 %v3141_v4 }
 0x1a2   :  { %2939 = vmatpush3.xpose.msk.msra.mxu0 %vm61_vm0, %v1686_v46  ;;  %2940 = vmatprep.mubr.msk.f32.mxu0 %vm3140_vm2, %v3141_v4 }
 0x1a3   :  { %2936 = vmatmul.mubr.msk.f32.vlgmr.msra.gmra.mrb[12].mxu1 %vm61_vm0, %v1606_v49  ;;  %v1920_v63 = vpop.permute.xlu0 %1919  ;;  %2948 = vmatprep.subr.mxu0 %v3141_v4 }
 0x1a4   :  { %2944 = vmatpush3.xpose.msk.msra.mxu1 %vm61_vm0, %v1764_v52  ;;  %2945 = vmatprep.mubr.msk.f32.mxu1 %vm3140_vm2, %v3141_v4 }
 0x1a5   :  { %v1998_v0 = vpop.permute.xlu1 %1997  ;;  %2941 = vmatmul.mubr.msk.f32.vlgmr.msra.gmra.mrb[14].mxu0 %vm61_vm0, %v1684_v48  ;;  %2953 = vmatprep.subr.mxu1 %v3141_v4 }
 0x1a6   :  { %2949 = vmatpush3.xpose.msk.msra.mxu0 %vm61_vm0, %v1842_v56  ;;  %2950 = vmatprep.mubr.msk.f32.mxu0 %vm3140_vm2, %v3141_v4 }
 0x1a7   :  { %2946 = vmatmul.mubr.msk.f32.vlgmr.msra.gmra.mrb[14].mxu1 %vm61_vm0, %v1762_v60  ;;  %v1918_v1 = vpop.permute.xlu0 %1917  ;;  %2958 = vmatprep.subr.mxu0 %v3141_v4 }
 0x1a8   :  { %2954 = vmatpush3.xpose.msk.msra.mxu1 %vm61_vm0, %v1920_v63  ;;  %2955 = vmatprep.mubr.msk.f32.mxu1 %vm3140_vm2, %v3141_v4 }
 0x1a9   :  { %v1996_v2 = vpop.permute.xlu1 %1995  ;;  %2951 = vmatmul.mubr.msk.f32.vlgmr.msra.gmra.mrb[16].mxu0 %vm61_vm0, %v1840_v62  ;;  %2963 = vmatprep.subr.mxu1 %v3141_v4 }
 0x1aa   :  { %2959 = vmatpush3.xpose.msk.msra.mxu0 %vm61_vm0, %v1998_v0  ;;  %2960 = vmatprep.mubr.msk.f32.mxu0 %vm3140_vm2, %v3141_v4 }
 0x1ab   :  { %2956 = vmatmul.mubr.msk.f32.vlgmr.msra.gmra.mrb[16].mxu1 %vm61_vm0, %v1918_v1  ;;  %v2076_v3 = vpop.permute.xlu0 %2075  ;;  %2968 = vmatprep.subr.mxu0 %v3141_v4 }
 0x1ac   :  { %2964 = vmatpush3.xpose.msk.msra.mxu1 %vm61_vm0, %v2076_v3  ;;  %2965 = vmatprep.mubr.msk.f32.mxu1 %vm3140_vm2, %v3141_v4 }
 0x1ad   :  { %v2154_v5 = vpop.permute.xlu1 %2153  ;;  %2961 = vmatmul.mubr.msk.f32.vlgmr.msra.gmra.mrb[18].mxu0 %vm61_vm0, %v1996_v2 }
 0x1ae   :  { %2969 = vmatpush3.xpose.msk.msra.mxu0 %vm61_vm0, %v2154_v5  ;;  %2970 = vmatprep.mubr.msk.f32.mxu0 %vm3140_vm2, %v3141_v4 }
 0x1af   :  { %v2074_v6 = vpop.permute.xlu0 %2073 }
 0x1b0   :  { %2966 = vmatmul.mubr.msk.f32.vlgmr.msra.gmra.mrb[18].mxu1 %vm61_vm0, %v2074_v6 }
 0x1b1   :  { %v2152_v7 = vpop.permute.xlu1 %2151 }
 0x1b2   :  { %2971 = vmatmul.mubr.msk.f32.vlgmr.msra.gmra.mrb[20].mxu0 %vm61_vm0, %v2152_v7 }
 0x1b3   :  { %v3524_v8 = vpop.permute.xlu0 %1180 }
 0x1b4   :  { %v1184_v9 = vmul.f32 %v3524_v8, %v3387_v34  ;;  %v1183_v10 = vmul.f32 %v3524_v8, %v3372_v18  ;;  %v1185_v4 = vmul.f32 %v3524_v8, %v3378_v27  ;;  %v1186_v13 = vmul.f32 %v3524_v8, %v3396_v38 }
 0x1b5   :  { %v1187_v16 = vmul.f32 %v3524_v8, %v3407_v40  ;;  %v1188_v17 = vmul.f32 %v3524_v8, %v3403_v39  ;;  %v1189_v0 = vmul.f32 %v3524_v8, %v3414_v41 }
 0x1b6   :  { %v1194_v11 = vsel %vm61_vm0, %v1184_v9, 0.0  ;;  %v1191_v12 = vsel %vm61_vm0, %v1183_v10, 0.0  ;;  %v1197_v14 = vsel %vm61_vm0, %v1185_v4, 0.0  ;;  %v1200_v15 = vsel %vm61_vm0, %v1186_v13, 0.0 }
 0x1b7   :  { %1195 = vadd.xlane.f32.xlu0 %v1194_v11  ;;  %1192 = vadd.xlane.f32.xlu1 %v1191_v12  ;;  %v1203_v19 = vsel %vm61_vm0, %v1187_v16, 0.0  ;;  %v1206_v20 = vsel %vm61_vm0, %v1188_v17, 0.0  ;;  %v1209_v6 = vsel %vm61_vm0, %v1189_v0, 0.0 }
 0x1bb   :  { %1198 = vadd.xlane.f32.xlu0 %v1197_v14  ;;  %1201 = vadd.xlane.f32.xlu1 %v1200_v15 }
 0x1bf   :  { %1204 = vadd.xlane.f32.xlu0 %v1203_v19  ;;  %1207 = vadd.xlane.f32.xlu1 %v1206_v20 }
 0x1d5   :  { %1341 = vrot.lane.b32.xlu0 %v1340_v22, %s3146_s23 }
 0x244   :  { %v3552_v23 = vpop.xlane.xlu0 %1195  ;;  %v3627_v12 = vpop.xlane.xlu1 %1192 }
 0x248   :  { %v3554_v24 = vpop.xlane.xlu0 %1198 }
 0x24c   :  { %v3556_v25 = vpop.xlane.xlu0 %1204 }
 0x250   :  { %v1342_v26 = vpop.permute.xlu0 %1341 }
 0x251   :  { %v1346_v28 = vmul.f32 %v1342_v26, %v3378_v27  ;;  %v1344_v29 = vmul.f32 %v1342_v26, %v3372_v18  ;;  %v1348_v30 = vmul.f32 %v1342_v26, %v3407_v40  ;;  %v1345_v31 = vmul.f32 %v1342_v26, %v3387_v34 }
 0x252   :  { %v1347_v32 = vmul.f32 %v1342_v26, %v3396_v38  ;;  %v1351_v18 = vmul.f32 %v1342_v26, %v3418_v42  ;;  %v1349_v27 = vmul.f32 %v1342_v26, %v3403_v39  ;;  %v1350_v34 = vmul.f32 %v1342_v26, %v3414_v41 }
 0x253   :  { %1364 = vrot.lane.b32.xlu0 %v1346_v28, %s3146_s23  ;;  %1360 = vrot.lane.b32.xlu1 %v1344_v29, %s3146_s23  ;;  %v1190_v41 = vmul.f32 %v3524_v8, %v3418_v42 }
 0x257   :  { %1368 = vrot.lane.b32.xlu0 %v1348_v30, %s3146_s23  ;;  %1362 = vrot.lane.b32.xlu1 %v1345_v31, %s3146_s23 }
 0x25a   :  { %v3567_v33 = vpop.f32.mrb[2].mxu0 }
 0x25b   :  { %v2897_v35 = vpop.f32.mrb[3].mxu0  ;;  %2421 = vrot.lane.b32.xlu0 %v1344_v29, %s3147_s6  ;;  %1366 = vrot.lane.b32.xlu1 %v1347_v32, %s3146_s23 }
 0x25f   :  { %2435 = vrot.lane.b32.xlu0 %v1351_v18, %s3147_s6  ;;  %1370 = vrot.lane.b32.xlu1 %v1349_v27, %s3146_s23 }
 0x262   :  { %v3576_v36 = vpop.f32.mrb[4].mxu0 }
 0x263   :  { %v2902_v37 = vpop.f32.mrb[5].mxu0  ;;  %1372 = vrot.lane.b32.xlu0 %v1350_v34, %s3146_s23  ;;  %2253 = vrot.lane.b32.xlu1 %v1183_v10, %s3145_s20 }
 0x266   :  { %v3580_v38 = vpop.f32.mrb[6].mxu0 }
 0x267   :  { %v2907_v40 = vpop.f32.mrb[7].mxu0  ;;  %2255 = vrot.lane.b32.xlu1 %v1184_v9, %s3145_s20 }
 0x26a   :  { %v3583_v43 = vpop.f32.mrb[8].mxu0 }
 0x26b   :  { %v2912_v39 = vpop.f32.mrb[9].mxu0  ;;  %2257 = vrot.lane.b32.xlu1 %v1185_v4, %s3145_s20  ;;  %v1212_v4 = vsel %vm61_vm0, %v1190_v41, 0.0 }
 0x26e   :  { %v3586_v44 = vpop.f32.mrb[8].mxu1  ;;  %v3588_v45 = vpop.f32.mrb[10].mxu0 }
 0x26f   :  { %v2917_v46 = vpop.f32.mrb[9].mxu1  ;;  %v2922_v47 = vpop.f32.mrb[11].mxu0  ;;  %2259 = vrot.lane.b32.xlu1 %v1186_v13, %s3145_s20 }
 0x270   :  { %v3630_v13 = vpop.xlane.xlu1 %1201 }
 0x272   :  { %v3591_v48 = vpop.f32.mrb[10].mxu1 }
 0x273   :  { %v2927_v49 = vpop.f32.mrb[11].mxu1  ;;  %2261 = vrot.lane.b32.xlu1 %v1187_v16, %s3145_s20 }
 0x274   :  { %v3594_v50 = vpop.f32.mrb[12].mxu0  ;;  %v3632_v14 = vpop.xlane.xlu1 %1207 }
 0x275   :  { %v2932_v52 = vpop.f32.mrb[13].mxu0 }
 0x276   :  { %v3596_v53 = vpop.f32.mrb[12].mxu1 }
 0x277   :  { %v2937_v54 = vpop.f32.mrb[13].mxu1  ;;  %2263 = vrot.lane.b32.xlu1 %v1188_v17, %s3145_s20 }
 0x278   :  { %v3599_v56 = vpop.f32.mrb[14].mxu0 }
 0x279   :  { %v2942_v57 = vpop.f32.mrb[15].mxu0 }
 0x27a   :  { %v3601_v58 = vpop.f32.mrb[14].mxu1 }
 0x27b   :  { %v2947_v60 = vpop.f32.mrb[15].mxu1  ;;  %2423 = vrot.lane.b32.xlu1 %v1345_v31, %s3147_s6 }
 0x27c   :  { %v3604_v62 = vpop.f32.mrb[16].mxu0 }
 0x27d   :  { %v2952_v63 = vpop.f32.mrb[17].mxu0 }
 0x27e   :  { %v3608_v1 = vpop.f32.mrb[16].mxu1 }
 0x27f   :  { %v2957_v2 = vpop.f32.mrb[17].mxu1  ;;  %2425 = vrot.lane.b32.xlu1 %v1346_v28, %s3147_s6 }
 0x280   :  { %v3611_v3 = vpop.f32.mrb[18].mxu0 }
 0x281   :  { %v2962_v5 = vpop.f32.mrb[19].mxu0 }
 0x282   :  { %1210 = vadd.xlane.f32.xlu0 %v1209_v6 }
 0x283   :  { %v3614_v7 = vpop.f32.mrb[18].mxu1  ;;  %2427 = vrot.lane.b32.xlu1 %v1347_v32, %s3147_s6 }
 0x284   :  { %v2967_v9 = vpop.f32.mrb[19].mxu1 }
 0x285   :  { %v3617_v10 = vpop.f32.mrb[20].mxu0 }
 0x286   :  { %v2972_v11 = vpop.f32.mrb[21].mxu0 }
 0x287   :  { %2429 = vrot.lane.b32.xlu1 %v1348_v30, %s3147_s6 }
 0x28b   :  { %2431 = vrot.lane.b32.xlu1 %v1349_v27, %s3147_s6 }
 0x28f   :  { %1408 = vrot.lane.b32.xlu1 %v3547_v21, %s3146_s23 }
 0x293   :  { %1374 = vrot.lane.b32.xlu1 %v1351_v18, %s3146_s23 }
 0x297   :  { %2267 = vrot.lane.b32.xlu1 %v1190_v41, %s3145_s20 }
 0x2bb   :  { %1213 = vadd.xlane.f32.xlu1 %v1212_v4 }
 0x2c5   :  { %v1361_v15 = vpop.permute.xlu1 %1360  ;;  %v1365_v31 = vpop.permute.xlu0 %1364 }
 0x2c6   :  { %v1384_v16 = vsel %vm61_vm0, %v1361_v15, 0.0  ;;  %v1390_v57 = vsel %vm61_vm0, %v1365_v31, 0.0 }
 0x2c7   :  { %1385 = vadd.xlane.f32.xlu0 %v1384_v16 }
 0x2c9   :  { %v1363_v17 = vpop.permute.xlu1 %1362  ;;  %v1369_v18 = vpop.permute.xlu0 %1368 }
 0x2ca   :  { %v1387_v19 = vsel %vm61_vm0, %v1363_v17, 0.0  ;;  %v1396_v15 = vsel %vm61_vm0, %v1369_v18, 0.0 }
 0x2cb   :  { %1388 = vadd.xlane.f32.xlu0 %v1387_v19 }
 0x2cc   :  { %2265 = vrot.lane.b32.xlu1 %v1189_v0, %s3145_s20 }
 0x2cd   :  { %v1367_v42 = vpop.permute.xlu1 %1366  ;;  %v2422_v39 = vpop.permute.xlu0 %2421 }
 0x2ce   :  { %v2445_v49 = vsel %vm61_vm0, %v2422_v39, 0.0  ;;  %v1393_v41 = vsel %vm61_vm0, %v1367_v42, 0.0  ;;  %v3148_v42 = vmov 0  }
 0x2d0   :  { %2433 = vrot.lane.b32.xlu1 %v1350_v34, %s3147_s6 }
 0x2d1   :  { %v1371_v8 = vpop.permute.xlu1 %1370  ;;  %v2436_v5 = vpop.permute.xlu0 %2435 }
 0x2d2   :  { %v2466_v11 = vsel %vm61_vm0, %v2436_v5, 0.0  ;;  %v1399_v16 = vsel %vm61_vm0, %v1371_v8, 0.0 }
 0x2d5   :  { %v2254_v20 = vpop.permute.xlu1 %2253 }
 0x2d6   :  { %v2277_v40 = vsel %vm61_vm0, %v2254_v20, 0.0 }
 0x2d9   :  { %v2256_v21 = vpop.permute.xlu1 %2255 }
 0x2da   :  { %v2280_v22 = vsel %vm61_vm0, %v2256_v21, 0.0  ;;  %v35_v21 = vld [vmem:[%s4307_s2] sm:$0xff] }
 0x2db   :  { %2281 = vadd.xlane.f32.xlu0 %v2280_v22  ;;  %vm36_vm3 = vcmp.gt.f32.partialorder %v35_v21, 0.5 }
 0x2dc   :  { %v1066_v22 = vsel %vm36_vm3, 1, %v3148_v42 }
 0x2dd   :  { %v2258_v26 = vpop.permute.xlu1 %2257  ;;  %v1067_v8 = vcombine.high %v1066_v22, %v1066_v22 }
 0x2de   :  { %v2283_v28 = vsel %vm61_vm0, %v2258_v26, 0.0  ;;  %v1074_v26 = vrot.slane %v1066_v22, %v3349_v55  ;;  %v2234_v22 = vmul.f32 0.25, %v3611_v3 }
 0x2df   :  { %2284 = vadd.xlane.f32.xlu0 %v2283_v28  ;;  %v1081_v31 = vrot.slane %v1067_v8, %v3349_v55 }
 0x2e0   :  { %v1082_v28 = vcombine.high %v1074_v26, %v1074_v26 }
 0x2e1   :  { %v2260_v29 = vpop.permute.xlu1 %2259  ;;  %v1083_v18 = vcombine.high %v1081_v31, %v1081_v31 }
 0x2e2   :  { %v2286_v47 = vsel %vm61_vm0, %v2260_v29, 0.0  ;;  %v1104_v29 = vrot.slane %v1082_v28, %v3349_v55 }
 0x2e4   :  { %vm1117_vm5 = vcmp.ne.s32.totalorder %v1104_v29, 0 }
 0x2e5   :  { %v2262_v30 = vpop.permute.xlu1 %2261 }
 0x2e6   :  { %v2289_v0 = vsel %vm61_vm0, %v2262_v30, 0.0  ;;  %v1090_v30 = vrot.slane %v1074_v26, %v3349_v55 }
 0x2e8   :  { %vm1116_vm4 = vcmp.ne.s32.totalorder %v1090_v30, 0 }
 0x2e9   :  { %v2264_v32 = vpop.permute.xlu1 %2263 }
 0x2ea   :  { %v2292_v6 = vsel %vm61_vm0, %v2264_v32, 0.0  ;;  %v1114_v32 = vcombine.high %v1104_v29, %v1104_v29  ;;  %v1060_v29 = vmul.f32 0.25, %v3580_v38 }
 0x2ec   :  { %vm1119_vm6 = vcmp.ne.s32.totalorder %v1114_v32, 0 }
 0x2ed   :  { %v2424_v35 = vpop.permute.xlu1 %2423 }
 0x2ee   :  { %v2448_v27 = vsel %vm61_vm0, %v2424_v35, 0.0  ;;  %v1097_v35 = vrot.slane %v1081_v31, %v3349_v55  ;;  %v2229_v31 = vmul.f32 0.25, %v3596_v53 }
 0x2ef   :  { %2449 = vadd.xlane.f32.xlu0 %v2448_v27  ;;  %v1124_v27 = vsel %vm1116_vm4, 1, %v3148_v42 }
 0x2f0   :  { %vm1120_vm7 = vcmp.ne.s32.totalorder %v1097_v35, 0  ;;  %v1135_v39 = vrot.slane %v1124_v27, %v3352_v59 }
 0x2f1   :  { %v2426_v34 = vpop.permute.xlu1 %2425 }
 0x2f2   :  { %v2451_v37 = vsel %vm61_vm0, %v2426_v34, 0.0  ;;  %vm3681_vm9 = vcmp.eq.s32.totalorder %v1135_v39, 1  ;;  %v1064_v39 = vmul.f32 0.25, %v3591_v48 }
 0x2f3   :  { %2452 = vadd.xlane.f32.xlu0 %v2451_v37  ;;  %v1125_v37 = vsel %vm1117_vm5, 1, %v3148_v42  ;;  %vm1420_vm5 = vcmask 122880  }
 0x2f4   :  { %2278 = vadd.xlane.f32.xlu1 %v2277_v40  ;;  %v1112_v40 = vcombine.high %v1090_v30, %v1090_v30 }
 0x2f5   :  { %v2428_v46 = vpop.permute.xlu1 %2427 }
 0x2f6   :  { %v2454_v54 = vsel %vm61_vm0, %v2428_v46, 0.0  ;;  %v1139_v46 = vrot.slane %v1125_v37, %v3352_v59  ;;  %vm1118_vm8 = vcmp.ne.s32.totalorder %v1112_v40, 0  ;;  %v1063_v40 = vmul.f32 0.25, %v3588_v45 }
 0x2f7   :  { %2287 = vadd.xlane.f32.xlu0 %v2286_v47  ;;  %v1127_v47 = vsel %vm1119_vm6, 1, %v3148_v42  ;;  %vm1466_vm6 = vcmask 1041409  }
 0x2f8   :  { %2446 = vadd.xlane.f32.xlu1 %v2445_v49  ;;  %v1111_v49 = vrot.slane %v1083_v18, %v3349_v55  ;;  %v1147_v5 = vrot.slane %v1127_v47, %v3352_v59  ;;  %vm3685_vm10 = vcmp.eq.s32.totalorder %v1139_v46, 1  ;;  %v3744_v46 = vsel %vm3681_vm9, %v2229_v31, -1e+30 }
 0x2f9   :  { %v2430_v52 = vpop.permute.xlu1 %2429  ;;  %v2309_v48 = vsel %vm1223_vm12, %v3744_v46, -inf }
 0x2fa   :  { %v2457_v63 = vsel %vm61_vm0, %v2430_v52, 0.0  ;;  %vm1121_vm11 = vcmp.ne.s32.totalorder %v1111_v49, 0  ;;  %vm3703_vm14 = vcmp.eq.s32.totalorder %v1147_v5, 1 }
 0x2fb   :  { %2455 = vadd.xlane.f32.xlu0 %v2454_v54  ;;  %v1128_v54 = vsel %vm1120_vm7, 1, %v3148_v42  ;;  %vm1467_vm7 = vcmask 1042434  }
 0x2fc   :  { %1391 = vadd.xlane.f32.xlu1 %v1390_v57  ;;  %v1113_v57 = vcombine.high %v1097_v35, %v1097_v35 }
 0x2fd   :  { %v2432_v60 = vpop.permute.xlu1 %2431 }
 0x2fe   :  { %v2460_v2 = vsel %vm61_vm0, %v2432_v60, 0.0  ;;  %vm1122_vm13 = vcmp.ne.s32.totalorder %v1113_v57, 0  ;;  %v1065_v57 = vmul.f32 0.25, %v3594_v50 }
 0x2ff   :  { %2458 = vadd.xlane.f32.xlu0 %v2457_v63  ;;  %v1058_v63 = vmul.f32 0.25, %v3567_v33  ;;  %v1126_v33 = vsel %vm1118_vm8, 1, %v3148_v42  ;;  %v1130_v26 = vsel %vm1122_vm13, 1, %v3148_v42  ;;  %vm1469_vm8 = vcmask 1043459  }
 0x300   :  { %2290 = vadd.xlane.f32.xlu1 %v2289_v0  ;;  %v1059_v0 = vmul.f32 0.25, %v3576_v36  ;;  %v1115_v36 = vcombine.high %v1111_v49, %v1111_v49  ;;  %v1159_v18 = vrot.slane %v1130_v26, %v3352_v59  ;;  %vm1477_vm13 = vcmask 1047559  }
 0x301   :  { %v3651_v9 = vpop.permute.xlu1 %1408 }
 0x302   :  { %vm3755_vm3 = vcmp.eq.s32.totalorder %v1159_v18, 1  ;;  %v1411_v26 = vmul.f32 %v3651_v9, %v3357_v61 }
 0x303   :  { %2461 = vadd.xlane.f32.xlu0 %v2460_v2  ;;  %v1373_v2 = vpop.permute.xlu0 %1372 }
 0x304   :  { %2293 = vadd.xlane.f32.xlu1 %v2292_v6  ;;  %v2235_v6 = vmul.f32 0.25, %v3614_v7 }
 0x305   :  { %v1375_v4 = vpop.permute.xlu1 %1374 }
 0x306   :  { %v1405_v20 = vsel %vm61_vm0, %v1375_v4, 0.0  ;;  %v1402_v4 = vsel %vm61_vm0, %v1373_v2, 0.0 }
 0x307   :  { %2467 = vadd.xlane.f32.xlu0 %v2466_v11  ;;  %v1151_v11 = vrot.slane %v1128_v54, %v3352_v59 }
 0x308   :  { %1394 = vadd.xlane.f32.xlu1 %v1393_v41 }
 0x309   :  { %v2268_v17 = vpop.permute.xlu1 %2267  ;;  %vm3707_vm15 = vcmp.eq.s32.totalorder %v1151_v11, 1 }
 0x30a   :  { %v2298_v19 = vsel %vm61_vm0, %v2268_v17, 0.0  ;;  %v1062_v17 = vmul.f32 0.25, %v3586_v44  ;;  %v1129_v44 = vsel %vm1121_vm11, 1, %v3148_v42  ;;  %vm1475_vm11 = vcmask 1046534  }
 0x30b   :  { %v1155_v35 = vrot.slane %v1129_v44, %v3352_v59 }
 0x30c   :  { %1397 = vadd.xlane.f32.xlu1 %v1396_v15  ;;  %v3727_v32 = vsel %vm3707_vm15, %v1062_v17, -1e+30 }
 0x30d   :  { %v1236_v53 = vsel %vm1223_vm12, %v3727_v32, -inf  ;;  %vm3750_vm2 = vcmp.eq.s32.totalorder %v1155_v35, 1 }
 0x30e   :  { %v3765_v54 = vsel %vm3750_vm2, %v1063_v40, -1e+30  ;;  %v3825_v55 = vsel %vm3750_vm2, %v2234_v22, -1e+30 }
 0x30f   :  { %v1239_v2 = vsel %vm1223_vm12, %v3765_v54, -inf  ;;  %v2324_v3 = vsel %vm1223_vm12, %v3825_v55, -inf }
 0x310   :  { %1400 = vadd.xlane.f32.xlu1 %v1399_v16  ;;  %v1061_v16 = vmul.f32 0.25, %v3583_v43  ;;  %v1143_v43 = vrot.slane %v1126_v33, %v3352_v59 }
 0x312   :  { %v3722_v30 = vsel %vm3703_vm14, %v1061_v16, -1e+30  ;;  %vm3731_vm1 = vcmp.eq.s32.totalorder %v1143_v43, 1  ;;  %v2232_v16 = vmul.f32 0.25, %v3604_v62  ;;  %v2236_v62 = vmul.f32 0.25, %v3617_v10 }
 0x313   :  { %v1233_v37 = vsel %vm1223_vm12, %v3722_v30, -inf  ;;  %v3748_v47 = vsel %vm3731_vm1, %v1060_v29, -1e+30 }
 0x314   :  { %2299 = vadd.xlane.f32.xlu1 %v2298_v19  ;;  %v3697_v19 = vsel %vm3685_vm10, %v1059_v0, -1e+30  ;;  %v3818_v43 = vsel %vm3703_vm14, %v2232_v16, -1e+30 }
 0x315   :  { %v1227_v28 = vsel %vm1223_vm12, %v3697_v19, -inf  ;;  %v2318_v44 = vsel %vm1223_vm12, %v3818_v43, -inf }
 0x318   :  { %1406 = vadd.xlane.f32.xlu1 %v1405_v20  ;;  %v3701_v20 = vsel %vm3681_vm9, %v1058_v63, -1e+30  ;;  %v3771_v63 = vsel %vm3755_vm3, %v1064_v39, -1e+30  ;;  %vm1471_vm9 = vcmask 1044484  }
 0x319   :  { %v1224_v8 = vsel %vm1223_vm12, %v3701_v20, -inf  ;;  %v1242_v5 = vsel %vm1223_vm12, %v3771_v63, -inf }
 0x348   :  { %v3669_v34 = vpop.xlane.xlu1 %1213 }
 0x34c   :  { %v2266_v52 = vpop.permute.xlu1 %2265 }
 0x34d   :  { %v2295_v60 = vsel %vm61_vm0, %v2266_v52, 0.0  ;;  %v1230_v52 = vsel %vm1223_vm12, %v3748_v47, -inf }
 0x34e   :  { %2296 = vadd.xlane.f32.xlu1 %v2295_v60  ;;  %v2231_v60 = vmul.f32 0.25, %v3601_v58  ;;  %v2233_v58 = vmul.f32 0.25, %v3608_v1 }
 0x350   :  { %v2434_v41 = vpop.permute.xlu1 %2433  ;;  %v3789_v11 = vsel %vm3731_vm1, %v2231_v60, -1e+30  ;;  %v3802_v1 = vsel %vm3707_vm15, %v2233_v58, -1e+30 }
 0x351   :  { %v2463_v15 = vsel %vm61_vm0, %v2434_v41, 0.0  ;;  %vm1123_vm0 = vcmp.ne.s32.totalorder %v1115_v36, 0  ;;  %v2315_v33 = vsel %vm1223_vm12, %v3789_v11, -inf  ;;  %v2230_v36 = vmul.f32 0.25, %v3599_v56 }
 0x352   :  { %1403 = vadd.xlane.f32.xlu1 %v1402_v4  ;;  %2464 = vadd.xlane.f32.xlu0 %v2463_v15  ;;  %v1131_v38 = vsel %vm1123_vm0, 1, %v3148_v42  ;;  %v3798_v4 = vsel %vm3755_vm3, %v2235_v6, -1e+30  ;;  %v2321_v15 = vsel %vm1223_vm12, %v3802_v1, -inf }
 0x353   :  { %v1163_v49 = vrot.slane %v1131_v38, %v3352_v59  ;;  %v2327_v7 = vsel %vm1223_vm12, %v3798_v4, -inf  ;;  %v3811_v56 = vsel %vm3685_vm10, %v2230_v36, -1e+30  ;;  %vm1473_vm10 = vcmask 1045509  }
 0x354   :  { %v2312_v17 = vsel %vm1223_vm12, %v3811_v56, -inf }
 0x355   :  { %vm3773_vm4 = vcmp.eq.s32.totalorder %v1163_v49, 1 }
 0x356   :  { %1228 = vmax.xlane.f32.xlu1 %v1227_v28  ;;  %1225 = vmax.xlane.f32.xlu0 %v1224_v8  ;;  %v3783_v50 = vsel %vm3773_vm4, %v1065_v57, -1e+30  ;;  %v3833_v21 = vsel %vm3773_vm4, %v2236_v62, -1e+30  ;;  %v1416_v28 = vrot.slane %v1411_v26, %v3352_v59  ;;  %v1211_v8 = vpop.xlane.xlu0 %1210 }
 0x357   :  { %v1245_v41 = vsel %vm1223_vm12, %v3783_v50, -inf  ;;  %v2330_v10 = vsel %vm1223_vm12, %v3833_v21, -inf  ;;  %v3927_v22 = vmul.f32 0.25, %v1211_v8 }
 0x35a   :  { %1234 = vmax.xlane.f32.xlu1 %v1233_v37  ;;  %1237 = vmax.xlane.f32.xlu0 %v1236_v53  ;;  %v3840_v9 = vpop.xlane.xlu0 %1385 }
 0x35e   :  { %2310 = vmax.xlane.f32.xlu1 %v2309_v48  ;;  %1231 = vmax.xlane.f32.xlu0 %v1230_v52  ;;  %v3844_v31 = vpop.xlane.xlu0 %1388 }
 0x362   :  { %1240 = vmax.xlane.f32.xlu1 %v1239_v2  ;;  %1243 = vmax.xlane.f32.xlu0 %v1242_v5 }
 0x366   :  { %1246 = vmax.xlane.f32.xlu1 %v1245_v41  ;;  %2316 = vmax.xlane.f32.xlu0 %v2315_v33  ;;  %v3883_v41 = vmul.f32 0.25, %v3552_v23  ;;  %v3886_v33 = vmul.f32 0.25, %v3627_v12  ;;  %v3902_v12 = vmul.f32 0.25, %v3630_v13 }
 0x368   :  { %v3846_v35 = vpop.xlane.xlu0 %2281  ;;  %4336 = vst [vmem:[#allocation3_spill] sm:$0xff] %v3902_v12 }
 0x36a   :  { %2328 = vmax.xlane.f32.xlu1 %v2327_v7  ;;  %2322 = vmax.xlane.f32.xlu0 %v2321_v15 }
 0x36c   :  { %v2285_v27 = vpop.xlane.xlu0 %2284 }
 0x36e   :  { %2313 = vmax.xlane.f32.xlu0 %v2312_v17  ;;  %v3895_v17 = vmul.f32 0.25, %v3556_v25 }
 0x372   :  { %2319 = vmax.xlane.f32.xlu0 %v2318_v44 }
 0x376   :  { %2325 = vmax.xlane.f32.xlu0 %v2324_v3 }
 0x37a   :  { %2331 = vmax.xlane.f32.xlu0 %v2330_v10  ;;  %v3934_v10 = vmul.f32 0.25, %v3632_v14 }
 0x37b   :  { %1417 = vrot.lane.b32.xlu1 %v1416_v28, %s3146_s23 }
 0x37c   :  { %v3852_v37 = vpop.xlane.xlu0 %2449 }
 0x380   :  { %v3856_v40 = vpop.xlane.xlu0 %2452 }
 0x381   :  { %v2279_v61 = vpop.xlane.xlu1 %2278 }
 0x384   :  { %v3860_v42 = vpop.xlane.xlu0 %2287 }
 0x385   :  { %v3842_v29 = vpop.xlane.xlu1 %2446 }
 0x388   :  { %v3864_v45 = vpop.xlane.xlu0 %2455 }
 0x389   :  { %v3848_v18 = vpop.xlane.xlu1 %1391 }
 0x38c   :  { %v3868_v52 = vpop.xlane.xlu0 %2458 }
 0x38d   :  { %v3850_v38 = vpop.xlane.xlu1 %2290 }
 0x390   :  { %2469 = vrot.lane.b32.xlu0 %v1416_v28, %s3147_s6  ;;  %v3872_v60 = vpop.xlane.xlu0 %2461  ;;  %v3913_v28 = vmul.f32 0.25, %v3554_v24 }
 0x391   :  { %v3854_v53 = vpop.xlane.xlu1 %2293 }
 0x394   :  { %v3876_v2 = vpop.xlane.xlu0 %2467 }
 0x395   :  { %v3858_v39 = vpop.xlane.xlu1 %1394 }
 0x399   :  { %v3862_v49 = vpop.xlane.xlu1 %1397 }
 0x39d   :  { %v3866_v48 = vpop.xlane.xlu1 %1400 }
 0x3a1   :  { %v3870_v57 = vpop.xlane.xlu1 %2299 }
 0x3a5   :  { %v3874_v0 = vpop.xlane.xlu1 %1406 }
 0x3db   :  { %v2297_v5 = vpop.xlane.xlu1 %2296 }
 0x3df   :  { %v3878_v58 = vpop.xlane.xlu0 %2464  ;;  %v3880_v6 = vpop.xlane.xlu1 %1403 }
 0x3e3   :  { %v1226_v36 = vpop.xlane.xlu0 %1225  ;;  %v1229_v7 = vpop.xlane.xlu1 %1228 }
 0x3e4   :  { %v3889_v15 = vmax.f32 %v1226_v36, %v3886_v33  ;;  %v3892_v16 = vmax.f32 %v1229_v7, %v3883_v41  ;;  %v3917_v36 = vmul.f32 0.25, %v2279_v61 }
 0x3e6   :  { %v1256_v26 = vsub.f32 %v3701_v20, %v3889_v15 }
 0x3e7   :  { %v1238_v44 = vpop.xlane.xlu0 %1237  ;;  %v1235_v62 = vpop.xlane.xlu1 %1234 }
 0x3e8   :  { %v3907_v3 = vmax.f32 %v1238_v44, %v3895_v17  ;;  %v3910_v25 = vmax.f32 %v1235_v62, %v3902_v12  ;;  %v1264_v20 = vmul.f32 1.442695, %v1256_v26  ;;  %v1257_v26 = vsub.f32 %v3697_v19, %v3892_v16 }
 0x3e9   :  { %v3950_v19 = vmul.f32 0.25, %v2285_v27 }
 0x3ea   :  { %4337 = vst [vmem:[#allocation4_spill] sm:$0xff] %v3907_v3  ;;  %3043 = vpow2.f32 %v1264_v20  ;;  %v1266_v20 = vmul.f32 1.442695, %v1257_v26 }
 0x3eb   :  { %v1232_v7 = vpop.xlane.xlu0 %1231  ;;  %v2311_v23 = vpop.xlane.xlu1 %2310 }
 0x3ec   :  { %v3922_v44 = vmax.f32 %v1232_v7, %v3913_v28  ;;  %v3925_v62 = vmax.f32 %v2311_v23, %v3917_v36  ;;  %v3955_v23 = vmul.f32 0.25, %v3669_v34 }
 0x3ee   :  { %v1258_v24 = vsub.f32 %v3748_v47, %v3922_v44  ;;  %v2341_v7 = vsub.f32 %v3744_v46, %v3925_v62  ;;  %v1260_v47 = vsub.f32 %v3727_v32, %v3907_v3  ;;  %4338 = vst [vmem:[#allocation5_spill] sm:$0xff] %v3955_v23 }
 0x3ef   :  { %v1244_v8 = vpop.xlane.xlu0 %1243  ;;  %v1241_v13 = vpop.xlane.xlu1 %1240 }
 0x3f0   :  { %v1268_v59 = vmul.f32 1.442695, %v1258_v24  ;;  %v3945_v61 = vmax.f32 %v1244_v8, %v3927_v22  ;;  %v2349_v14 = vmul.f32 1.442695, %v2341_v7  ;;  %v3948_v12 = vmax.f32 %v1241_v13, %v3934_v10 }
 0x3f1   :  { %v1272_v3 = vmul.f32 1.442695, %v1260_v47  ;;  %v3972_v7 = vmul.f32 0.25, %v2297_v5 }
 0x3f2   :  { %3045 = vpow2.f32 %v1268_v59  ;;  %v3966_v59 = vmul.f32 0.25, %v3850_v38 }
 0x3f3   :  { %v2317_v24 = vpop.xlane.xlu0 %2316  ;;  %v1247_v8 = vpop.xlane.xlu1 %1246  ;;  %3047 = vpow2.f32 %v2349_v14  ;;  %4340 = vst [vmem:[#allocation7_spill] sm:$0xff] %v3972_v7 }
 0x3f4   :  { %v3960_v13 = vmax.f32 %v2317_v24, %v3950_v19  ;;  %v3963_v27 = vmax.f32 %v1247_v8, %v3955_v23  ;;  %3049 = vpow2.f32 %v1266_v20  ;;  %v3987_v20 = vpop.eup %3043 }
 0x3f5   :  { %3051 = vpow2.f32 %v1272_v3 }
 0x3f6   :  { %4339 = vst [vmem:[#allocation6_spill] sm:$0xff] %v3963_v27  ;;  %v2343_v34 = vsub.f32 %v3789_v11, %v3960_v13  ;;  %v1263_v47 = vsub.f32 %v3783_v50, %v3963_v27  ;;  %v3982_v11 = vmul.f32 0.25, %v3846_v35 }
 0x3f7   :  { %v2323_v24 = vpop.xlane.xlu0 %2322  ;;  %v2329_v8 = vpop.xlane.xlu1 %2328 }
 0x3f8   :  { %v2353_v38 = vmul.f32 1.442695, %v2343_v34  ;;  %v3979_v32 = vmax.f32 %v2323_v24, %v3966_v59  ;;  %v1278_v46 = vmul.f32 1.442695, %v1263_v47  ;;  %v3985_v5 = vmax.f32 %v2329_v8, %v3972_v7 }
 0x3f9   :  { %v1437_v34 = vrot.slane %v3840_v9, %v3347_v51  ;;  %v4013_v7 = vmul.f32 0.25, %v3860_v42 }
 0x3fa   :  { %4341 = vst [vmem:[#allocation8_spill] sm:$0xff] %v3985_v5  ;;  %3053 = vpow2.f32 %v2353_v38  ;;  %v2345_v50 = vsub.f32 %v3802_v1, %v3979_v32  ;;  %v2347_v35 = vsub.f32 %v3798_v4, %v3985_v5  ;;  %v1445_v1 = vrot.slane %v3848_v18, %v3347_v51 }
 0x3fb   :  { %v2314_v24 = vpop.xlane.xlu0 %2313  ;;  %v1418_v8 = vpop.permute.xlu1 %1417  ;;  %v1259_v38 = vsub.f32 %v3722_v30, %v3910_v25  ;;  %3055 = vpow2.f32 %v1278_v46  ;;  %v1529_v47 = vmul.f32 %v3987_v20, %v1437_v34  ;;  %v2486_v46 = vrot.slane %v3842_v29, %v3347_v51 }
 0x3fc   :  { %v3999_v14 = vpop.eup %3045  ;;  %v2357_v3 = vmul.f32 1.442695, %v2345_v50  ;;  %v4006_v26 = vmax.f32 %v2314_v24, %v3982_v11  ;;  %v2361_v9 = vmul.f32 1.442695, %v2347_v35  ;;  %v1421_v4 = vsel %vm1420_vm5, %v1418_v8, 0.0 }
 0x3fd   :  { %v4010_v5 = vpop.eup %3047  ;;  %1422 = vadd.xlane.f32.xlu1 %v1421_v4  ;;  %v1531_v35 = vmul.f32 %v3999_v14, %v1445_v1  ;;  %v1270_v34 = vmul.f32 1.442695, %v1259_v38  ;;  %v4034_v29 = vmul.f32 0.25, %v3854_v53  ;;  %v2494_v53 = vrot.slane %v3856_v40, %v3347_v51 }
 0x3fe   :  { %3057 = vpow2.f32 %v2357_v3  ;;  %v2342_v18 = vsub.f32 %v3811_v56, %v4006_v26  ;;  %v4025_v3 = vpop.eup %3049  ;;  %v1537_v56 = vsel %vm1223_vm12, %v1529_v47, 0.0  ;;  %v4029_v8 = vmul.f32 %v4010_v5, %v2486_v46 }
 0x3ff   :  { %v2320_v50 = vpop.xlane.xlu0 %2319  ;;  %3059 = vpow2.f32 %v2361_v9  ;;  %v4031_v4 = vpop.eup %3051  ;;  %v1453_v9 = vrot.slane %v3862_v49, %v3347_v51  ;;  %v2502_v40 = vrot.slane %v3868_v52, %v3347_v51 }
 0x400   :  { %v2351_v24 = vmul.f32 1.442695, %v2342_v18  ;;  %v4023_v42 = vmax.f32 %v2320_v50, %v4013_v7 }
 0x401   :  { %1538 = vadd.xlane.f32.xlu1 %v1537_v56  ;;  %v4053_v56 = vmul.f32 0.25, %v3870_v57  ;;  %v1261_v57 = vsub.f32 %v3765_v54, %v3948_v12 }
 0x402   :  { %3061 = vpow2.f32 %v2351_v24  ;;  %v2344_v1 = vsub.f32 %v3818_v43, %v4023_v42  ;;  %v1307_v43 = vsel %vm1223_vm12, %v4025_v3, 0.0  ;;  %v1533_v24 = vmul.f32 %v4031_v4, %v1453_v9 }
 0x403   :  { %v2326_v47 = vpop.xlane.xlu0 %2325  ;;  %3063 = vpow2.f32 %v1270_v34  ;;  %v1274_v27 = vmul.f32 1.442695, %v1261_v57  ;;  %v1304_v57 = vsel %vm1223_vm12, %v3987_v20, 0.0  ;;  %v1316_v20 = vsel %vm1223_vm12, %v4031_v4, 0.0 }
 0x404   :  { %v4042_v18 = vpop.eup %3053  ;;  %v2355_v46 = vmul.f32 1.442695, %v2344_v1  ;;  %v4045_v50 = vmax.f32 %v2326_v47, %v4034_v29  ;;  %v1549_v34 = vsel %vm1223_vm12, %v1533_v24, 0.0 }
 0x405   :  { %1308 = vadd.xlane.f32.xlu1 %v1307_v43  ;;  %v4059_v1 = vpop.eup %3055  ;;  %v4064_v38 = vmul.f32 %v4042_v18, %v2494_v53  ;;  %v1465_v43 = vrot.slane %v3874_v0, %v3347_v51  ;;  %v2510_v53 = vrot.slane %v3878_v58, %v3347_v51  ;;  %v1262_v0 = vsub.f32 %v3771_v63, %v3945_v61 }
 0x406   :  { %3065 = vpow2.f32 %v2355_v46  ;;  %v2346_v49 = vsub.f32 %v3825_v55, %v4045_v50  ;;  %v2498_v63 = vrot.slane %v3864_v45, %v3347_v51  ;;  %v1449_v45 = vrot.slane %v3858_v39, %v3347_v51 }
 0x407   :  { %v2332_v47 = vpop.xlane.xlu0 %2331  ;;  %v1276_v54 = vmul.f32 1.442695, %v1262_v0  ;;  %v2579_v0 = vsel %vm1223_vm12, %v4029_v8, 0.0 }
 0x408   :  { %v4066_v9 = vpop.eup %3057  ;;  %v2359_v46 = vmul.f32 1.442695, %v2346_v49  ;;  %v4071_v55 = vmax.f32 %v2332_v47, %v4053_v56  ;;  %v2490_v49 = vrot.slane %v3852_v37, %v3347_v51 }
 0x409   :  { %v4077_v52 = vmul.f32 %v4066_v9, %v2502_v40  ;;  %v4079_v30 = vpop.eup %3059  ;;  %1550 = vadd.xlane.f32.xlu1 %v1549_v34  ;;  %v4090_v40 = vmul.f32 %v4059_v1, %v1465_v43  ;;  %v1543_v34 = vsel %vm1223_vm12, %v1531_v35, 0.0  ;;  %v2506_v35 = vrot.slane %v3872_v60, %v3347_v51 }
 0x40a   :  { %3067 = vpow2.f32 %v2359_v46  ;;  %v4094_v58 = vmul.f32 %v4079_v30, %v2510_v53 }
 0x40b   :  { %v2470_v24 = vpop.permute.xlu0 %2469  ;;  %3069 = vpow2.f32 %v1274_v27 }
 0x40c   :  { %v3062_v47 = vpop.eup %3061  ;;  %v2472_v23 = vsel %vm1420_vm5, %v2470_v24, 0.0  ;;  %3071 = vpow2.f32 %v1276_v54  ;;  %v2348_v54 = vsub.f32 %v3833_v21, %v4071_v55  ;;  %v2389_v21 = vsel %vm1223_vm12, %v4010_v5, 0.0 }
 0x40d   :  { %2473 = vadd.xlane.f32.xlu0 %v2472_v23  ;;  %v4097_v46 = vmul.f32 %v3062_v47, %v2490_v49  ;;  %v3064_v37 = vpop.eup %3063  ;;  %1544 = vadd.xlane.f32.xlu1 %v1543_v34  ;;  %v1441_v23 = vrot.slane %v3844_v31, %v3347_v51  ;;  %v1457_v5 = vrot.slane %v3866_v48, %v3347_v51  ;;  %v2407_v48 = vsel %vm1223_vm12, %v4079_v30, 0.0 }
 0x40e   :  { %v1313_v53 = vsel %vm1223_vm12, %v3064_v37, 0.0  ;;  %v1532_v34 = vmul.f32 %v3064_v37, %v1449_v45  ;;  %v2363_v37 = vmul.f32 1.442695, %v2348_v54  ;;  %v2585_v45 = vsel %vm1223_vm12, %v4064_v38, 0.0 }
 0x40f   :  { %v1530_v49 = vmul.f32 %v4025_v3, %v1441_v23  ;;  %v1310_v3 = vsel %vm1223_vm12, %v3999_v14, 0.0  ;;  %v2392_v14 = vsel %vm1223_vm12, %v3062_v47, 0.0  ;;  %v2395_v23 = vsel %vm1223_vm12, %v4042_v18, 0.0 }
 0x410   :  { %v3066_v43 = vpop.eup %3065  ;;  %v1546_v60 = vsel %vm1223_vm12, %v1532_v34, 0.0  ;;  %3073 = vpow2.f32 %v2363_v37  ;;  %v2401_v47 = vsel %vm1223_vm12, %v4066_v9, 0.0  ;;  %v2591_v38 = vsel %vm1223_vm12, %v4077_v52, 0.0 }
 0x411   :  { %1305 = vadd.xlane.f32.xlu0 %v1304_v57  ;;  %v4104_v24 = vmul.f32 %v3066_v43, %v2498_v63  ;;  %1314 = vadd.xlane.f32.xlu1 %v1313_v53  ;;  %v1540_v63 = vsel %vm1223_vm12, %v1530_v49, 0.0  ;;  %v1325_v53 = vsel %vm1223_vm12, %v4059_v1, 0.0  ;;  %v2582_v34 = vsel %vm1223_vm12, %v4097_v46, 0.0 }
 0x412   :  { %v2514_v30 = vrot.slane %v3876_v2, %v3347_v51 }
 0x413   :  { %v2588_v52 = vsel %vm1223_vm12, %v4104_v24, 0.0 }
 0x414   :  { %v3068_v27 = vpop.eup %3067 }
 0x415   :  { %1317 = vadd.xlane.f32.xlu0 %v1316_v20  ;;  %v2576_v31 = vmul.f32 %v3068_v27, %v2506_v35  ;;  %2580 = vadd.xlane.f32.xlu1 %v2579_v0  ;;  %v3070_v39 = vpop.eup %3069  ;;  %v2398_v35 = vsel %vm1223_vm12, %v3066_v43, 0.0  ;;  %v2404_v1 = vsel %vm1223_vm12, %v3068_v27, 0.0  ;;  %v1461_v43 = vrot.slane %v3880_v6, %v3347_v51 }
 0x416   :  { %v3072_v4 = vpop.eup %3071  ;;  %v1319_v8 = vsel %vm1223_vm12, %v3070_v39, 0.0  ;;  %v1534_v49 = vmul.f32 %v3070_v39, %v1457_v5  ;;  %v1558_v6 = vsel %vm1223_vm12, %v4090_v40, 0.0 }
 0x417   :  { %v1322_v57 = vsel %vm1223_vm12, %v3072_v4, 0.0  ;;  %v1535_v0 = vmul.f32 %v3072_v4, %v1461_v43 }
 0x418   :  { %v1552_v27 = vsel %vm1223_vm12, %v1534_v49, 0.0 }
 0x419   :  { %1541 = vadd.xlane.f32.xlu0 %v1540_v63  ;;  %1547 = vadd.xlane.f32.xlu1 %v1546_v60  ;;  %v1555_v9 = vsel %vm1223_vm12, %v1535_v0, 0.0  ;;  %v2594_v63 = vsel %vm1223_vm12, %v2576_v31, 0.0  ;;  %v2597_v60 = vsel %vm1223_vm12, %v4094_v58, 0.0  ;;  %v4342_v58 = vsub.f32 %v3886_v33, %v3889_v15 }
 0x41a   :  { %v3074_v20 = vpop.eup %3073  ;;  %v4345_v33 = vsub.f32 %v3950_v19, %v3960_v13  ;;  %v4351_v19 = vsub.f32 %v3982_v11, %v4006_v26 }
 0x41b   :  { %v2410_v18 = vsel %vm1223_vm12, %v3074_v20, 0.0  ;;  %v2578_v39 = vmul.f32 %v3074_v20, %v2514_v30  ;;  %v1288_v37 = vmul.f32 1.442695, %v4342_v58 }
 0x41c   :  { %v2377_v15 = vmul.f32 1.442695, %v4345_v33  ;;  %v2375_v13 = vmul.f32 1.442695, %v4351_v19 }
 0x41d   :  { %1311 = vadd.xlane.f32.xlu0 %v1310_v3  ;;  %1320 = vadd.xlane.f32.xlu1 %v1319_v8  ;;  %v2600_v46 = vsel %vm1223_vm12, %v2578_v39, 0.0  ;;  %3075 = vpow2.f32 %v1288_v37  ;;  %v4356_v39 = vld [vmem:[#allocation2_spill] sm:$0xff] }
 0x421   :  { %1323 = vadd.xlane.f32.xlu0 %v1322_v57  ;;  %1326 = vadd.xlane.f32.xlu1 %v1325_v53  ;;  %v4343_v53 = vsub.f32 %v3913_v28, %v3922_v44  ;;  %v4346_v28 = vsub.f32 %v3883_v41, %v3892_v16 }
 0x423   :  { %v1290_v44 = vmul.f32 1.442695, %v4346_v28 }
 0x425   :  { %2390 = vadd.xlane.f32.xlu0 %v2389_v21  ;;  %2393 = vadd.xlane.f32.xlu1 %v2392_v14  ;;  %v1292_v21 = vmul.f32 1.442695, %v4343_v53 }
 0x427   :  { %3077 = vpow2.f32 %v1292_v21 }
 0x429   :  { %2396 = vadd.xlane.f32.xlu0 %v2395_v23  ;;  %2399 = vadd.xlane.f32.xlu1 %v2398_v35  ;;  %v4344_v23 = vsub.f32 %v3917_v36, %v3925_v62  ;;  %v4347_v36 = vld [vmem:[#allocation4_spill] sm:$0xff] }
 0x42a   :  { %v4348_v62 = vsub.f32 %v3895_v17, %v4347_v36  ;;  %v4352_v17 = vsub.f32 %v3966_v59, %v3979_v32  ;;  %v4355_v59 = vsub.f32 %v3934_v10, %v3948_v12 }
 0x42b   :  { %v2373_v35 = vmul.f32 1.442695, %v4344_v23  ;;  %v4361_v23 = vld [vmem:[#allocation7_spill] sm:$0xff] }
 0x42c   :  { %v2381_v0 = vmul.f32 1.442695, %v4352_v17 }
 0x42d   :  { %2586 = vadd.xlane.f32.xlu0 %v2585_v45  ;;  %2405 = vadd.xlane.f32.xlu1 %v2404_v1  ;;  %3079 = vpow2.f32 %v2373_v35 }
 0x42e   :  { %3081 = vpow2.f32 %v2377_v15 }
 0x42f   :  { %3083 = vpow2.f32 %v1290_v44 }
 0x431   :  { %2402 = vadd.xlane.f32.xlu0 %v2401_v47  ;;  %2411 = vadd.xlane.f32.xlu1 %v2410_v18  ;;  %v1296_v47 = vmul.f32 1.442695, %v4348_v62  ;;  %v4349_v18 = vld [vmem:[#allocation3_spill] sm:$0xff] }
 0x432   :  { %v4350_v49 = vsub.f32 %v4349_v18, %v3910_v25 }
 0x433   :  { %3085 = vpow2.f32 %v1296_v47 }
 0x434   :  { %v1294_v43 = vmul.f32 1.442695, %v4350_v49 }
 0x435   :  { %2592 = vadd.xlane.f32.xlu0 %v2591_v38  ;;  %1553 = vadd.xlane.f32.xlu1 %v1552_v27  ;;  %v3076_v38 = vpop.eup %3075 }
 0x436   :  { %3087 = vpow2.f32 %v1294_v43 }
 0x437   :  { %3089 = vpow2.f32 %v2375_v13 }
 0x439   :  { %2408 = vadd.xlane.f32.xlu0 %v2407_v48  ;;  %1556 = vadd.xlane.f32.xlu1 %v1555_v9  ;;  %v3078_v48 = vpop.eup %3077  ;;  %v4353_v9 = vsub.f32 %v4013_v7, %v4023_v42 }
 0x43a   :  { %v3080_v25 = vpop.eup %3079 }
 0x43b   :  { %v2379_v26 = vmul.f32 1.442695, %v4353_v9  ;;  %v3082_v32 = vpop.eup %3081 }
 0x43c   :  { %v3084_v10 = vpop.eup %3083 }
 0x43d   :  { %2583 = vadd.xlane.f32.xlu0 %v2582_v34  ;;  %1559 = vadd.xlane.f32.xlu1 %v1558_v6  ;;  %v3086_v15 = vpop.eup %3085 }
 0x440   :  { %v4238_v44 = vpop.eup %3087 }
 0x441   :  { %2589 = vadd.xlane.f32.xlu0 %v2588_v52  ;;  %v3090_v36 = vpop.eup %3089 }
 0x445   :  { %2595 = vadd.xlane.f32.xlu0 %v2594_v63  ;;  %v4354_v63 = vsub.f32 %v3927_v22, %v3945_v61  ;;  %v4358_v22 = vld [vmem:[#allocation5_spill] sm:$0xff]  ;;  %v4359_v61 = vld [vmem:[#allocation6_spill] sm:$0xff] }
 0x446   :  { %v4360_v37 = vsub.f32 %v4358_v22, %v4359_v61 }
 0x447   :  { %v1300_v30 = vmul.f32 1.442695, %v4354_v63 }
 0x448   :  { %v1302_v53 = vmul.f32 1.442695, %v4360_v37 }
 0x449   :  { %2598 = vadd.xlane.f32.xlu0 %v2597_v60  ;;  %v1298_v60 = vmul.f32 1.442695, %v4355_v59 }
 0x44d   :  { %2601 = vadd.xlane.f32.xlu0 %v2600_v46  ;;  %v4357_v46 = vsub.f32 %v4034_v29, %v4045_v50  ;;  %v4364_v29 = vsub.f32 %v4053_v56, %v4071_v55 }
 0x44f   :  { %v2387_v50 = vmul.f32 1.442695, %v4364_v29 }
 0x48a   :  { %v1423_v40 = vpop.xlane.xlu1 %1422 }
 0x48b   :  { %v4220_v7 = vrot.slane %v1423_v40, %v4356_v39  ;;  %v4362_v40 = vld [vmem:[#allocation8_spill] sm:$0xff] }
 0x48c   :  { %v4363_v35 = vsub.f32 %v4361_v23, %v4362_v40 }
 0x48d   :  { %v1569_v61 = vmul.f32 %v3086_v15, %v4220_v7 }
 0x48e   :  { %v4161_v54 = vpop.xlane.xlu1 %1538  ;;  %v2385_v33 = vmul.f32 1.442695, %v4363_v35 }
 0x492   :  { %v4163_v3 = vpop.xlane.xlu1 %1308 }
 0x493   :  { %v1329_v62 = vadd.f32 %v3084_v10, %v4163_v3 }
 0x496   :  { %v4165_v24 = vpop.xlane.xlu1 %1550 }
 0x497   :  { %v1577_v35 = vadd.f32 %v1569_v61, %v4165_v24 }
 0x49a   :  { %v2474_v31 = vpop.xlane.xlu0 %2473  ;;  %v4167_v4 = vpop.xlane.xlu1 %1544 }
 0x49b   :  { %v4229_v21 = vrot.slane %v2474_v31, %v4356_v39 }
 0x49d   :  { %v2607_v47 = vmul.f32 %v3080_v25, %v4229_v21  ;;  %v2609_v9 = vmul.f32 %v3082_v32, %v4229_v21  ;;  %v2608_v23 = vmul.f32 %v3090_v36, %v4229_v21 }
 0x49e   :  { %v1306_v8 = vpop.xlane.xlu0 %1305  ;;  %v4169_v2 = vpop.xlane.xlu1 %1314 }
 0x49f   :  { %v1328_v41 = vadd.f32 %v3076_v38, %v1306_v8  ;;  %v2383_v8 = vmul.f32 1.442695, %v4357_v46 }
 0x4a1   :  { %3091 = vrcp.f32 %v1328_v41  ;;  %v1331_v41 = vadd.f32 %v4238_v44, %v4169_v2 }
 0x4a2   :  { %v1318_v57 = vpop.xlane.xlu0 %1317  ;;  %v4177_v14 = vpop.xlane.xlu1 %2580  ;;  %3093 = vpow2.f32 %v2381_v0 }
 0x4a3   :  { %v1332_v31 = vadd.f32 %v3086_v15, %v1318_v57  ;;  %v2615_v55 = vadd.f32 %v2607_v47, %v4177_v14  ;;  %v1567_v57 = vmul.f32 %v3078_v48, %v4220_v7 }
 0x4a5   :  { %v1575_v14 = vadd.f32 %v1567_v57, %v4167_v4 }
 0x4a6   :  { %v4182_v45 = vpop.xlane.xlu0 %1541  ;;  %v4184_v1 = vpop.xlane.xlu1 %1547 }
 0x4aa   :  { %v1312_v20 = vpop.xlane.xlu0 %1311  ;;  %v4192_v5 = vpop.xlane.xlu1 %1320 }
 0x4ab   :  { %v1330_v34 = vadd.f32 %v3078_v48, %v1312_v20  ;;  %v1565_v20 = vmul.f32 %v3076_v38, %v4220_v7  ;;  %v3092_v18 = vpop.eup %3091 }
 0x4ac   :  { %v3094_v49 = vpop.eup %3093 }
 0x4ad   :  { %v1573_v56 = vadd.f32 %v1565_v20, %v4161_v54  ;;  %v2611_v37 = vmul.f32 %v3094_v49, %v4229_v21 }
 0x4ae   :  { %v4203_v27 = vpop.xlane.xlu0 %1323  ;;  %v4205_v16 = vpop.xlane.xlu1 %1326 }
 0x4af   :  { %v1589_v0 = vmul.f32 %v3092_v18, %v1573_v56 }
 0x4b2   :  { %v2391_v11 = vpop.xlane.xlu0 %2390  ;;  %v2394_v52 = vpop.xlane.xlu1 %2393 }
 0x4b3   :  { %v2413_v6 = vadd.f32 %v3080_v25, %v2391_v11  ;;  %v2414_v43 = vadd.f32 %v3090_v36, %v2394_v52 }
 0x4b5   :  { %3095 = vrcp.f32 %v2413_v6 }
 0x4b6   :  { %3097 = vpow2.f32 %v2379_v26  ;;  %v2397_v42 = vpop.xlane.xlu0 %2396  ;;  %v2400_v12 = vpop.xlane.xlu1 %2399 }
 0x4b7   :  { %3099 = vrcp.f32 %v1330_v34  ;;  %v2415_v58 = vadd.f32 %v3082_v32, %v2397_v42 }
 0x4b8   :  { %3101 = vpow2.f32 %v1300_v30 }
 0x4b9   :  { %3103 = vrcp.f32 %v2415_v58  ;;  %v1566_v58 = vmul.f32 %v3084_v10, %v4220_v7 }
 0x4ba   :  { %3105 = vpow2.f32 %v1298_v60  ;;  %v2587_v28 = vpop.xlane.xlu0 %2586  ;;  %v2406_v38 = vpop.xlane.xlu1 %2405 }
 0x4bb   :  { %3107 = vpow2.f32 %v2383_v8  ;;  %v2617_v34 = vadd.f32 %v2609_v9, %v2587_v28 }
 0x4bc   :  { %3109 = vpow2.f32 %v1302_v53 }
 0x4bd   :  { %3111 = vpow2.f32 %v2385_v33 }
 0x4be   :  { %3113 = vpow2.f32 %v2387_v50  ;;  %v2403_v19 = vpop.xlane.xlu0 %2402  ;;  %v2412_v59 = vpop.xlane.xlu1 %2411 }
 0x4bf   :  { %v3096_v13 = vpop.eup %3095  ;;  %3115 = vrcp.f32 %v1332_v31  ;;  %v2417_v3 = vadd.f32 %v3094_v49, %v2403_v19 }
 0x4c0   :  { %v3098_v17 = vpop.eup %3097  ;;  %3117 = vrcp.f32 %v1329_v62  ;;  %v2631_v25 = vmul.f32 %v3096_v13, %v2615_v55 }
 0x4c1   :  { %v3100_v54 = vpop.eup %3099  ;;  %3119 = vrcp.f32 %v2417_v3  ;;  %v2416_v48 = vadd.f32 %v3098_v17, %v2400_v12  ;;  %v1574_v12 = vadd.f32 %v1566_v58, %v4182_v45  ;;  %v1568_v45 = vmul.f32 %v4238_v44, %v4220_v7 }
 0x4c2   :  { %v4249_v26 = vpop.eup %3101  ;;  %v4251_v11 = vadd.f32 %v2631_v25, %v1589_v0  ;;  %3121 = vrcp.f32 %v2414_v43  ;;  %v2593_v2 = vpop.xlane.xlu0 %2592  ;;  %v1591_v63 = vmul.f32 %v3100_v54, %v1575_v14  ;;  %v2610_v18 = vmul.f32 %v3098_v17, %v4229_v21 }
 0x4c3   :  { %v3104_v6 = vpop.eup %3103  ;;  %3123 = vrcp.f32 %v1331_v41  ;;  %v2619_v10 = vadd.f32 %v2611_v37, %v2593_v2  ;;  %v1554_v33 = vpop.xlane.xlu1 %1553  ;;  %v1576_v49 = vadd.f32 %v1568_v45, %v4184_v1  ;;  %v1571_v14 = vmul.f32 %v4249_v26, %v4220_v7 }
 0x4c4   :  { %v3106_v52 = vpop.eup %3105  ;;  %v2633_v30 = vmul.f32 %v3104_v6, %v2617_v34  ;;  %3125 = vrcp.f32 %v2416_v48  ;;  %v2658_v1 = vrot.slane %v4251_v11, %v3347_v51 }
 0x4c5   :  { %v3108_v60 = vpop.eup %3107  ;;  %v1333_v32 = vadd.f32 %v3106_v52, %v4192_v5  ;;  %v1334_v5 = vadd.f32 %v4249_v26, %v4203_v27  ;;  %v1570_v44 = vmul.f32 %v3106_v52, %v4220_v7 }
 0x4c6   :  { %v4254_v39 = vpop.eup %3109  ;;  %v4256_v4 = vadd.f32 %v2633_v30, %v1591_v63  ;;  %v2418_v42 = vadd.f32 %v3108_v60, %v2406_v38  ;;  %v2409_v46 = vpop.xlane.xlu0 %2408  ;;  %v2612_v41 = vmul.f32 %v3108_v60, %v4229_v21 }
 0x4c7   :  { %v3112_v8 = vpop.eup %3111  ;;  %3127 = vrcp.f32 %v1333_v32  ;;  %v1335_v31 = vadd.f32 %v4254_v39, %v4205_v16  ;;  %v1557_v57 = vpop.xlane.xlu1 %1556  ;;  %v1578_v3 = vadd.f32 %v1570_v44, %v1554_v33 }
 0x4c8   :  { %v4259_v22 = vpop.eup %3113  ;;  %3129 = vrcp.f32 %v2418_v42  ;;  %v2419_v29 = vadd.f32 %v3112_v8, %v2409_v46  ;;  %v2666_v25 = vrot.slane %v4256_v4, %v3347_v51  ;;  %v2613_v52 = vmul.f32 %v3112_v8, %v4229_v21 }
 0x4c9   :  { %v3116_v53 = vpop.eup %3115  ;;  %3131 = vrcp.f32 %v1334_v5  ;;  %v2420_v56 = vadd.f32 %v4259_v22, %v2412_v59  ;;  %v1579_v30 = vadd.f32 %v1571_v14, %v1557_v57  ;;  %v1572_v46 = vmul.f32 %v4254_v39, %v4220_v7 }
 0x4ca   :  { %v3118_v40 = vpop.eup %3117  ;;  %v2584_v50 = vpop.xlane.xlu0 %2583  ;;  %v1593_v27 = vmul.f32 %v3116_v53, %v1577_v35  ;;  %3133 = vrcp.f32 %v2419_v29 }
 0x4cb   :  { %v3120_v15 = vpop.eup %3119  ;;  %v2616_v20 = vadd.f32 %v2608_v23, %v2584_v50  ;;  %v1590_v47 = vmul.f32 %v3118_v40, %v1574_v12  ;;  %3135 = vrcp.f32 %v1335_v31  ;;  %v1560_v4 = vpop.xlane.xlu1 %1559  ;;  %v2614_v12 = vmul.f32 %v4259_v22, %v4229_v21 }
 0x4cc   :  { %v3122_v28 = vpop.eup %3121  ;;  %v2635_v62 = vmul.f32 %v3120_v15, %v2619_v10  ;;  %3137 = vrcp.f32 %v2420_v56  ;;  %v1580_v23 = vadd.f32 %v1572_v46, %v1560_v4 }
 0x4cd   :  { %v3124_v36 = vpop.eup %3123  ;;  %v2632_v24 = vmul.f32 %v3122_v28, %v2616_v20 }
 0x4ce   :  { %v2643_v55 = vadd.f32 %v2635_v62, %v1593_v27  ;;  %v2590_v43 = vpop.xlane.xlu0 %2589  ;;  %v3126_v19 = vpop.eup %3125  ;;  %v1592_v13 = vmul.f32 %v3124_v36, %v1576_v49 }
 0x4cf   :  { %v2640_v38 = vadd.f32 %v2632_v24, %v1590_v47  ;;  %v2618_v16 = vadd.f32 %v2610_v18, %v2590_v43 }
 0x4d0   :  { %v2674_v32 = vrot.slane %v2643_v55, %v3347_v51 }
 0x4d1   :  { %v2662_v17 = vrot.slane %v2640_v38, %v3347_v51  ;;  %v2634_v0 = vmul.f32 %v3126_v19, %v2618_v16  ;;  %v3128_v54 = vpop.eup %3127 }
 0x4d2   :  { %v2596_v9 = vpop.xlane.xlu0 %2595  ;;  %v3130_v6 = vpop.eup %3129  ;;  %v1594_v63 = vmul.f32 %v3128_v54, %v1578_v3 }
 0x4d3   :  { %v2687_v48 = vsel %vm1466_vm6, %v2662_v17, %v2658_v1  ;;  %v2642_v34 = vadd.f32 %v2634_v0, %v1592_v13  ;;  %v2620_v2 = vadd.f32 %v2612_v41, %v2596_v9  ;;  %v3132_v42 = vpop.eup %3131 }
 0x4d4   :  { %v2688_v11 = vsel %vm1467_vm7, %v2666_v25, %v2687_v48  ;;  %v3134_v53 = vpop.eup %3133  ;;  %v1595_v5 = vmul.f32 %v3132_v42, %v1579_v30 }
 0x4d5   :  { %v2670_v59 = vrot.slane %v2642_v34, %v3347_v51  ;;  %v2636_v60 = vmul.f32 %v3130_v6, %v2620_v2  ;;  %v3136_v10 = vpop.eup %3135 }
 0x4d6   :  { %v2599_v26 = vpop.xlane.xlu0 %2598  ;;  %v3138_v39 = vpop.eup %3137  ;;  %v1596_v15 = vmul.f32 %v3136_v10, %v1580_v23 }
 0x4d7   :  { %v2689_v58 = vsel %vm1469_vm8, %v2670_v59, %v2688_v11  ;;  %v2644_v61 = vadd.f32 %v2636_v60, %v1594_v63  ;;  %v2621_v37 = vadd.f32 %v2613_v52, %v2599_v26 }
 0x4d8   :  { %v2690_v8 = vsel %vm1471_vm9, %v2674_v32, %v2689_v58 }
 0x4d9   :  { %v2678_v40 = vrot.slane %v2644_v61, %v3347_v51  ;;  %v2637_v35 = vmul.f32 %v3134_v53, %v2621_v37 }
 0x4da   :  { %v2602_v33 = vpop.xlane.xlu0 %2601 }
 0x4db   :  { %v2691_v29 = vsel %vm1473_vm10, %v2678_v40, %v2690_v8  ;;  %v2645_v50 = vadd.f32 %v2637_v35, %v1595_v5  ;;  %v2622_v7 = vadd.f32 %v2614_v12, %v2602_v33 }
 0x4dd   :  { %v2682_v20 = vrot.slane %v2645_v50, %v3347_v51  ;;  %v2638_v28 = vmul.f32 %v3138_v39, %v2622_v7 }
 0x4df   :  { %v2692_v45 = vsel %vm1475_vm11, %v2682_v20, %v2691_v29  ;;  %v2646_v31 = vadd.f32 %v2638_v28, %v1596_v15 }
 0x4e1   :  { %v2686_v21 = vrot.slane %v2646_v31, %v3347_v51 }
 0x4e3   :  { %v2693_v22 = vsel %vm1477_vm13, %v2686_v21, %v2692_v45 }
 0x4e4   :  { %2695 = vst.msk [vmem:[%s4308_s7] sm:$0xff] %vm1223_vm12, %v2693_v22 }

// kernel: dummy_transformer_gru_forward.3
= control target key start
LH: loop header
LB: loop body
LE: loop exit
PB: predicated region body
PF: predicated region fallthrough
CT: control target
= control target key end

     0   :  { %s3663_s24 = smov 0   ;;  %s3665_s25 = smov 0   ;;  %s4238_s0 = inlined_call_operand.vmem [shape: f32[32,2,16], index: 0, kind: input, shape index: {}]   ;;  %s4239_s1 = inlined_call_operand.vmem [shape: f32[32,2], index: 1, kind: input, shape index: {}]   ;;  %s4240_s2 = inlined_call_operand.vmem [shape: f32[48,16], index: 2, kind: input, shape index: {}]   ;;  %s4241_s3 = inlined_call_operand.vmem [shape: f32[48,16], index: 3, kind: input, shape index: {}]   ;;  %s4242_s4 = inlined_call_operand.vmem [shape: f32[1,48], index: 4, kind: input, shape index: {}]   ;;  %s4243_s5 = inlined_call_operand.vmem [shape: f32[1,48], index: 5, kind: input, shape index: {}]   ;;  %s4244_s6 = inlined_call_operand.vmem [shape: f32[1,16], index: 6, kind: input, shape index: {}]   ;;  %s4245_s7 = inlined_call_operand.vmem [shape: f32[32,2], index: 7, kind: output, shape index: {}]  }
   0x1   :  { %s3667_s26 = smov 0  }
   0x2 LB: > { %s26_s27 = sadd.s32 1, %s3608_s25  ;;  %p2719_p0 = scmp.ge.s32.totalorder %s3612_s26, 1  ;;  %s3612_s26 = sphi %s3667_s26, %s17_s26   ;;  %s3608_s25 = sphi %s3665_s25, %s4249_s25   ;;  %s3604_s24 = sphi %s3663_s24, %s4248_s24  }
   0x3   : > { %p27_p1 = scmp.ge.s32.totalorder %s26_s27, 2  ;;  %p273_p2 = scmp.lt.s32.totalorder %s3612_s26, 3 }
   0x5   : > { %s4251_s27 = smov (%p27_p1, %s26_s27), 0  ;;  %p274_p3 = pnand %p2719_p0, %p273_p2 }
   0x6   : > { %s2720_s28 = sshll.u32 (!%p274_p3), %s3604_s24, 4  ;;  %s2722_s29 = sshll.u32 (!%p274_p3), %s3604_s24, 1 }
   0x7   : > { %277 = sbr.rel (%p274_p3) target bundleno = 11302 (0x2c26), region = 48  ;;  %p320_p4 = scmp.lt.s32.totalorder (!%p274_p3), %s2720_s28, 31 }
   0x8   : > { %p329_p5 = scmp.lt.s32.totalorder (!%p274_p3), %s2722_s29, 3  ;;  %p2726_p6 = scmp.ne.s32.totalorder (!%p274_p3), %s3604_s24, 0 }
   0xe   : > { %s4253_s28 = smov (!%p320_p4, %s2720_s28), 31  ;;  %s4255_s29 = smov (!%p329_p5, %s2722_s29), 3 }
   0xf   : > { %s2721_s30 = sshll.u32 %s4253_s28, 1  ;;  %s2723_s11 = sshll.u32 %s4255_s29, 3  ;;  %vm350_vm0 = vcmask (!%p2726_p6), 123904   ;;  %v3614_v0 = vmov (!%p2726_p6), 0.0  }
  0x10   : > { %s3684_s10 = scalar_lea.vmem %s4238_s0, %s2721_s30  ;;  %s3689_s14 = scalar_lea.vmem %s4239_s1, %s2723_s11  ;;  %351 = vst.msk [vmem:[#allocation2] sm:$0x3] (!%p2726_p6), %vm350_vm0, %v3614_v0 }
  0x11   : > { %s3694_s17 = scalar_lea.vmem %s4245_s7, %s2723_s11  ;;  %349 = sbr.rel (%p2726_p6) target bundleno = 24 (0x18), region = 52 }
  0x18 PF: > { %v368_v1 = vld [vmem:[%s4240_s2] sm:$0xff]  ;;  %v369_v2 = vld [vmem:[%s4240_s2 + $0x8] sm:$0xff]  ;;  %vm474_vm1 = vcmask 130048   ;;  %v401_v4 = vlaneseq  ;;  %v3615_v5 = vmov 0.0|0.0   ;;  %v370_v9 = vld [vmem:[%s4240_s2 + $0x10] sm:$0xff]  ;;  %vm3616_vm3 = vmmov 0  }
  0x19   : > { %v691_v3 = vld [vmem:[%s4241_s3] sm:$0xff]  ;;  %3268 = vmatprep.subr.bf16.mxu1 %v3615_v5  ;;  %v3250_v6 = vpack.c.bf16 %v369_v2, %v368_v1  ;;  %vm3708_vm2 = vmpackc.low %vm474_vm1, %vm474_vm1  ;;  %v692_v8 = vld [vmem:[%s4241_s3 + $0x8] sm:$0xff]  ;;  %v3617_v12 = vmov 0.0   ;;  %v3618_v13 = vmov 1983009808   ;;  %vm674_vm4 = vcmask 386048  }
  0x1a   : > { %v3718_v10 = vpack.c.bf16 %v692_v8, %v691_v3  ;;  %v371_v11 = vld [vmem:[%s4240_s2 + $0x18] sm:$0xff]  ;;  %3022 = vmatprep.mubr.msk.f32.mxu1 %vm3616_vm3, %v3617_v12  ;;  %v399_v14 = vunpack.c.l.s4 %v3618_v13  ;;  %v3726_v15 = vshrl.u32 %v401_v4, 7  ;;  %v693_v17 = vld [vmem:[%s4241_s3 + $0x10] sm:$0xff]  ;;  %v352_v18 = vld [vmem:[%s3684_s10] sm:$0x3]  ;;  %s3619_s9 = smov 96  }
  0x1b   : > { %3252 = vmatprep.subr.msk.bf16.mxu0 %vm3708_vm2, %v3250_v6  ;;  %v3256_v16 = vpack.c.bf16 %v371_v11, %v370_v9  ;;  %v353_v19 = vld [vmem:[%s3684_s10 + $0x2] sm:$0x3]  ;;  %v694_v21 = vld [vmem:[%s4241_s3 + $0x18] sm:$0xff]  ;;  %v354_v22 = vld [vmem:[%s3684_s10 + $0x4] sm:$0x3]  ;;  %s3620_s11 = smov 32  }
  0x1c   : > { %3271 = vmatpush3.bf16.xpose.msk.msra.mxu1 %vm3708_vm2, %v3718_v10  ;;  %3255 = vmatpush3.bf16.xpose.msk.msra.mxu0 %vm3708_vm2, %v3250_v6  ;;  %v400_v20 = vunpack.c.0.s8 %v399_v14  ;;  %v355_v23 = vld [vmem:[%s3684_s10 + $0x6] sm:$0x3]  ;;  %v396_v24 = vcombine.low %v352_v18, %v353_v19  ;;  %v373_v26 = vld [vmem:[%s4240_s2 + $0x28] sm:$0xff]  ;;  %v3757_v29 = vpack.c.bf16 %v694_v21, %v693_v17  ;;  %v3791_v46 = vld [vmem:[#allocation2] sm:$0x3]  ;;  %s3621_s12 = smov 112  }
  0x1d   : > { %3272 = vmatprep.subr.bf16.mxu1 %v3615_v5  ;;  %3258 = vmatprep.subr.msk.bf16.mxu0 %vm3708_vm2, %v3256_v16  ;;  %v372_v25 = vld [vmem:[%s4240_s2 + $0x20] sm:$0xff]  ;;  %v397_v27 = vcombine.low %v354_v22, %v355_v23  ;;  %v356_v34 = vld [vmem:[%s3684_s10 + $0x8] sm:$0x3]  ;;  %v357_v35 = vld [vmem:[%s3684_s10 + $0xa] sm:$0x3]  ;;  %s3622_s13 = smov 16  }
  0x1e   : > { %v3755_v28 = vsub.s32 %v400_v20, %v3726_v15  ;;  %v3262_v32 = vpack.c.bf16 %v373_v26, %v372_v25  ;;  %v358_v36 = vld [vmem:[%s3684_s10 + $0xc] sm:$0x3]  ;;  %v359_v37 = vld [vmem:[%s3684_s10 + $0xe] sm:$0x3]  ;;  %v695_v38 = vld [vmem:[%s4241_s3 + $0x20] sm:$0xff]  ;;  %v413_v40 = vcombine.low %v356_v34, %v357_v35  ;;  %vm830_vm5 = vcmask 123904  }
  0x1f   : > { %v696_v39 = vld [vmem:[%s4241_s3 + $0x28] sm:$0xff]  ;;  %v414_v41 = vcombine.low %v358_v36, %v359_v37  ;;  %v2727_v47 = vld [vmem:[%s4242_s4] ss:$0 sm:$0xff]  ;;  %v360_v21 = vld [vmem:[%s3684_s10 + $0x10] sm:$0x3]  ;;  %vm2594_vm6 = vcmask 1041409  }
  0x20   : > { %v404_v30 = vrot.slane %v396_v24, %v3755_v28  ;;  %v411_v31 = vrot.slane %v397_v27, %v3755_v28  ;;  %v3780_v42 = vpack.c.bf16 %v696_v39, %v695_v38  ;;  %v421_v43 = vrot.slane %v413_v40, %v3755_v28  ;;  %v3829_v50 = vld [vmem:[%s4243_s5] ss:$0 sm:$0xff]  ;;  %v361_v22 = vld [vmem:[%s3684_s10 + $0x12] sm:$0x3]  ;;  %v362_v23 = vld [vmem:[%s3684_s10 + $0x14] sm:$0x3] }
  0x21   : > { %v428_v44 = vrot.slane %v414_v41, %v3755_v28  ;;  %v464_v48 = vcombine.low %v2727_v47, %v2727_v47  ;;  %v363_v24 = vld [vmem:[%s3684_s10 + $0x16] sm:$0x3]  ;;  %v430_v25 = vcombine.low %v360_v21, %v361_v22  ;;  %v364_v26 = vld [vmem:[%s3684_s10 + $0x18] sm:$0x3]  ;;  %v365_v27 = vld [vmem:[%s3684_s10 + $0x1a] sm:$0x3] }
  0x22   : > { %v412_v33 = vcombine.low %v404_v30, %v411_v31  ;;  %v431_v30 = vcombine.low %v362_v23, %v363_v24  ;;  %v366_v31 = vld [vmem:[%s3684_s10 + $0x1c] sm:$0x3]  ;;  %vm2596_vm7 = vcmask 1042434   ;;  %vm2598_vm8 = vcmask 1043459  }
  0x23   : > { %v429_v45 = vcombine.low %v421_v43, %v428_v44  ;;  %v471_v49 = vrot.slane %v464_v48, %v3755_v28  ;;  %v438_v34 = vrot.slane %v430_v25, %v3755_v28  ;;  %vm2600_vm9 = vcmask 1044484  }
  0x24   : > { %3275 = vmatpush3.bf16.xpose.msk.msra.mxu1 %vm3708_vm2, %v3757_v29  ;;  %3261 = vmatpush3.bf16.xpose.msk.msra.mxu0 %vm3708_vm2, %v3256_v16  ;;  %v445_v37 = vrot.slane %v431_v30, %v3755_v28  ;;  %vm2602_vm10 = vcmask 1045509   ;;  %vm2604_vm11 = vcmask 1046534   ;;  %vm2606_vm12 = vcmask 1047559  }
  0x25   : > { %3276 = vmatprep.subr.bf16.mxu1 %v3615_v5  ;;  %3264 = vmatprep.subr.msk.bf16.mxu0 %vm3708_vm2, %v3262_v32  ;;  %v3831_v51 = vcombine.low %v471_v49, %v471_v49  ;;  %vm2619_vm13 = vcmask 15360  }
  0x26   : > { %3004 = vmatprep.mubr.msk.f32.mxu0 %vm474_vm1, %v412_v33  ;;  %v447_v33 = vcombine.low %v364_v26, %v365_v27  ;;  %v446_v40 = vcombine.low %v438_v34, %v445_v37 }
  0x28   : > { %v455_v38 = vrot.slane %v447_v33, %v3755_v28 }
  0x2c   : > { %3279 = vmatpush3.bf16.xpose.msk.msra.mxu1 %vm3708_vm2, %v3780_v42  ;;  %3267 = vmatpush3.bf16.xpose.msk.msra.mxu0 %vm3708_vm2, %v3262_v32  ;;  %v367_v32 = vld [vmem:[%s3684_s10 + $0x1e] sm:$0x3] }
  0x2d   : > { %3280 = vmatprep.subr.bf16.mxu0 %v3615_v5  ;;  %3292 = vmatprep.subr.bf16.mxu1 %v3615_v5  ;;  %v448_v35 = vcombine.low %v366_v31, %v367_v32 }
  0x2f   : > { %v462_v39 = vrot.slane %v448_v35, %v3755_v28 }
  0x31   : > { %v463_v41 = vcombine.low %v455_v38, %v462_v39 }
  0x33   : > { %3023 = vmatmul.mubr.msk.f32.vlgmr.msra.gmra.mrb[0].mxu1 %vm474_vm1, %v3791_v46  ;;  %3005 = vmatmul.mubr.msk.f32.vlgmr.msra.gmra.mrb[0].mxu0 %vm474_vm1, %v429_v45 }
  0x34   : > { %3283 = vmatpush3.bf16.xpose.msk.msra.mxu0 %vm3708_vm2, %v3718_v10  ;;  %3295 = vmatpush3.bf16.xpose.msk.msra.mxu1 %vm3708_vm2, %v3718_v10 }
  0x35   : > { %3284 = vmatprep.subr.bf16.mxu0 %v3615_v5  ;;  %3296 = vmatprep.subr.bf16.mxu1 %v3615_v5 }
  0x36   : > { %3052 = vmatprep.mubr.msk.f32.mxu1 %vm3616_vm3, %v3617_v12  ;;  %3007 = vmatprep.mubr.msk.f32.mxu0 %vm474_vm1, %v446_v40 }
  0x37   : > { %3008 = vmatmul.mubr.msk.f32.gmra.mrb[2].mxu0 %vm474_vm1, %v463_v41 }
  0x38   : > { %3037 = vmatprep.mubr.msk.f32.mxu0 %vm3616_vm3, %v3617_v12 }
  0x3c   : > { %3287 = vmatpush3.bf16.xpose.msk.msra.mxu0 %vm3708_vm2, %v3757_v29  ;;  %3299 = vmatpush3.bf16.xpose.msk.msra.mxu1 %vm3708_vm2, %v3757_v29 }
  0x3d   : > { %3288 = vmatprep.subr.bf16.mxu0 %v3615_v5  ;;  %3300 = vmatprep.subr.bf16.mxu1 %v3615_v5 }
  0x44   : > { %3291 = vmatpush3.bf16.xpose.msk.msra.mxu0 %vm3708_vm2, %v3780_v42  ;;  %3303 = vmatpush3.bf16.xpose.msk.msra.mxu1 %vm3708_vm2, %v3780_v42 }
  0x45   : > { %3304 = vmatprep.subr.bf16.mxu0 %v3615_v5  ;;  %3316 = vmatprep.subr.bf16.mxu1 %v3615_v5 }
 0x106   : > { %v793_v52 = vpop.f32.mrb[0].mxu1  ;;  %v3006_v53 = vpop.f32.mrb[0].mxu0 }
 0x107   : > { %v794_v54 = vadd.f32 %v3829_v50, %v793_v52  ;;  %v573_v55 = vadd.f32 %v3006_v53, %v3831_v51  ;;  %v3024_v56 = vpop.f32.mrb[1].mxu1  ;;  %v567_v57 = vpop.f32.mrb[1].mxu0 }
 0x108   : > { %v568_v58 = vadd.f32 %v567_v57, %v3831_v51 }
 0x109   : > { %v607_v59 = vcombine.high %v573_v55, %v573_v55  ;;  %v614_v60 = vrot.slane %v573_v55, %v3755_v28  ;;  %805 = vrot.lane.b32.xlu0 %v794_v54, %s3619_s9 }
 0x10a   : > { %v590_v61 = vcombine.high %v568_v58, %v568_v58  ;;  %v597_v62 = vrot.slane %v568_v58, %v3755_v28  ;;  %v3009_v52 = vpop.f32.mrb[2].mxu0 }
 0x10b   : > { %v621_v63 = vrot.slane %v607_v59, %v3755_v28  ;;  %v622_v0 = vcombine.high %v614_v60, %v614_v60  ;;  %679 = vst.msk [vmem:[#allocation3 + $0x8] sm:$0x3] %vm674_vm4, %v614_v60  ;;  %v583_v53 = vadd.f32 %v3009_v52, %v3831_v51 }
 0x10c   : > { %v604_v1 = vrot.slane %v590_v61, %v3755_v28  ;;  %v605_v2 = vcombine.high %v597_v62, %v597_v62  ;;  %675 = vst.msk [vmem:[#allocation3] sm:$0x3] %vm674_vm4, %v597_v62 }
 0x10d   : > { %v623_v3 = vcombine.high %v621_v63, %v621_v63  ;;  %680 = vst.msk [vmem:[#allocation3 + $0xa] sm:$0x3] %vm674_vm4, %v622_v0  ;;  %681 = vst.msk [vmem:[#allocation3 + $0xc] sm:$0x3] %vm674_vm4, %v621_v63  ;;  %v648_v56 = vrot.slane %v583_v53, %v3755_v28 }
 0x10e   : > { %v606_v6 = vcombine.high %v604_v1, %v604_v1  ;;  %676 = vst.msk [vmem:[#allocation3 + $0x2] sm:$0x3] %vm674_vm4, %v605_v2  ;;  %677 = vst.msk [vmem:[#allocation3 + $0x4] sm:$0x3] %vm674_vm4, %v604_v1 }
 0x10f   : > { %682 = vst.msk [vmem:[#allocation3 + $0xe] sm:$0x3] %vm674_vm4, %v623_v3  ;;  %v656_v60 = vcombine.high %v648_v56, %v648_v56  ;;  %687 = vst.msk [vmem:[#allocation3 + $0x18] sm:$0x3] %vm674_vm4, %v648_v56 }
 0x110   : > { %678 = vst.msk [vmem:[#allocation3 + $0x6] sm:$0x3] %vm674_vm4, %v606_v6 }
 0x111   : > { %688 = vst.msk [vmem:[#allocation3 + $0x1a] sm:$0x3] %vm674_vm4, %v656_v60 }
 0x113   : > { %v699_v8 = vld [vmem:[#allocation3] sm:$0x3] }
 0x114   : > { %v797_v9 = vadd.f32 %v794_v54, %v699_v8  ;;  %v577_v54 = vpop.f32.mrb[3].mxu0 }
 0x115   : > { %v578_v55 = vadd.f32 %v577_v54, %v3831_v51  ;;  %v833_v3 = vld [vmem:[#allocation3 + $0x2] sm:$0x3]  ;;  %v939_v31 = vld [vmem:[#allocation3 + $0x4] sm:$0x3] }
 0x116   : > { %v2746_v11 = vmul.f32 -1.442695, %v797_v9 }
 0x117   : > { %v624_v57 = vcombine.high %v578_v55, %v578_v55  ;;  %v631_v58 = vrot.slane %v578_v55, %v3755_v28  ;;  %v1045_v55 = vld [vmem:[#allocation3 + $0x6] sm:$0x3] }
 0x118   : > { %3493 = vpow2.f32 %v2746_v11 }
 0x119   : > { %v638_v61 = vrot.slane %v624_v57, %v3755_v28  ;;  %v639_v62 = vcombine.high %v631_v58, %v631_v58  ;;  %683 = vst.msk [vmem:[#allocation3 + $0x10] sm:$0x3] %vm674_vm4, %v631_v58 }
 0x11b   : > { %v640_v51 = vcombine.high %v638_v61, %v638_v61  ;;  %684 = vst.msk [vmem:[#allocation3 + $0x12] sm:$0x3] %vm674_vm4, %v639_v62  ;;  %685 = vst.msk [vmem:[#allocation3 + $0x14] sm:$0x3] %vm674_vm4, %v638_v61 }
 0x11d   : > { %686 = vst.msk [vmem:[#allocation3 + $0x16] sm:$0x3] %vm674_vm4, %v640_v51 }
 0x122   : > { %v3494_v13 = vpop.eup %3493 }
 0x123   : > { %v801_v14 = vadd.f32 1.0, %v3494_v13 }
 0x125   : > { %3495 = vrcp.f32 %v801_v14 }
 0x12f   : > { %v3496_v16 = vpop.eup %3495 }
 0x130   : > { %v815_v44 = vsub.f32 1.0, %v3496_v16 }
 0x17b   : > { %v806_v17 = vpop.permute.xlu0 %805 }
 0x17c   : > { %v808_v18 = vmul.f32 %v3496_v16, %v806_v17 }
 0x17e   : > { %810 = vrot.lane.b32.xlu0 %v808_v18, %s3620_s11 }
 0x1f0   : > { %v811_v19 = vpop.permute.xlu0 %810 }
 0x1f1   : > { %v813_v20 = vadd.f32 %v811_v19, %v699_v8 }
 0x1f3   : > { %3497 = vtanh.f32 %v813_v20 }
 0x1fd   : > { %v3498_v36 = vpop.eup %3497 }
 0x1fe   : > { %817 = vrot.lane.b32.xlu1 %v3498_v36, %s3621_s12 }
 0x202   : > { %821 = vrot.lane.b32.xlu1 %v3791_v46, %s3622_s13  ;;  %v641_v46 = vcombine.high %v583_v53, %v583_v53 }
 0x204   : > { %v655_v59 = vrot.slane %v641_v46, %v3755_v28 }
 0x206   : > { %v657_v63 = vcombine.high %v655_v59, %v655_v59  ;;  %689 = vst.msk [vmem:[#allocation3 + $0x1c] sm:$0x3] %vm674_vm4, %v655_v59 }
 0x208   : > { %690 = vst.msk [vmem:[#allocation3 + $0x1e] sm:$0x3] %vm674_vm4, %v657_v63 }
 0x270   : > { %v818_v43 = vpop.permute.xlu1 %817 }
 0x271   : > { %v820_v47 = vmul.f32 %v818_v43, %v815_v44 }
 0x274   : > { %v822_v45 = vpop.permute.xlu1 %821 }
 0x275   : > { %v824_v48 = vmul.f32 %v3496_v16, %v822_v45 }
 0x277   : > { %v825_v49 = vadd.f32 %v824_v48, %v820_v47 }
 0x279   : > { %827 = vrot.lane.b32.xlu0 %v825_v49, %s3621_s12 }
 0x2eb   : > { %v828_v0 = vpop.permute.xlu0 %827 }
 0x2ec   : > { %831 = vst.msk [vmem:[#allocation4] sm:$0x3] %vm830_vm5, %v828_v0  ;;  %3038 = vmatmul.mubr.msk.f32.vlgmr.msra.gmra.mrb[4].mxu0 %vm474_vm1, %v828_v0 }
 0x2ed   : > { %3307 = vmatpush3.bf16.xpose.msk.msra.mxu0 %vm3708_vm2, %v3718_v10  ;;  %3067 = vmatprep.mubr.msk.f32.mxu0 %vm3616_vm3, %v3617_v12 }
 0x2ee   : > { %3308 = vmatprep.subr.bf16.mxu0 %v3615_v5 }
 0x2f5   : > { %3311 = vmatpush3.bf16.xpose.msk.msra.mxu0 %vm3708_vm2, %v3757_v29 }
 0x2f6   : > { %3312 = vmatprep.subr.bf16.mxu0 %v3615_v5 }
 0x2fd   : > { %3315 = vmatpush3.bf16.xpose.msk.msra.mxu0 %vm3708_vm2, %v3780_v42 }
 0x2fe   : > { %3328 = vmatprep.subr.bf16.mxu0 %v3615_v5 }
 0x3bf   : > { %v902_v28 = vpop.f32.mrb[4].mxu0 }
 0x3c0   : > { %v903_v1 = vadd.f32 %v3829_v50, %v902_v28  ;;  %v3039_v2 = vpop.f32.mrb[5].mxu0 }
 0x3c2   : > { %914 = vrot.lane.b32.xlu1 %v903_v1, %s3619_s9  ;;  %v906_v6 = vadd.f32 %v903_v1, %v833_v3 }
 0x3c4   : > { %v2754_v8 = vmul.f32 -1.442695, %v906_v6 }
 0x3c6   : > { %3499 = vpow2.f32 %v2754_v8 }
 0x3d0   : > { %v3500_v9 = vpop.eup %3499 }
 0x3d1   : > { %v910_v11 = vadd.f32 1.0, %v3500_v9 }
 0x3d3   : > { %3501 = vrcp.f32 %v910_v11 }
 0x3dd   : > { %v3502_v13 = vpop.eup %3501 }
 0x3de   : > { %v924_v20 = vsub.f32 1.0, %v3502_v13  ;;  %v930_v22 = vmul.f32 %v3502_v13, %v825_v49 }
 0x434   : > { %v915_v14 = vpop.permute.xlu1 %914 }
 0x435   : > { %v917_v16 = vmul.f32 %v3502_v13, %v915_v14  ;;  %v1151_v13 = vld [vmem:[#allocation3 + $0x8] sm:$0x3] }
 0x437   : > { %919 = vrot.lane.b32.xlu0 %v917_v16, %s3620_s11 }
 0x4a9   : > { %v920_v17 = vpop.permute.xlu0 %919 }
 0x4aa   : > { %v922_v18 = vadd.f32 %v920_v17, %v833_v3 }
 0x4ac   : > { %3503 = vtanh.f32 %v922_v18 }
 0x4b6   : > { %v3504_v19 = vpop.eup %3503 }
 0x4b7   : > { %926 = vrot.lane.b32.xlu1 %v3504_v19, %s3621_s12 }
 0x529   : > { %v927_v21 = vpop.permute.xlu1 %926 }
 0x52a   : > { %v929_v23 = vmul.f32 %v927_v21, %v924_v20 }
 0x52c   : > { %v931_v24 = vadd.f32 %v930_v22, %v929_v23 }
 0x52e   : > { %933 = vrot.lane.b32.xlu0 %v931_v24, %s3621_s12 }
 0x5a0   : > { %v934_v25 = vpop.permute.xlu0 %933 }
 0x5a1   : > { %937 = vst.msk [vmem:[#allocation4 + $0x2] sm:$0x3] %vm830_vm5, %v934_v25  ;;  %3053 = vmatmul.mubr.msk.f32.vlgmr.msra.gmra.mrb[2].mxu1 %vm474_vm1, %v934_v25 }
 0x5a2   : > { %3319 = vmatpush3.bf16.xpose.msk.msra.mxu1 %vm3708_vm2, %v3718_v10  ;;  %3082 = vmatprep.mubr.msk.f32.mxu1 %vm3616_vm3, %v3617_v12 }
 0x5a3   : > { %3320 = vmatprep.subr.bf16.mxu1 %v3615_v5 }
 0x5aa   : > { %3323 = vmatpush3.bf16.xpose.msk.msra.mxu1 %vm3708_vm2, %v3757_v29 }
 0x5ab   : > { %3324 = vmatprep.subr.bf16.mxu1 %v3615_v5 }
 0x5b2   : > { %3327 = vmatpush3.bf16.xpose.msk.msra.mxu1 %vm3708_vm2, %v3780_v42 }
 0x5b3   : > { %3340 = vmatprep.subr.bf16.mxu1 %v3615_v5 }
 0x674   : > { %v1008_v26 = vpop.f32.mrb[2].mxu1 }
 0x675   : > { %v1009_v27 = vadd.f32 %v3829_v50, %v1008_v26  ;;  %v3054_v30 = vpop.f32.mrb[3].mxu1 }
 0x677   : > { %1020 = vrot.lane.b32.xlu1 %v1009_v27, %s3619_s9  ;;  %v1012_v32 = vadd.f32 %v1009_v27, %v939_v31 }
 0x679   : > { %v2762_v33 = vmul.f32 -1.442695, %v1012_v32 }
 0x67b   : > { %3505 = vpow2.f32 %v2762_v33 }
 0x685   : > { %v3506_v34 = vpop.eup %3505 }
 0x686   : > { %v1016_v35 = vadd.f32 1.0, %v3506_v34 }
 0x688   : > { %3507 = vrcp.f32 %v1016_v35 }
 0x692   : > { %v3508_v36 = vpop.eup %3507 }
 0x693   : > { %v1030_v43 = vsub.f32 1.0, %v3508_v36  ;;  %v1036_v45 = vmul.f32 %v3508_v36, %v931_v24 }
 0x6e9   : > { %v1021_v37 = vpop.permute.xlu1 %1020 }
 0x6ea   : > { %v1023_v38 = vmul.f32 %v3508_v36, %v1021_v37  ;;  %v1257_v36 = vld [vmem:[#allocation3 + $0xa] sm:$0x3] }
 0x6ec   : > { %1025 = vrot.lane.b32.xlu0 %v1023_v38, %s3620_s11 }
 0x75e   : > { %v1026_v39 = vpop.permute.xlu0 %1025 }
 0x75f   : > { %v1028_v40 = vadd.f32 %v1026_v39, %v939_v31 }
 0x761   : > { %3509 = vtanh.f32 %v1028_v40 }
 0x76b   : > { %v3510_v41 = vpop.eup %3509 }
 0x76c   : > { %1032 = vrot.lane.b32.xlu1 %v3510_v41, %s3621_s12 }
 0x7de   : > { %v1033_v44 = vpop.permute.xlu1 %1032 }
 0x7df   : > { %v1035_v47 = vmul.f32 %v1033_v44, %v1030_v43 }
 0x7e1   : > { %v1037_v48 = vadd.f32 %v1036_v45, %v1035_v47 }
 0x7e3   : > { %1039 = vrot.lane.b32.xlu0 %v1037_v48, %s3621_s12 }
 0x855   : > { %v1040_v49 = vpop.permute.xlu0 %1039 }
 0x856   : > { %1043 = vst.msk [vmem:[#allocation4 + $0x4] sm:$0x3] %vm830_vm5, %v1040_v49  ;;  %3068 = vmatmul.mubr.msk.f32.vlgmr.msra.gmra.mrb[6].mxu0 %vm474_vm1, %v1040_v49 }
 0x857   : > { %3331 = vmatpush3.bf16.xpose.msk.msra.mxu0 %vm3708_vm2, %v3718_v10  ;;  %3097 = vmatprep.mubr.msk.f32.mxu0 %vm3616_vm3, %v3617_v12 }
 0x858   : > { %3332 = vmatprep.subr.bf16.mxu0 %v3615_v5 }
 0x85f   : > { %3335 = vmatpush3.bf16.xpose.msk.msra.mxu0 %vm3708_vm2, %v3757_v29 }
 0x860   : > { %3336 = vmatprep.subr.bf16.mxu0 %v3615_v5 }
 0x867   : > { %3339 = vmatpush3.bf16.xpose.msk.msra.mxu0 %vm3708_vm2, %v3780_v42 }
 0x868   : > { %3352 = vmatprep.subr.bf16.mxu0 %v3615_v5 }
 0x929   : > { %v1114_v52 = vpop.f32.mrb[6].mxu0 }
 0x92a   : > { %v1115_v53 = vadd.f32 %v3829_v50, %v1114_v52  ;;  %v3069_v54 = vpop.f32.mrb[7].mxu0 }
 0x92c   : > { %1126 = vrot.lane.b32.xlu1 %v1115_v53, %s3619_s9  ;;  %v1118_v46 = vadd.f32 %v1115_v53, %v1045_v55 }
 0x92e   : > { %v2770_v56 = vmul.f32 -1.442695, %v1118_v46 }
 0x930   : > { %3511 = vpow2.f32 %v2770_v56 }
 0x93a   : > { %v3512_v57 = vpop.eup %3511 }
 0x93b   : > { %v1122_v58 = vadd.f32 1.0, %v3512_v57 }
 0x93d   : > { %3513 = vrcp.f32 %v1122_v58 }
 0x947   : > { %v3514_v59 = vpop.eup %3513 }
 0x948   : > { %v1136_v0 = vsub.f32 1.0, %v3514_v59  ;;  %v1142_v1 = vmul.f32 %v3514_v59, %v1037_v48 }
 0x99e   : > { %v1127_v60 = vpop.permute.xlu1 %1126 }
 0x99f   : > { %v1129_v61 = vmul.f32 %v3514_v59, %v1127_v60  ;;  %v1363_v59 = vld [vmem:[#allocation3 + $0xc] sm:$0x3] }
 0x9a1   : > { %1131 = vrot.lane.b32.xlu0 %v1129_v61, %s3620_s11 }
 0xa13   : > { %v1132_v62 = vpop.permute.xlu0 %1131 }
 0xa14   : > { %v1134_v63 = vadd.f32 %v1132_v62, %v1045_v55 }
 0xa16   : > { %3515 = vtanh.f32 %v1134_v63 }
 0xa20   : > { %v3516_v51 = vpop.eup %3515 }
 0xa21   : > { %1138 = vrot.lane.b32.xlu1 %v3516_v51, %s3621_s12 }
 0xa93   : > { %v1139_v28 = vpop.permute.xlu1 %1138 }
 0xa94   : > { %v1141_v2 = vmul.f32 %v1139_v28, %v1136_v0 }
 0xa96   : > { %v1143_v3 = vadd.f32 %v1142_v1, %v1141_v2 }
 0xa98   : > { %1145 = vrot.lane.b32.xlu0 %v1143_v3, %s3621_s12 }
 0xb0a   : > { %v1146_v6 = vpop.permute.xlu0 %1145 }
 0xb0b   : > { %1149 = vst.msk [vmem:[#allocation4 + $0x6] sm:$0x3] %vm830_vm5, %v1146_v6  ;;  %3083 = vmatmul.mubr.msk.f32.vlgmr.msra.gmra.mrb[4].mxu1 %vm474_vm1, %v1146_v6 }
 0xb0c   : > { %3343 = vmatpush3.bf16.xpose.msk.msra.mxu1 %vm3708_vm2, %v3718_v10  ;;  %3112 = vmatprep.mubr.msk.f32.mxu1 %vm3616_vm3, %v3617_v12 }
 0xb0d   : > { %3344 = vmatprep.subr.bf16.mxu1 %v3615_v5 }
 0xb14   : > { %3347 = vmatpush3.bf16.xpose.msk.msra.mxu1 %vm3708_vm2, %v3757_v29 }
 0xb15   : > { %3348 = vmatprep.subr.bf16.mxu1 %v3615_v5 }
 0xb1c   : > { %3351 = vmatpush3.bf16.xpose.msk.msra.mxu1 %vm3708_vm2, %v3780_v42 }
 0xb1d   : > { %3364 = vmatprep.subr.bf16.mxu1 %v3615_v5 }
 0xbde   : > { %v1220_v8 = vpop.f32.mrb[4].mxu1 }
 0xbdf   : > { %v1221_v9 = vadd.f32 %v3829_v50, %v1220_v8  ;;  %v3084_v11 = vpop.f32.mrb[5].mxu1 }
 0xbe1   : > { %1232 = vrot.lane.b32.xlu1 %v1221_v9, %s3619_s9  ;;  %v1224_v14 = vadd.f32 %v1221_v9, %v1151_v13 }
 0xbe3   : > { %v2778_v16 = vmul.f32 -1.442695, %v1224_v14 }
 0xbe5   : > { %3517 = vpow2.f32 %v2778_v16 }
 0xbef   : > { %v3518_v17 = vpop.eup %3517 }
 0xbf0   : > { %v1228_v18 = vadd.f32 1.0, %v3518_v17 }
 0xbf2   : > { %3519 = vrcp.f32 %v1228_v18 }
 0xbfc   : > { %v3520_v19 = vpop.eup %3519 }
 0xbfd   : > { %v1242_v25 = vsub.f32 1.0, %v3520_v19  ;;  %v1248_v27 = vmul.f32 %v3520_v19, %v1143_v3 }
 0xc53   : > { %v1233_v20 = vpop.permute.xlu1 %1232 }
 0xc54   : > { %v1235_v21 = vmul.f32 %v3520_v19, %v1233_v20  ;;  %v1469_v19 = vld [vmem:[#allocation3 + $0xe] sm:$0x3] }
 0xc56   : > { %1237 = vrot.lane.b32.xlu0 %v1235_v21, %s3620_s11 }
 0xcc8   : > { %v1238_v22 = vpop.permute.xlu0 %1237 }
 0xcc9   : > { %v1240_v23 = vadd.f32 %v1238_v22, %v1151_v13 }
 0xccb   : > { %3521 = vtanh.f32 %v1240_v23 }
 0xcd5   : > { %v3522_v24 = vpop.eup %3521 }
 0xcd6   : > { %1244 = vrot.lane.b32.xlu1 %v3522_v24, %s3621_s12 }
 0xd48   : > { %v1245_v26 = vpop.permute.xlu1 %1244 }
 0xd49   : > { %v1247_v30 = vmul.f32 %v1245_v26, %v1242_v25 }
 0xd4b   : > { %v1249_v31 = vadd.f32 %v1248_v27, %v1247_v30 }
 0xd4d   : > { %1251 = vrot.lane.b32.xlu0 %v1249_v31, %s3621_s12 }
 0xdbf   : > { %v1252_v32 = vpop.permute.xlu0 %1251 }
 0xdc0   : > { %1255 = vst.msk [vmem:[#allocation4 + $0x8] sm:$0x3] %vm830_vm5, %v1252_v32  ;;  %3098 = vmatmul.mubr.msk.f32.vlgmr.msra.gmra.mrb[8].mxu0 %vm474_vm1, %v1252_v32 }
 0xdc1   : > { %3355 = vmatpush3.bf16.xpose.msk.msra.mxu0 %vm3708_vm2, %v3718_v10  ;;  %3127 = vmatprep.mubr.msk.f32.mxu0 %vm3616_vm3, %v3617_v12 }
 0xdc2   : > { %3356 = vmatprep.subr.bf16.mxu0 %v3615_v5 }
 0xdc9   : > { %3359 = vmatpush3.bf16.xpose.msk.msra.mxu0 %vm3708_vm2, %v3757_v29 }
 0xdca   : > { %3360 = vmatprep.subr.bf16.mxu0 %v3615_v5 }
 0xdd1   : > { %3363 = vmatpush3.bf16.xpose.msk.msra.mxu0 %vm3708_vm2, %v3780_v42 }
 0xdd2   : > { %3376 = vmatprep.subr.bf16.mxu0 %v3615_v5 }
 0xe93   : > { %v1326_v33 = vpop.f32.mrb[8].mxu0 }
 0xe94   : > { %v1327_v34 = vadd.f32 %v3829_v50, %v1326_v33  ;;  %v3099_v35 = vpop.f32.mrb[9].mxu0 }
 0xe96   : > { %1338 = vrot.lane.b32.xlu1 %v1327_v34, %s3619_s9  ;;  %v1330_v37 = vadd.f32 %v1327_v34, %v1257_v36 }
 0xe98   : > { %v2786_v38 = vmul.f32 -1.442695, %v1330_v37 }
 0xe9a   : > { %3523 = vpow2.f32 %v2786_v38 }
 0xea4   : > { %v3524_v39 = vpop.eup %3523 }
 0xea5   : > { %v1334_v40 = vadd.f32 1.0, %v3524_v39 }
 0xea7   : > { %3525 = vrcp.f32 %v1334_v40 }
 0xeb1   : > { %v3526_v41 = vpop.eup %3525 }
 0xeb2   : > { %v1348_v49 = vsub.f32 1.0, %v3526_v41  ;;  %v1354_v53 = vmul.f32 %v3526_v41, %v1249_v31 }
 0xf08   : > { %v1339_v43 = vpop.permute.xlu1 %1338 }
 0xf09   : > { %v1341_v44 = vmul.f32 %v3526_v41, %v1339_v43  ;;  %v1575_v41 = vld [vmem:[#allocation3 + $0x10] sm:$0x3] }
 0xf0b   : > { %1343 = vrot.lane.b32.xlu0 %v1341_v44, %s3620_s11 }
 0xf7d   : > { %v1344_v45 = vpop.permute.xlu0 %1343 }
 0xf7e   : > { %v1346_v47 = vadd.f32 %v1344_v45, %v1257_v36 }
 0xf80   : > { %3527 = vtanh.f32 %v1346_v47 }
 0xf8a   : > { %v3528_v48 = vpop.eup %3527 }
 0xf8b   : > { %1350 = vrot.lane.b32.xlu1 %v3528_v48, %s3621_s12 }
 0xffd   : > { %v1351_v52 = vpop.permute.xlu1 %1350 }
 0xffe   : > { %v1353_v54 = vmul.f32 %v1351_v52, %v1348_v49 }
0x1000   : > { %v1355_v55 = vadd.f32 %v1354_v53, %v1353_v54 }
0x1002   : > { %1357 = vrot.lane.b32.xlu0 %v1355_v55, %s3621_s12 }
0x1074   : > { %v1358_v46 = vpop.permute.xlu0 %1357 }
0x1075   : > { %1361 = vst.msk [vmem:[#allocation4 + $0xa] sm:$0x3] %vm830_vm5, %v1358_v46  ;;  %3113 = vmatmul.mubr.msk.f32.vlgmr.msra.gmra.mrb[6].mxu1 %vm474_vm1, %v1358_v46 }
0x1076   : > { %3367 = vmatpush3.bf16.xpose.msk.msra.mxu1 %vm3708_vm2, %v3718_v10  ;;  %3142 = vmatprep.mubr.msk.f32.mxu1 %vm3616_vm3, %v3617_v12 }
0x1077   : > { %3368 = vmatprep.subr.bf16.mxu1 %v3615_v5 }
0x107e   : > { %3371 = vmatpush3.bf16.xpose.msk.msra.mxu1 %vm3708_vm2, %v3757_v29 }
0x107f   : > { %3372 = vmatprep.subr.bf16.mxu1 %v3615_v5 }
0x1086   : > { %3375 = vmatpush3.bf16.xpose.msk.msra.mxu1 %vm3708_vm2, %v3780_v42 }
0x1087   : > { %3388 = vmatprep.subr.bf16.mxu1 %v3615_v5 }
0x1148   : > { %v1432_v56 = vpop.f32.mrb[6].mxu1 }
0x1149   : > { %v1433_v57 = vadd.f32 %v3829_v50, %v1432_v56  ;;  %v3114_v58 = vpop.f32.mrb[7].mxu1 }
0x114b   : > { %1444 = vrot.lane.b32.xlu1 %v1433_v57, %s3619_s9  ;;  %v1436_v60 = vadd.f32 %v1433_v57, %v1363_v59 }
0x114d   : > { %v2794_v61 = vmul.f32 -1.442695, %v1436_v60 }
0x114f   : > { %3529 = vpow2.f32 %v2794_v61 }
0x1159   : > { %v3530_v62 = vpop.eup %3529 }
0x115a   : > { %v1440_v63 = vadd.f32 1.0, %v3530_v62 }
0x115c   : > { %3531 = vrcp.f32 %v1440_v63 }
0x1166   : > { %v3532_v51 = vpop.eup %3531 }
0x1167   : > { %v1454_v6 = vsub.f32 1.0, %v3532_v51  ;;  %v1460_v9 = vmul.f32 %v3532_v51, %v1355_v55 }
0x11bd   : > { %v1445_v0 = vpop.permute.xlu1 %1444 }
0x11be   : > { %v1447_v28 = vmul.f32 %v3532_v51, %v1445_v0  ;;  %v1681_v51 = vld [vmem:[#allocation3 + $0x12] sm:$0x3] }
0x11c0   : > { %1449 = vrot.lane.b32.xlu0 %v1447_v28, %s3620_s11 }
0x1232   : > { %v1450_v1 = vpop.permute.xlu0 %1449 }
0x1233   : > { %v1452_v2 = vadd.f32 %v1450_v1, %v1363_v59 }
0x1235   : > { %3533 = vtanh.f32 %v1452_v2 }
0x123f   : > { %v3534_v3 = vpop.eup %3533 }
0x1240   : > { %1456 = vrot.lane.b32.xlu1 %v3534_v3, %s3621_s12 }
0x12b2   : > { %v1457_v8 = vpop.permute.xlu1 %1456 }
0x12b3   : > { %v1459_v11 = vmul.f32 %v1457_v8, %v1454_v6 }
0x12b5   : > { %v1461_v13 = vadd.f32 %v1460_v9, %v1459_v11 }
0x12b7   : > { %1463 = vrot.lane.b32.xlu0 %v1461_v13, %s3621_s12 }
0x1329   : > { %v1464_v14 = vpop.permute.xlu0 %1463 }
0x132a   : > { %1467 = vst.msk [vmem:[#allocation4 + $0xc] sm:$0x3] %vm830_vm5, %v1464_v14  ;;  %3128 = vmatmul.mubr.msk.f32.vlgmr.msra.gmra.mrb[10].mxu0 %vm474_vm1, %v1464_v14 }
0x132b   : > { %3379 = vmatpush3.bf16.xpose.msk.msra.mxu0 %vm3708_vm2, %v3718_v10  ;;  %3157 = vmatprep.mubr.msk.f32.mxu0 %vm3616_vm3, %v3617_v12 }
0x132c   : > { %3380 = vmatprep.subr.bf16.mxu0 %v3615_v5 }
0x1333   : > { %3383 = vmatpush3.bf16.xpose.msk.msra.mxu0 %vm3708_vm2, %v3757_v29 }
0x1334   : > { %3384 = vmatprep.subr.bf16.mxu0 %v3615_v5 }
0x133b   : > { %3387 = vmatpush3.bf16.xpose.msk.msra.mxu0 %vm3708_vm2, %v3780_v42 }
0x133c   : > { %3400 = vmatprep.subr.bf16.mxu0 %v3615_v5 }
0x13fd   : > { %v1538_v16 = vpop.f32.mrb[10].mxu0 }
0x13fe   : > { %v1539_v17 = vadd.f32 %v3829_v50, %v1538_v16  ;;  %v3129_v18 = vpop.f32.mrb[11].mxu0 }
0x1400   : > { %1550 = vrot.lane.b32.xlu1 %v1539_v17, %s3619_s9  ;;  %v1542_v20 = vadd.f32 %v1539_v17, %v1469_v19 }
0x1402   : > { %v2802_v21 = vmul.f32 -1.442695, %v1542_v20 }
0x1404   : > { %3535 = vpow2.f32 %v2802_v21 }
0x140e   : > { %v3536_v22 = vpop.eup %3535 }
0x140f   : > { %v1546_v23 = vadd.f32 1.0, %v3536_v22 }
0x1411   : > { %3537 = vrcp.f32 %v1546_v23 }
0x141b   : > { %v3538_v24 = vpop.eup %3537 }
0x141c   : > { %v1560_v32 = vsub.f32 1.0, %v3538_v24  ;;  %v1566_v34 = vmul.f32 %v3538_v24, %v1461_v13 }
0x1472   : > { %v1551_v25 = vpop.permute.xlu1 %1550 }
0x1473   : > { %v1553_v26 = vmul.f32 %v3538_v24, %v1551_v25  ;;  %v1787_v24 = vld [vmem:[#allocation3 + $0x14] sm:$0x3] }
0x1475   : > { %1555 = vrot.lane.b32.xlu0 %v1553_v26, %s3620_s11 }
0x14e7   : > { %v1556_v27 = vpop.permute.xlu0 %1555 }
0x14e8   : > { %v1558_v30 = vadd.f32 %v1556_v27, %v1469_v19 }
0x14ea   : > { %3539 = vtanh.f32 %v1558_v30 }
0x14f4   : > { %v3540_v31 = vpop.eup %3539 }
0x14f5   : > { %1562 = vrot.lane.b32.xlu1 %v3540_v31, %s3621_s12 }
0x1567   : > { %v1563_v33 = vpop.permute.xlu1 %1562 }
0x1568   : > { %v1565_v35 = vmul.f32 %v1563_v33, %v1560_v32 }
0x156a   : > { %v1567_v36 = vadd.f32 %v1566_v34, %v1565_v35 }
0x156c   : > { %1569 = vrot.lane.b32.xlu0 %v1567_v36, %s3621_s12 }
0x15de   : > { %v1570_v37 = vpop.permute.xlu0 %1569 }
0x15df   : > { %1573 = vst.msk [vmem:[#allocation4 + $0xe] sm:$0x3] %vm830_vm5, %v1570_v37  ;;  %3143 = vmatmul.mubr.msk.f32.vlgmr.msra.gmra.mrb[8].mxu1 %vm474_vm1, %v1570_v37 }
0x15e0   : > { %3391 = vmatpush3.bf16.xpose.msk.msra.mxu1 %vm3708_vm2, %v3718_v10  ;;  %3172 = vmatprep.mubr.msk.f32.mxu1 %vm3616_vm3, %v3617_v12 }
0x15e1   : > { %3392 = vmatprep.subr.bf16.mxu1 %v3615_v5 }
0x15e8   : > { %3395 = vmatpush3.bf16.xpose.msk.msra.mxu1 %vm3708_vm2, %v3757_v29 }
0x15e9   : > { %3396 = vmatprep.subr.bf16.mxu1 %v3615_v5 }
0x15f0   : > { %3399 = vmatpush3.bf16.xpose.msk.msra.mxu1 %vm3708_vm2, %v3780_v42 }
0x15f1   : > { %3412 = vmatprep.subr.bf16.mxu1 %v3615_v5 }
0x16b2   : > { %v1644_v38 = vpop.f32.mrb[8].mxu1 }
0x16b3   : > { %v1645_v39 = vadd.f32 %v3829_v50, %v1644_v38  ;;  %v3144_v40 = vpop.f32.mrb[9].mxu1 }
0x16b5   : > { %1656 = vrot.lane.b32.xlu1 %v1645_v39, %s3619_s9  ;;  %v1648_v43 = vadd.f32 %v1645_v39, %v1575_v41 }
0x16b7   : > { %v2810_v44 = vmul.f32 -1.442695, %v1648_v43 }
0x16b9   : > { %3541 = vpow2.f32 %v2810_v44 }
0x16c3   : > { %v3542_v45 = vpop.eup %3541 }
0x16c4   : > { %v1652_v47 = vadd.f32 1.0, %v3542_v45 }
0x16c6   : > { %3543 = vrcp.f32 %v1652_v47 }
0x16d0   : > { %v3544_v48 = vpop.eup %3543 }
0x16d1   : > { %v1666_v46 = vsub.f32 1.0, %v3544_v48  ;;  %v1672_v57 = vmul.f32 %v3544_v48, %v1567_v36 }
0x1727   : > { %v1657_v49 = vpop.permute.xlu1 %1656 }
0x1728   : > { %v1659_v52 = vmul.f32 %v3544_v48, %v1657_v49  ;;  %v1893_v48 = vld [vmem:[#allocation3 + $0x16] sm:$0x3] }
0x172a   : > { %1661 = vrot.lane.b32.xlu0 %v1659_v52, %s3620_s11 }
0x179c   : > { %v1662_v53 = vpop.permute.xlu0 %1661 }
0x179d   : > { %v1664_v54 = vadd.f32 %v1662_v53, %v1575_v41 }
0x179f   : > { %3545 = vtanh.f32 %v1664_v54 }
0x17a9   : > { %v3546_v55 = vpop.eup %3545 }
0x17aa   : > { %1668 = vrot.lane.b32.xlu1 %v3546_v55, %s3621_s12 }
0x181c   : > { %v1669_v56 = vpop.permute.xlu1 %1668 }
0x181d   : > { %v1671_v58 = vmul.f32 %v1669_v56, %v1666_v46 }
0x181f   : > { %v1673_v59 = vadd.f32 %v1672_v57, %v1671_v58 }
0x1821   : > { %1675 = vrot.lane.b32.xlu0 %v1673_v59, %s3621_s12 }
0x1893   : > { %v1676_v60 = vpop.permute.xlu0 %1675 }
0x1894   : > { %1679 = vst.msk [vmem:[#allocation4 + $0x10] sm:$0x3] %vm830_vm5, %v1676_v60  ;;  %3158 = vmatmul.mubr.msk.f32.vlgmr.msra.gmra.mrb[12].mxu0 %vm474_vm1, %v1676_v60 }
0x1895   : > { %3403 = vmatpush3.bf16.xpose.msk.msra.mxu0 %vm3708_vm2, %v3718_v10  ;;  %3187 = vmatprep.mubr.msk.f32.mxu0 %vm3616_vm3, %v3617_v12 }
0x1896   : > { %3404 = vmatprep.subr.bf16.mxu0 %v3615_v5 }
0x189d   : > { %3407 = vmatpush3.bf16.xpose.msk.msra.mxu0 %vm3708_vm2, %v3757_v29 }
0x189e   : > { %3408 = vmatprep.subr.bf16.mxu0 %v3615_v5 }
0x18a5   : > { %3411 = vmatpush3.bf16.xpose.msk.msra.mxu0 %vm3708_vm2, %v3780_v42 }
0x18a6   : > { %3424 = vmatprep.subr.bf16.mxu0 %v3615_v5 }
0x1967   : > { %v1750_v61 = vpop.f32.mrb[12].mxu0 }
0x1968   : > { %v1751_v62 = vadd.f32 %v3829_v50, %v1750_v61  ;;  %v3159_v63 = vpop.f32.mrb[13].mxu0 }
0x196a   : > { %1762 = vrot.lane.b32.xlu1 %v1751_v62, %s3619_s9  ;;  %v1754_v0 = vadd.f32 %v1751_v62, %v1681_v51 }
0x196c   : > { %v2818_v28 = vmul.f32 -1.442695, %v1754_v0 }
0x196e   : > { %3547 = vpow2.f32 %v2818_v28 }
0x1978   : > { %v3548_v1 = vpop.eup %3547 }
0x1979   : > { %v1758_v2 = vadd.f32 1.0, %v3548_v1 }
0x197b   : > { %3549 = vrcp.f32 %v1758_v2 }
0x1985   : > { %v3550_v3 = vpop.eup %3549 }
0x1986   : > { %v1772_v14 = vsub.f32 1.0, %v3550_v3  ;;  %v1778_v17 = vmul.f32 %v3550_v3, %v1673_v59 }
0x19dc   : > { %v1763_v6 = vpop.permute.xlu1 %1762 }
0x19dd   : > { %v1765_v8 = vmul.f32 %v3550_v3, %v1763_v6  ;;  %v1999_v3 = vld [vmem:[#allocation3 + $0x18] sm:$0x3] }
0x19df   : > { %1767 = vrot.lane.b32.xlu0 %v1765_v8, %s3620_s11 }
0x1a51   : > { %v1768_v9 = vpop.permute.xlu0 %1767 }
0x1a52   : > { %v1770_v11 = vadd.f32 %v1768_v9, %v1681_v51 }
0x1a54   : > { %3551 = vtanh.f32 %v1770_v11 }
0x1a5e   : > { %v3552_v13 = vpop.eup %3551 }
0x1a5f   : > { %1774 = vrot.lane.b32.xlu1 %v3552_v13, %s3621_s12 }
0x1ad1   : > { %v1775_v16 = vpop.permute.xlu1 %1774 }
0x1ad2   : > { %v1777_v18 = vmul.f32 %v1775_v16, %v1772_v14 }
0x1ad4   : > { %v1779_v19 = vadd.f32 %v1778_v17, %v1777_v18 }
0x1ad6   : > { %1781 = vrot.lane.b32.xlu0 %v1779_v19, %s3621_s12 }
0x1b48   : > { %v1782_v20 = vpop.permute.xlu0 %1781 }
0x1b49   : > { %1785 = vst.msk [vmem:[#allocation4 + $0x12] sm:$0x3] %vm830_vm5, %v1782_v20  ;;  %3173 = vmatmul.mubr.msk.f32.vlgmr.msra.gmra.mrb[10].mxu1 %vm474_vm1, %v1782_v20 }
0x1b4a   : > { %3415 = vmatpush3.bf16.xpose.msk.msra.mxu1 %vm3708_vm2, %v3718_v10  ;;  %3202 = vmatprep.mubr.msk.f32.mxu1 %vm3616_vm3, %v3617_v12 }
0x1b4b   : > { %3416 = vmatprep.subr.bf16.mxu1 %v3615_v5 }
0x1b52   : > { %3419 = vmatpush3.bf16.xpose.msk.msra.mxu1 %vm3708_vm2, %v3757_v29 }
0x1b53   : > { %3420 = vmatprep.subr.bf16.mxu1 %v3615_v5 }
0x1b5a   : > { %3423 = vmatpush3.bf16.xpose.msk.msra.mxu1 %vm3708_vm2, %v3780_v42 }
0x1b5b   : > { %3436 = vmatprep.subr.bf16.mxu1 %v3615_v5 }
0x1c1c   : > { %v1856_v21 = vpop.f32.mrb[10].mxu1 }
0x1c1d   : > { %v1857_v22 = vadd.f32 %v3829_v50, %v1856_v21  ;;  %v3174_v23 = vpop.f32.mrb[11].mxu1 }
0x1c1f   : > { %1868 = vrot.lane.b32.xlu1 %v1857_v22, %s3619_s9  ;;  %v1860_v25 = vadd.f32 %v1857_v22, %v1787_v24 }
0x1c21   : > { %v2826_v26 = vmul.f32 -1.442695, %v1860_v25 }
0x1c23   : > { %3553 = vpow2.f32 %v2826_v26 }
0x1c2d   : > { %v3554_v27 = vpop.eup %3553 }
0x1c2e   : > { %v1864_v30 = vadd.f32 1.0, %v3554_v27 }
0x1c30   : > { %3555 = vrcp.f32 %v1864_v30 }
0x1c3a   : > { %v3556_v31 = vpop.eup %3555 }
0x1c3b   : > { %v1878_v37 = vsub.f32 1.0, %v3556_v31  ;;  %v1884_v39 = vmul.f32 %v3556_v31, %v1779_v19 }
0x1c91   : > { %v1869_v32 = vpop.permute.xlu1 %1868 }
0x1c92   : > { %v1871_v33 = vmul.f32 %v3556_v31, %v1869_v32 }
0x1c94   : > { %1873 = vrot.lane.b32.xlu0 %v1871_v33, %s3620_s11 }
0x1d06   : > { %v1874_v34 = vpop.permute.xlu0 %1873 }
0x1d07   : > { %v1876_v35 = vadd.f32 %v1874_v34, %v1787_v24 }
0x1d09   : > { %3557 = vtanh.f32 %v1876_v35 }
0x1d13   : > { %v3558_v36 = vpop.eup %3557 }
0x1d14   : > { %1880 = vrot.lane.b32.xlu1 %v3558_v36, %s3621_s12 }
0x1d86   : > { %v1881_v38 = vpop.permute.xlu1 %1880 }
0x1d87   : > { %v1883_v40 = vmul.f32 %v1881_v38, %v1878_v37 }
0x1d89   : > { %v1885_v41 = vadd.f32 %v1884_v39, %v1883_v40 }
0x1d8b   : > { %1887 = vrot.lane.b32.xlu0 %v1885_v41, %s3621_s12 }
0x1dfd   : > { %v1888_v43 = vpop.permute.xlu0 %1887 }
0x1dfe   : > { %1891 = vst.msk [vmem:[#allocation4 + $0x14] sm:$0x3] %vm830_vm5, %v1888_v43  ;;  %3188 = vmatmul.mubr.msk.f32.vlgmr.msra.gmra.mrb[14].mxu0 %vm474_vm1, %v1888_v43 }
0x1dff   : > { %3427 = vmatpush3.bf16.xpose.msk.msra.mxu0 %vm3708_vm2, %v3718_v10  ;;  %3217 = vmatprep.mubr.msk.f32.mxu0 %vm3616_vm3, %v3617_v12 }
0x1e00   : > { %3428 = vmatprep.subr.bf16.mxu0 %v3615_v5 }
0x1e07   : > { %3431 = vmatpush3.bf16.xpose.msk.msra.mxu0 %vm3708_vm2, %v3757_v29 }
0x1e08   : > { %3432 = vmatprep.subr.bf16.mxu0 %v3615_v5 }
0x1e0f   : > { %3435 = vmatpush3.bf16.xpose.msk.msra.mxu0 %vm3708_vm2, %v3780_v42 }
0x1e10   : > { %3448 = vmatprep.subr.bf16.mxu0 %v3615_v5 }
0x1ed1   : > { %v1962_v44 = vpop.f32.mrb[14].mxu0 }
0x1ed2   : > { %v1963_v45 = vadd.f32 %v3829_v50, %v1962_v44  ;;  %v3189_v47 = vpop.f32.mrb[15].mxu0 }
0x1ed3   : > { %v2211_v47 = vld [vmem:[#allocation3 + $0x1c] sm:$0x3] }
0x1ed4   : > { %1974 = vrot.lane.b32.xlu1 %v1963_v45, %s3619_s9  ;;  %v1966_v49 = vadd.f32 %v1963_v45, %v1893_v48 }
0x1ed6   : > { %v2834_v52 = vmul.f32 -1.442695, %v1966_v49 }
0x1ed8   : > { %3559 = vpow2.f32 %v2834_v52 }
0x1ee2   : > { %v3560_v53 = vpop.eup %3559 }
0x1ee3   : > { %v1970_v54 = vadd.f32 1.0, %v3560_v53 }
0x1ee5   : > { %3561 = vrcp.f32 %v1970_v54 }
0x1eef   : > { %v3562_v55 = vpop.eup %3561 }
0x1ef0   : > { %v1984_v60 = vsub.f32 1.0, %v3562_v55  ;;  %v1990_v62 = vmul.f32 %v3562_v55, %v1885_v41 }
0x1f46   : > { %v1975_v46 = vpop.permute.xlu1 %1974 }
0x1f47   : > { %v1977_v56 = vmul.f32 %v3562_v55, %v1975_v46 }
0x1f49   : > { %1979 = vrot.lane.b32.xlu0 %v1977_v56, %s3620_s11 }
0x1fbb   : > { %v1980_v57 = vpop.permute.xlu0 %1979 }
0x1fbc   : > { %v1982_v58 = vadd.f32 %v1980_v57, %v1893_v48 }
0x1fbe   : > { %3563 = vtanh.f32 %v1982_v58 }
0x1fc8   : > { %v3564_v59 = vpop.eup %3563 }
0x1fc9   : > { %1986 = vrot.lane.b32.xlu1 %v3564_v59, %s3621_s12 }
0x203b   : > { %v1987_v61 = vpop.permute.xlu1 %1986 }
0x203c   : > { %v1989_v63 = vmul.f32 %v1987_v61, %v1984_v60 }
0x203e   : > { %v1991_v51 = vadd.f32 %v1990_v62, %v1989_v63 }
0x2040   : > { %1993 = vrot.lane.b32.xlu0 %v1991_v51, %s3621_s12 }
0x20b2   : > { %v1994_v0 = vpop.permute.xlu0 %1993 }
0x20b3   : > { %1997 = vst.msk [vmem:[#allocation4 + $0x16] sm:$0x3] %vm830_vm5, %v1994_v0  ;;  %3203 = vmatmul.mubr.msk.f32.vlgmr.msra.gmra.mrb[12].mxu1 %vm474_vm1, %v1994_v0 }
0x20b4   : > { %3439 = vmatpush3.bf16.xpose.msk.msra.mxu1 %vm3708_vm2, %v3718_v10  ;;  %3232 = vmatprep.mubr.msk.f32.mxu1 %vm3616_vm3, %v3617_v12 }
0x20b5   : > { %3440 = vmatprep.subr.bf16.mxu1 %v3615_v5 }
0x20bc   : > { %3443 = vmatpush3.bf16.xpose.msk.msra.mxu1 %vm3708_vm2, %v3757_v29 }
0x20bd   : > { %3444 = vmatprep.subr.bf16.mxu1 %v3615_v5 }
0x20c4   : > { %3447 = vmatpush3.bf16.xpose.msk.msra.mxu1 %vm3708_vm2, %v3780_v42 }
0x2186   : > { %v2068_v28 = vpop.f32.mrb[12].mxu1 }
0x2187   : > { %v2069_v1 = vadd.f32 %v3829_v50, %v2068_v28  ;;  %v3204_v2 = vpop.f32.mrb[13].mxu1 }
0x2188   : > { %v2317_v2 = vld [vmem:[#allocation3 + $0x1e] sm:$0x3] }
0x2189   : > { %2080 = vrot.lane.b32.xlu1 %v2069_v1, %s3619_s9  ;;  %v2072_v6 = vadd.f32 %v2069_v1, %v1999_v3 }
0x218b   : > { %v2842_v8 = vmul.f32 -1.442695, %v2072_v6 }
0x218d   : > { %3565 = vpow2.f32 %v2842_v8 }
0x2197   : > { %v3566_v9 = vpop.eup %3565 }
0x2198   : > { %v2076_v11 = vadd.f32 1.0, %v3566_v9 }
0x219a   : > { %3567 = vrcp.f32 %v2076_v11 }
0x21a4   : > { %v3568_v13 = vpop.eup %3567 }
0x21a5   : > { %v2090_v50 = vsub.f32 1.0, %v3568_v13  ;;  %v2096_v21 = vmul.f32 %v3568_v13, %v1991_v51 }
0x21fb   : > { %v2081_v14 = vpop.permute.xlu1 %2080 }
0x21fc   : > { %v2083_v16 = vmul.f32 %v3568_v13, %v2081_v14 }
0x21fe   : > { %2085 = vrot.lane.b32.xlu0 %v2083_v16, %s3620_s11 }
0x2270   : > { %v2086_v17 = vpop.permute.xlu0 %2085 }
0x2271   : > { %v2088_v18 = vadd.f32 %v2086_v17, %v1999_v3 }
0x2273   : > { %3569 = vtanh.f32 %v2088_v18 }
0x227d   : > { %v3570_v19 = vpop.eup %3569 }
0x227e   : > { %2092 = vrot.lane.b32.xlu1 %v3570_v19, %s3621_s12  ;;  %v2425_v19 = vld [vmem:[#allocation4] sm:$0x3] }
0x22f0   : > { %v2093_v20 = vpop.permute.xlu1 %2092 }
0x22f1   : > { %v2095_v22 = vmul.f32 %v2093_v20, %v2090_v50  ;;  %v4170_v50 = vld [vmem:[%s4244_s6] ss:$0 sm:$0xff] }
0x22f2   : > { %v2448_v20 = vmul.f32 %v4170_v50, %v2425_v19 }
0x22f3   : > { %v2097_v23 = vadd.f32 %v2096_v21, %v2095_v22  ;;  %v2433_v21 = vld [vmem:[#allocation4 + $0x10] sm:$0x3] }
0x22f4   : > { %v2464_v22 = vsel %vm830_vm5, %v2448_v20, 0.0 }
0x22f5   : > { %2099 = vrot.lane.b32.xlu0 %v2097_v23, %s3621_s12 }
0x2367   : > { %v2100_v24 = vpop.permute.xlu0 %2099 }
0x2368   : > { %2103 = vst.msk [vmem:[#allocation4 + $0x18] sm:$0x3] %vm830_vm5, %v2100_v24  ;;  %3218 = vmatmul.mubr.msk.f32.vlgmr.msra.gmra.mrb[16].mxu0 %vm474_vm1, %v2100_v24  ;;  %v2428_v24 = vld [vmem:[#allocation4 + $0x6] sm:$0x3] }
0x2369   : > { %3451 = vmatpush3.bf16.xpose.msk.msra.mxu0 %vm3708_vm2, %v3718_v10  ;;  %3247 = vmatprep.mubr.msk.f32.mxu0 %vm3616_vm3, %v3617_v12  ;;  %v3589_v10 = vld [vmem:[%s4243_s5] ss:$0 sm:$0xff]  ;;  %v2105_v12 = vld [vmem:[#allocation3 + $0x1a] sm:$0x3] }
0x236a   : > { %3452 = vmatprep.subr.bf16.mxu0 %v3615_v5 }
0x2371   : > { %3455 = vmatpush3.bf16.xpose.msk.msra.mxu0 %vm3708_vm2, %v3757_v29 }
0x2372   : > { %3456 = vmatprep.subr.bf16.mxu0 %v3615_v5 }
0x2379   : > { %3459 = vmatpush3.bf16.xpose.msk.msra.mxu0 %vm3708_vm2, %v3780_v42 }
0x243b   : > { %v2174_v25 = vpop.f32.mrb[16].mxu0 }
0x243c   : > { %v2175_v26 = vadd.f32 %v3589_v10, %v2174_v25  ;;  %v3219_v27 = vpop.f32.mrb[17].mxu0 }
0x243e   : > { %2186 = vrot.lane.b32.xlu1 %v2175_v26, %s3619_s9  ;;  %v2178_v30 = vadd.f32 %v2175_v26, %v2105_v12  ;;  %v2429_v26 = vld [vmem:[#allocation4 + $0x8] sm:$0x3] }
0x2440   : > { %v2850_v31 = vmul.f32 -1.442695, %v2178_v30  ;;  %v2430_v30 = vld [vmem:[#allocation4 + $0xa] sm:$0x3] }
0x2442   : > { %3571 = vpow2.f32 %v2850_v31 }
0x244c   : > { %v3572_v29 = vpop.eup %3571 }
0x244d   : > { %v2182_v32 = vadd.f32 1.0, %v3572_v29  ;;  %v2453_v29 = vmul.f32 %v4170_v50, %v2430_v30 }
0x244f   : > { %3573 = vrcp.f32 %v2182_v32  ;;  %v2431_v32 = vld [vmem:[#allocation4 + $0xc] sm:$0x3] }
0x2459   : > { %v3574_v5 = vpop.eup %3573 }
0x245a   : > { %v2196_v36 = vsub.f32 1.0, %v3574_v5  ;;  %v2202_v38 = vmul.f32 %v3574_v5, %v2097_v23  ;;  %v2456_v23 = vmul.f32 %v4170_v50, %v2433_v21 }
0x245c   : > { %v2488_v25 = vsel %vm830_vm5, %v2456_v23, 0.0 }
0x24b0   : > { %v2187_v33 = vpop.permute.xlu1 %2186 }
0x24b1   : > { %v2189_v7 = vmul.f32 %v3574_v5, %v2187_v33  ;;  %v2479_v5 = vsel %vm830_vm5, %v2453_v29, 0.0  ;;  %v2454_v33 = vmul.f32 %v4170_v50, %v2431_v32 }
0x24b3   : > { %2191 = vrot.lane.b32.xlu0 %v2189_v7, %s3620_s11  ;;  %v2432_v7 = vld [vmem:[#allocation4 + $0xe] sm:$0x3] }
0x2525   : > { %v2192_v42 = vpop.permute.xlu0 %2191 }
0x2526   : > { %v2194_v34 = vadd.f32 %v2192_v42, %v2105_v12  ;;  %v2452_v12 = vmul.f32 %v4170_v50, %v2429_v26  ;;  %v2482_v42 = vsel %vm830_vm5, %v2454_v33, 0.0 }
0x2528   : > { %3575 = vtanh.f32 %v2194_v34  ;;  %v2476_v31 = vsel %vm830_vm5, %v2452_v12, 0.0  ;;  %v2455_v34 = vmul.f32 %v4170_v50, %v2432_v7  ;;  %v2423_v7 = vld [vmem:[%s3689_s14] sm:$0xff] }
0x2532   : > { %v3576_v35 = vpop.eup %3575 }
0x2533   : > { %2198 = vrot.lane.b32.xlu1 %v3576_v35, %s3621_s12  ;;  %v2485_v35 = vsel %vm830_vm5, %v2455_v34, 0.0 }
0x25a5   : > { %v2199_v37 = vpop.permute.xlu1 %2198 }
0x25a6   : > { %v2201_v39 = vmul.f32 %v2199_v37, %v2196_v36 }
0x25a8   : > { %v2203_v40 = vadd.f32 %v2202_v38, %v2201_v39 }
0x25aa   : > { %2205 = vrot.lane.b32.xlu0 %v2203_v40, %s3621_s12 }
0x261c   : > { %v2206_v41 = vpop.permute.xlu0 %2205 }
0x261d   : > { %2209 = vst.msk [vmem:[#allocation4 + $0x1a] sm:$0x3] %vm830_vm5, %v2206_v41  ;;  %3233 = vmatmul.mubr.msk.f32.vlgmr.msra.gmra.mrb[14].mxu1 %vm474_vm1, %v2206_v41  ;;  %v2426_v41 = vld [vmem:[#allocation4 + $0x2] sm:$0x3] }
0x26f0   : > { %v2280_v43 = vpop.f32.mrb[14].mxu1 }
0x26f1   : > { %v2281_v44 = vadd.f32 %v3589_v10, %v2280_v43  ;;  %v3234_v45 = vpop.f32.mrb[15].mxu1  ;;  %v2449_v43 = vmul.f32 %v4170_v50, %v2426_v41 }
0x26f3   : > { %2292 = vrot.lane.b32.xlu1 %v2281_v44, %s3619_s9  ;;  %v2284_v48 = vadd.f32 %v2281_v44, %v2211_v47  ;;  %v2427_v44 = vld [vmem:[#allocation4 + $0x4] sm:$0x3]  ;;  %v2467_v45 = vsel %vm830_vm5, %v2449_v43, 0.0 }
0x26f5   : > { %v2858_v49 = vmul.f32 -1.442695, %v2284_v48  ;;  %v2434_v48 = vld [vmem:[#allocation4 + $0x12] sm:$0x3] }
0x26f7   : > { %3577 = vpow2.f32 %v2858_v49 }
0x2701   : > { %v3578_v52 = vpop.eup %3577 }
0x2702   : > { %v2288_v53 = vadd.f32 1.0, %v3578_v52  ;;  %v2457_v52 = vmul.f32 %v4170_v50, %v2434_v48 }
0x2704   : > { %3579 = vrcp.f32 %v2288_v53  ;;  %v2435_v53 = vld [vmem:[#allocation4 + $0x14] sm:$0x3] }
0x270e   : > { %v3580_v54 = vpop.eup %3579 }
0x270f   : > { %v2302_v59 = vsub.f32 1.0, %v3580_v54  ;;  %v2308_v61 = vmul.f32 %v3580_v54, %v2203_v40 }
0x2765   : > { %v2293_v55 = vpop.permute.xlu1 %2292 }
0x2766   : > { %v2295_v46 = vmul.f32 %v3580_v54, %v2293_v55  ;;  %v2491_v54 = vsel %vm830_vm5, %v2457_v52, 0.0  ;;  %v2458_v55 = vmul.f32 %v4170_v50, %v2435_v53 }
0x2768   : > { %2297 = vrot.lane.b32.xlu0 %v2295_v46, %s3620_s11  ;;  %v2436_v46 = vld [vmem:[#allocation4 + $0x16] sm:$0x3] }
0x27da   : > { %v2298_v56 = vpop.permute.xlu0 %2297 }
0x27db   : > { %v2300_v57 = vadd.f32 %v2298_v56, %v2211_v47  ;;  %v2450_v47 = vmul.f32 %v4170_v50, %v2427_v44  ;;  %v2494_v56 = vsel %vm830_vm5, %v2458_v55, 0.0 }
0x27dd   : > { %3581 = vtanh.f32 %v2300_v57  ;;  %v2470_v49 = vsel %vm830_vm5, %v2450_v47, 0.0  ;;  %v2459_v57 = vmul.f32 %v4170_v50, %v2436_v46 }
0x27e7   : > { %v3582_v58 = vpop.eup %3581 }
0x27e8   : > { %2304 = vrot.lane.b32.xlu1 %v3582_v58, %s3621_s12  ;;  %v2437_v58 = vld [vmem:[#allocation4 + $0x18] sm:$0x3] }
0x285a   : > { %v2305_v60 = vpop.permute.xlu1 %2304 }
0x285b   : > { %v2307_v62 = vmul.f32 %v2305_v60, %v2302_v59  ;;  %v2497_v59 = vsel %vm830_vm5, %v2459_v57, 0.0  ;;  %v2460_v60 = vmul.f32 %v4170_v50, %v2437_v58 }
0x285d   : > { %v2309_v63 = vadd.f32 %v2308_v61, %v2307_v62  ;;  %v2438_v61 = vld [vmem:[#allocation4 + $0x1a] sm:$0x3]  ;;  %v2500_v62 = vsel %vm830_vm5, %v2460_v60, 0.0 }
0x285f   : > { %2311 = vrot.lane.b32.xlu0 %v2309_v63, %s3621_s12 }
0x28d1   : > { %v2312_v51 = vpop.permute.xlu0 %2311 }
0x28d2   : > { %2315 = vst.msk [vmem:[#allocation4 + $0x1c] sm:$0x3] %vm830_vm5, %v2312_v51  ;;  %3248 = vmatmul.mubr.msk.f32.vlgmr.msra.gmra.mrb[18].mxu0 %vm474_vm1, %v2312_v51 }
0x28d9   : > { %v2439_v51 = vld [vmem:[#allocation4 + $0x1c] sm:$0x3] }
0x29a5   : > { %v2386_v0 = vpop.f32.mrb[18].mxu0 }
0x29a6   : > { %v2387_v28 = vadd.f32 %v3589_v10, %v2386_v0  ;;  %v3249_v1 = vpop.f32.mrb[19].mxu0  ;;  %v2451_v10 = vmul.f32 %v4170_v50, %v2428_v24 }
0x29a8   : > { %2398 = vrot.lane.b32.xlu1 %v2387_v28, %s3619_s9  ;;  %v2390_v3 = vadd.f32 %v2387_v28, %v2317_v2  ;;  %v2473_v27 = vsel %vm830_vm5, %v2451_v10, 0.0  ;;  %v2462_v28 = vmul.f32 %v4170_v50, %v2439_v51 }
0x29aa   : > { %v2866_v6 = vmul.f32 -1.442695, %v2390_v3  ;;  %v2506_v1 = vsel %vm830_vm5, %v2462_v28, 0.0 }
0x29ac   : > { %3583 = vpow2.f32 %v2866_v6 }
0x29b6   : > { %v3584_v8 = vpop.eup %3583 }
0x29b7   : > { %v2394_v9 = vadd.f32 1.0, %v3584_v8 }
0x29b9   : > { %3585 = vrcp.f32 %v2394_v9 }
0x29c3   : > { %v3586_v11 = vpop.eup %3585 }
0x29c4   : > { %v2408_v36 = vsub.f32 1.0, %v3586_v11  ;;  %v2414_v38 = vmul.f32 %v3586_v11, %v2309_v63  ;;  %v2461_v63 = vmul.f32 %v4170_v50, %v2438_v61 }
0x29c6   : > { %v2503_v0 = vsel %vm830_vm5, %v2461_v63, 0.0 }
0x2a1a   : > { %v2399_v13 = vpop.permute.xlu1 %2398 }
0x2a1b   : > { %v2401_v14 = vmul.f32 %v3586_v11, %v2399_v13 }
0x2a1d   : > { %2403 = vrot.lane.b32.xlu0 %v2401_v14, %s3620_s11 }
0x2a8f   : > { %v2404_v16 = vpop.permute.xlu0 %2403 }
0x2a90   : > { %v2406_v17 = vadd.f32 %v2404_v16, %v2317_v2 }
0x2a92   : > { %3587 = vtanh.f32 %v2406_v17  ;;  %v2529_v17 = vand.u32 127, %v401_v4 }
0x2a9c   : > { %v3588_v18 = vpop.eup %3587 }
0x2a9d   : > { %2410 = vrot.lane.b32.xlu1 %v3588_v18, %s3621_s12  ;;  %v2532_v18 = vsub.s32 %v2529_v17, %v3726_v15 }
0x2ac1   : > { %2465 = vadd.xlane.f32.xlu1 %v2464_v22 }
0x2ac5   : > { %2489 = vadd.xlane.f32.xlu1 %v2488_v25 }
0x2ac9   : > { %2474 = vadd.xlane.f32.xlu1 %v2473_v27 }
0x2acd   : > { %2477 = vadd.xlane.f32.xlu1 %v2476_v31 }
0x2ad1   : > { %2480 = vadd.xlane.f32.xlu1 %v2479_v5 }
0x2ad5   : > { %2483 = vadd.xlane.f32.xlu1 %v2482_v42 }
0x2ad9   : > { %2486 = vadd.xlane.f32.xlu1 %v2485_v35 }
0x2b0f   : > { %v2411_v37 = vpop.permute.xlu1 %2410 }
0x2b10   : > { %v2413_v39 = vmul.f32 %v2411_v37, %v2408_v36 }
0x2b12   : > { %v2415_v40 = vadd.f32 %v2414_v38, %v2413_v39 }
0x2b14   : > { %2417 = vrot.lane.b32.xlu0 %v2415_v40, %s3621_s12 }
0x2b33   : > { %2468 = vadd.xlane.f32.xlu0 %v2467_v45 }
0x2b37   : > { %2471 = vadd.xlane.f32.xlu0 %v2470_v49 }
0x2b3b   : > { %2492 = vadd.xlane.f32.xlu0 %v2491_v54 }
0x2b3f   : > { %2495 = vadd.xlane.f32.xlu0 %v2494_v56  ;;  %v2424_v56 = vld [vmem:[%s3689_s14 + $0x8] sm:$0xff] }
0x2b43   : > { %2498 = vadd.xlane.f32.xlu0 %v2497_v59 }
0x2b47   : > { %2501 = vadd.xlane.f32.xlu0 %v2500_v62 }
0x2b4b   : > { %2504 = vadd.xlane.f32.xlu0 %v2503_v0 }
0x2b4e   : > { %v2466_v9 = vpop.xlane.xlu1 %2465 }
0x2b4f   : > { %2507 = vadd.xlane.f32.xlu0 %v2506_v1  ;;  %v2533_v22 = vrot.slane %v2466_v9, %v2532_v18 }
0x2b52   : > { %v2490_v11 = vpop.xlane.xlu1 %2489 }
0x2b53   : > { %v2565_v30 = vrot.slane %v2490_v11, %v2532_v18 }
0x2b56   : > { %v2475_v13 = vpop.xlane.xlu1 %2474 }
0x2b57   : > { %v2545_v24 = vrot.slane %v2475_v13, %v2532_v18 }
0x2b5a   : > { %v2478_v14 = vpop.xlane.xlu1 %2477 }
0x2b5b   : > { %v2549_v10 = vrot.slane %v2478_v14, %v2532_v18 }
0x2b5e   : > { %v2481_v16 = vpop.xlane.xlu1 %2480 }
0x2b5f   : > { %v2553_v15 = vrot.slane %v2481_v16, %v2532_v18 }
0x2b62   : > { %v2484_v20 = vpop.xlane.xlu1 %2483 }
0x2b63   : > { %v2557_v31 = vrot.slane %v2484_v20, %v2532_v18 }
0x2b66   : > { %v2487_v26 = vpop.xlane.xlu1 %2486 }
0x2b67   : > { %v2561_v5 = vrot.slane %v2487_v26, %v2532_v18 }
0x2b86   : > { %v2418_v2 = vpop.permute.xlu0 %2417 }
0x2b87   : > { %2421 = vst.msk [vmem:[#allocation4 + $0x1e] sm:$0x3] %vm830_vm5, %v2418_v2  ;;  %2422 = vst.msk [vmem:[#allocation2] sm:$0x3] %vm830_vm5, %v2418_v2 }
0x2b8e   : > { %v2440_v3 = vld [vmem:[#allocation4 + $0x1e] sm:$0x3] }
0x2b8f   : > { %v2463_v6 = vmul.f32 %v4170_v50, %v2440_v3 }
0x2b91   : > { %v2509_v8 = vsel %vm830_vm5, %v2463_v6, 0.0 }
0x2b92   : > { %2510 = vadd.xlane.f32.xlu1 %v2509_v8 }
0x2bc0   : > { %v2469_v19 = vpop.xlane.xlu0 %2468 }
0x2bc1   : > { %v2537_v21 = vrot.slane %v2469_v19, %v2532_v18 }
0x2bc3   : > { %v2595_v25 = vsel %vm2594_vm6, %v2537_v21, %v2533_v22 }
0x2bc4   : > { %v2472_v23 = vpop.xlane.xlu0 %2471 }
0x2bc5   : > { %v2541_v50 = vrot.slane %v2472_v23, %v2532_v18 }
0x2bc7   : > { %v2597_v4 = vsel %vm2596_vm7, %v2541_v50, %v2595_v25 }
0x2bc8   : > { %v2599_v27 = vsel %vm2598_vm8, %v2545_v24, %v2597_v4  ;;  %v2493_v12 = vpop.xlane.xlu0 %2492 }
0x2bc9   : > { %v2569_v29 = vrot.slane %v2493_v12, %v2532_v18  ;;  %v2601_v32 = vsel %vm2600_vm9, %v2549_v10, %v2599_v27 }
0x2bca   : > { %v2603_v33 = vsel %vm2602_vm10, %v2553_v15, %v2601_v32 }
0x2bcb   : > { %v2608_v42 = vsel %vm2594_vm6, %v2569_v29, %v2565_v30  ;;  %v2605_v34 = vsel %vm2604_vm11, %v2557_v31, %v2603_v33 }
0x2bcc   : > { %v2496_v35 = vpop.xlane.xlu0 %2495  ;;  %v2607_v36 = vsel %vm2606_vm12, %v2561_v5, %v2605_v34 }
0x2bcd   : > { %v2573_v37 = vrot.slane %v2496_v35, %v2532_v18  ;;  %v2617_v38 = vadd.f32 %v2607_v36, %v2423_v7 }
0x2bcf   : > { %v2609_v39 = vsel %vm2596_vm7, %v2573_v37, %v2608_v42  ;;  %2620 = vst.msk [vmem:[%s3694_s17] sm:$0xff] %vm2619_vm13, %v2617_v38 }
0x2bd0   : > { %v2499_v40 = vpop.xlane.xlu0 %2498 }
0x2bd1   : > { %v2577_v41 = vrot.slane %v2499_v40, %v2532_v18 }
0x2bd3   : > { %v2610_v43 = vsel %vm2598_vm8, %v2577_v41, %v2609_v39 }
0x2bd4   : > { %v2502_v44 = vpop.xlane.xlu0 %2501 }
0x2bd5   : > { %v2581_v45 = vrot.slane %v2502_v44, %v2532_v18 }
0x2bd7   : > { %v2611_v47 = vsel %vm2600_vm9, %v2581_v45, %v2610_v43 }
0x2bd8   : > { %v2505_v48 = vpop.xlane.xlu0 %2504 }
0x2bd9   : > { %v2585_v49 = vrot.slane %v2505_v48, %v2532_v18 }
0x2bdb   : > { %v2612_v52 = vsel %vm2602_vm10, %v2585_v49, %v2611_v47 }
0x2bdc   : > { %v2508_v53 = vpop.xlane.xlu0 %2507 }
0x2bdd   : > { %v2589_v54 = vrot.slane %v2508_v53, %v2532_v18 }
0x2bdf   : > { %v2613_v55 = vsel %vm2604_vm11, %v2589_v54, %v2612_v52 }
0x2c1f   : > { %v2511_v46 = vpop.xlane.xlu1 %2510 }
0x2c20   : > { %v2593_v57 = vrot.slane %v2511_v46, %v2532_v18 }
0x2c22   : > { %v2614_v58 = vsel %vm2606_vm12, %v2593_v57, %v2613_v55 }
0x2c23   : > { %v2618_v59 = vadd.f32 %v2614_v58, %v2424_v56 }
0x2c25   : > { %2621 = vst.msk [vmem:[%s3694_s17 + $0x8] sm:$0xff] %vm2619_vm13, %v2618_v59 }
0x2c26 PF: > { %s17_s26 = sadd.s32 1, %s3612_s26   ;;  %s4248_s24 = smov %s3608_s25 }
0x2c27   : > { %p14_p7 = scmp.ge.s32.totalorder %s17_s26, 4   ;;  %s4249_s25 = smov %s4251_s27 }
0x2c29   :  { %16 = sbr.rel (!%p14_p7) target bundleno = 2 (0x2), region = 115 }

</bundles_post_ra>
